<compile_context>
chip_gen: v7x
topology: tpu7x:2x2x1
jax: 0.10.0
libtpu: 0.0.40
codegen_flags: <defaults>
</compile_context>

<pallas_src>
import jax
import jax.numpy as jnp
from jax.experimental import pallas as pl
from jax.experimental.pallas import tpu as pltpu


def _rotary_kernel(x_ref, cos_ref, sin_ref, o_ref):
    # x_ref: (T_BLK, H, D); cos_ref / sin_ref: (T_BLK, D), f32, sign folded.
    x = x_ref[...].astype(jnp.float32)
    half = x.shape[-1] // 2
    # rotate-half: roll by D/2 along lanes (direction-symmetric since D/2 == -D/2 mod D)
    x_rot = pltpu.roll(x, shift=half, axis=x.ndim - 1)
    cos = cos_ref[...][:, None, :]   # (T_BLK, 1, D) -> broadcast over heads
    sin = sin_ref[...][:, None, :]
    o_ref[...] = (x * cos + x_rot * sin).astype(o_ref.dtype)


def _choose_t_block(T, H, D, itemsize, B, x_block_budget_bytes=4 << 20):
    """Largest T tile that (a) divides T, (b) is a multiple of 8 (sublane rule
    for the (tb, D) table blocks), (c) keeps the x block under a VMEM byte
    budget (dtype/H/D aware), and (d) leaves >= 2 grid steps when B == 1 so
    both v7x TensorCores get work.  Falls back to the full T (always legal)."""
    row_bytes = H * D * itemsize
    cap = max(8, x_block_budget_bytes // row_bytes)
    if B == 1 and T >= 16:
        cap = min(cap, max(8, T // 2))      # keep >=2 parallel grid steps
    if T <= cap:
        return T
    tb = (cap // 8) * 8
    while tb >= 8:
        if T % tb == 0:
            return tb
        tb -= 8
    # No multiple-of-8 divisor <= cap (pathological T): full-extent block.
    # TODO(synk): add a masked/padded last-tile path for very long prime-ish T.
    return T


def make_rotary_tables(head_dim, max_seq_len):
    """Mirrors Rotary.__init__, then folds the rotate-half sign into full-width
    tables ONCE (hoisted out of the per-call forward):
        cos_w = [cos_h, cos_h],  sin_w = [sin_h, -sin_h]   -> shape (max_T, D)
    so the kernel needs no lane slicing or concatenation."""
    quarter = head_dim // 4
    angular = (1.0 / 1024.0) ** jnp.linspace(0.0, 1.0, quarter, dtype=jnp.float32)
    angular = jnp.concatenate([angular, jnp.zeros((quarter,), jnp.float32)])
    t = jnp.arange(max_seq_len, dtype=jnp.float32)
    theta = t[:, None] * angular[None, :]                       # (max_T, D//2)
    cos_h, sin_h = jnp.cos(theta), jnp.sin(theta)
    cos_w = jnp.concatenate([cos_h, cos_h], axis=-1)            # (max_T, D)
    sin_w = jnp.concatenate([sin_h, -sin_h], axis=-1)           # (max_T, D)
    return cos_w, sin_w


@jax.jit
def rotary_forward(cos_w, sin_w, x_BTHD):
    B, T, H, D = x_BTHD.shape
    max_T, Dw = cos_w.shape
    assert max_T >= T, "max_seq_len must be >= T"
    assert Dw == D, "table width must equal head_dim"

    itemsize = jnp.dtype(x_BTHD.dtype).itemsize
    tb = _choose_t_block(T, H, D, itemsize, B)

    # Fallback path: if tb is not a sublane multiple (only possible when
    # tb == T), present the tables as exactly-T-row arrays so the (tb, D)
    # block is full-extent and therefore legal.
    if tb % 8 != 0 and tb != max_T:
        cos_w = cos_w[:T]
        sin_w = sin_w[:T]

    # Explicit VMEM budget: double-buffered x in + y out + cos/sin blocks.
    x_blk_bytes = tb * H * D * itemsize
    tab_blk_bytes = tb * D * 4
    vmem_needed = 4 * x_blk_bytes + 4 * tab_blk_bytes
    vmem_limit = int(min(max(vmem_needed + (4 << 20), 32 << 20), 48 << 20))

    grid = (T // tb, B)   # B innermost -> cos/sin block unchanged -> no re-DMA

    return pl.pallas_call(
        _rotary_kernel,
        grid=grid,
        out_shape=jax.ShapeDtypeStruct((B, T, H, D), x_BTHD.dtype),
        in_specs=[
            pl.BlockSpec((None, tb, H, D), lambda t, b: (b, t, 0, 0)),  # x (batch squeezed)
            pl.BlockSpec((tb, D), lambda t, b: (t, 0)),                 # cos_w
            pl.BlockSpec((tb, D), lambda t, b: (t, 0)),                 # sin_w
        ],
        out_specs=pl.BlockSpec((None, tb, H, D), lambda t, b: (b, t, 0, 0)),
        compiler_params=pltpu.CompilerParams(
            dimension_semantics=("parallel", "parallel"),
            vmem_limit_bytes=vmem_limit),
    )(x_BTHD, cos_w, sin_w)


def rotary_reference(cos_w, sin_w, x_BTHD):
    """Pure-JAX transcription of the PyTorch Rotary.forward (verification)."""
    T = x_BTHD.shape[-3]
    D = x_BTHD.shape[-1]
    half = D // 2
    cos = cos_w[:T, :half][None, :, None, :]
    sin = sin_w[:T, :half][None, :, None, :]   # positive half of the folded table
    xf = x_BTHD.astype(jnp.float32)
    x1, x2 = xf[..., :half], xf[..., half:]
    y1 = x1 * cos + x2 * sin
    y2 = x1 * (-sin) + x2 * cos
    return jnp.concatenate([y1, y2], axis=-1).astype(x_BTHD.dtype)


if __name__ == "__main__":
    # Small but representative shapes: B=2, T=256, H=8 heads, head_dim=128.
    B, T, H, D, MAX_T = 2, 256, 8, 128, 512
    key = jax.random.PRNGKey(0)
    x = jax.random.normal(key, (B, T, H, D), jnp.float32)

    cos_w, sin_w = make_rotary_tables(D, MAX_T)

    y = rotary_forward(cos_w, sin_w, x)
    jax.block_until_ready(y)

    y_ref = rotary_reference(cos_w, sin_w, x)
    assert y.shape == x.shape and y.dtype == x.dtype
    max_err = float(jnp.max(jnp.abs(y - y_ref)))
    assert max_err < 1e-5, f"mismatch vs reference: {max_err}"
    print("KERNEL_OK")
</pallas_src>

<mosaic_0001>
module attributes {stable_mosaic.version = 11 : i64} {
  func.func @_rotary_kernel(%arg0: i32, %arg1: i32, %arg2: memref<1x256x8x128xf32, #tpu.memory_space<vmem>>, %arg3: memref<256x128xf32, #tpu.memory_space<vmem>>, %arg4: memref<256x128xf32, #tpu.memory_space<vmem>>, %arg5: memref<1x256x8x128xf32, #tpu.memory_space<vmem>>) attributes {dimension_semantics = [#tpu.dimension_semantics<parallel>, #tpu.dimension_semantics<parallel>], iteration_bounds = array<i64: 1, 2>, scalar_prefetch = 0 : i64, scratch_operands = 0 : i64, tpu.core_type = #tpu.core_type<tc>, window_params = [{transform_indices = @transform_0, window_bounds = array<i64: 1, 256, 8, 128>}, {transform_indices = @transform_1, window_bounds = array<i64: 256, 128>}, {transform_indices = @transform_2, window_bounds = array<i64: 256, 128>}, {transform_indices = @transform_3, window_bounds = array<i64: 1, 256, 8, 128>}]} {
    %c0 = arith.constant 0 : index
    %c0_0 = arith.constant 0 : index
    %c0_1 = arith.constant 0 : index
    %c0_2 = arith.constant 0 : index
    %0 = vector.load %arg2[%c0, %c0_0, %c0_1, %c0_2] : memref<1x256x8x128xf32, #tpu.memory_space<vmem>>, vector<1x256x8x128xf32>
    %1 = vector.shape_cast %0 : vector<1x256x8x128xf32> to vector<256x8x128xf32>
    %c64_i32 = arith.constant 64 : i32
    %2 = tpu.dynamic_rotate %1 by %c64_i32 dim 2 : vector<256x8x128xf32>, i32 -> vector<256x8x128xf32>
    %c0_3 = arith.constant 0 : index
    %c0_4 = arith.constant 0 : index
    %3 = vector.load %arg3[%c0_3, %c0_4] : memref<256x128xf32, #tpu.memory_space<vmem>>, vector<256x128xf32>
    %4 = vector.shape_cast %3 : vector<256x128xf32> to vector<256x1x128xf32>
    %c0_5 = arith.constant 0 : index
    %c0_6 = arith.constant 0 : index
    %5 = vector.load %arg4[%c0_5, %c0_6] : memref<256x128xf32, #tpu.memory_space<vmem>>, vector<256x128xf32>
    %6 = vector.shape_cast %5 : vector<256x128xf32> to vector<256x1x128xf32>
    %7 = vector.broadcast %4 : vector<256x1x128xf32> to vector<256x8x128xf32>
    %8 = arith.mulf %1, %7 : vector<256x8x128xf32>
    %9 = vector.broadcast %6 : vector<256x1x128xf32> to vector<256x8x128xf32>
    %10 = arith.mulf %2, %9 : vector<256x8x128xf32>
    %11 = arith.addf %8, %10 : vector<256x8x128xf32>
    %c0_7 = arith.constant 0 : index
    %c0_8 = arith.constant 0 : index
    %c0_9 = arith.constant 0 : index
    %c0_10 = arith.constant 0 : index
    %12 = vector.load %arg5[%c0_7, %c0_8, %c0_9, %c0_10] : memref<1x256x8x128xf32, #tpu.memory_space<vmem>>, vector<1x256x8x128xf32>
    %13 = vector.shape_cast %12 : vector<1x256x8x128xf32> to vector<256x8x128xf32>
    %14 = vector.shape_cast %11 : vector<256x8x128xf32> to vector<1x256x8x128xf32>
    tpu.vector_store %arg5[%c0_7, %c0_8, %c0_9, %c0_10], %14 {strides = array<i32>} : memref<1x256x8x128xf32, #tpu.memory_space<vmem>>, vector<1x256x8x128xf32>,
    return
  }
  func.func @transform_0(%arg0: i32, %arg1: i32) -> (i32, i32, i32, i32) {
    %c0_i32 = arith.constant 0 : i32
    %c0_i32_0 = arith.constant 0 : i32
    %c0_i32_1 = arith.constant 0 : i32
    return %arg1, %arg0, %c0_i32, %c0_i32_0 : i32, i32, i32, i32
  }
  func.func @transform_1(%arg0: i32, %arg1: i32) -> (i32, i32) {
    %c0_i32 = arith.constant 0 : i32
    %c0_i32_0 = arith.constant 0 : i32
    return %arg0, %c0_i32 : i32, i32
  }
  func.func @transform_2(%arg0: i32, %arg1: i32) -> (i32, i32) {
    %c0_i32 = arith.constant 0 : i32
    %c0_i32_0 = arith.constant 0 : i32
    return %arg0, %c0_i32 : i32, i32
  }
  func.func @transform_3(%arg0: i32, %arg1: i32) -> (i32, i32, i32, i32) {
    %c0_i32 = arith.constant 0 : i32
    %c0_i32_0 = arith.constant 0 : i32
    %c0_i32_1 = arith.constant 0 : i32
    return %arg1, %arg0, %c0_i32, %c0_i32_0 : i32, i32, i32, i32
  }
}

</mosaic_0001>

<bundles_post_ra>
// kernel: rotary_forward.1
= control target key start
LH: loop header
LB: loop body
LE: loop exit
PB: predicated region body
PF: predicated region fallthrough
CT: control target
= control target key end

     0   :  { %8 = vsyncpa [#allocation3], 0  ;;  %s12489_s0 = inlined_call_operand.hbm [shape: f32[2,256,8,128], index: 0, kind: input, shape index: {}]   ;;  %s12490_s1 = inlined_call_operand.hbm [shape: f32[512,128], index: 1, kind: input, shape index: {}]   ;;  %s12491_s2 = inlined_call_operand.hbm [shape: f32[512,128], index: 2, kind: input, shape index: {}]   ;;  %s12492_s3 = inlined_call_operand.hbm [shape: f32[2,256,8,128], index: 3, kind: output, shape index: {}]  }
   0x1   :  { %10 = vsyncpa [#allocation3 + $0x1], 0 }
   0x2   :  { %11 = vsyncpa [#allocation6], 0 }
   0x3   :  { %12 = vsyncpa [#allocation4], 0 }
   0x4   :  { %14 = vsyncpa [#allocation4 + $0x1], 0  ;;  %s8474_s12 = smov 0   ;;  %s8476_s13 = smov 0  }
   0x5   :  { %s8478_s14 = smov 0   ;;  %s8480_s15 = smov 0  }
   0x6   :  { %s8482_s16 = smov 0   ;;  %s8484_s17 = smov 0  }
   0x7 LB: > { %s7998_s18 = sadd.s32 4294967295, %s8442_s17   ;;  %s7999_s19 = sadd.s32 4294967294, %s8442_s17   ;;  %s8442_s17 = sphi %s8484_s17, %s20_s17   ;;  %s8438_s16 = sphi %s8482_s16, %s12713_s16   ;;  %s8434_s15 = sphi %s8480_s15, %s12712_s15   ;;  %s8430_s14 = sphi %s8478_s14, %s12711_s14   ;;  %s8426_s13 = sphi %s8476_s13, %s12710_s13   ;;  %s8422_s12 = sphi %s8474_s12, %s12709_s12  }
   0x8   : > { %p54_p0 = scmp.ne.s32.totalorder %s8426_s13, %s8422_s12  ;;  %p8508_p1 = scmp.eq.s32.totalorder %s7998_s18, 0 }
   0x9   : > { %p8512_p2 = scmp.eq.s32.totalorder %s7998_s18, 1  ;;  %p138_p3 = scmp.eq.s32.totalorder %s7999_s19, 1 }
   0xa   : > { %s12519_s20 = scalar_select %p8508_p1, 1, 0 }
   0xb   : > { %s12520_s21 = scalar_select %p8512_p2, 1, 0 }
   0xc   : > { %p8518_p4 = por %p8508_p1, %p54_p0  ;;  %p8000_p5 = scmp.ge.s32.totalorder %s8442_s17, 1 }
   0xd   : > { %p8523_p6 = por %p138_p3, %p54_p0  ;;  %p145_p7 = scmp.lt.s32.totalorder %s8442_s17, 3 }
   0xe   : > { %s12521_s22 = scalar_select %p8518_p4, 1, 0 }
   0xf   : > { %s12522_s23 = scalar_select %p8523_p6, 1, 0 }
  0x10   : > { %p8528_p8 = pnand %p8000_p5, %p145_p7  ;;  %s8444_s25 = smov [#allocation5]  }
  0x11   : > { %s160_s26 = sshll.u32 %s8444_s25, 4  ;;  %s8445_s28 = smov [#allocation7]   ;;  %s8532_s26 = int_to_ptr.vmem [resolvable:$true] %s160_s26 }
  0x12   : > { %s12523_s24 = scalar_select %p8528_p8, 1, 0 }
  0x13   : > { %p8031_p9 = pneg %p8528_p8  ;;  %s176_s29 = sshll.u32 %s8445_s28, 4  ;;  %s8543_s29 = int_to_ptr.vmem [resolvable:$true] %s176_s29 }
  0x14   : > { %s8270_s5 = scalar_lea.hbm %s12490_s1, 4096  ;;  %s8275_s10 = scalar_lea.hbm %s12490_s1, 8192 }
  0x15   : > { %p8539_p11 = pnand %p8031_p9, %p8508_p1  ;;  %p8271_p12 = scmp.ne.s32.totalorder %s12490_s1, %s8270_s5 }
  0x16   : > { %p8276_p5 = scmp.lt.u32.totalorder %s8275_s10, %s8270_s5  ;;  %p8277_p7 = scmp.lt.u32.totalorder %s8270_s5, %s12490_s1 }
  0x17   : > { %p8272_p13 = pneg %p8539_p11 }
  0x18   : > { %p8278_p9 = por %p8277_p7, %p8276_p5 }
  0x19   : > { %p8273_p0 = pnand %p8272_p13, %p8271_p12 }
  0x1b   : > { %p8274_p3 = pneg %p8273_p0 }
  0x1d   : > { %p8279_p10 = pnand %p8278_p9, %p8274_p3 }
  0x1f   : > { %8282 = shalt.err (!%p8279_p10)
}
  0x20   : > { %s8283_s19 = scalar_lea.vmem %s8532_s26, 4096  ;;  %p8291_p1 = scmp.lt.s32.totalorder %s8532_s26, %s8532_s26 }
  0x21   : > { %p8284_p6 = scmp.ne.s32.totalorder %s8532_s26, %s8283_s19  ;;  %p8292_p4 = scmp.lt.s32.totalorder %s8283_s19, %s8283_s19 }
  0x23   : > { %p8286_p12 = pnand %p8284_p6, %p8272_p13  ;;  %p8293_p8 = por %p8292_p4, %p8291_p1 }
  0x25   : > { %p8287_p0 = pneg %p8286_p12 }
  0x27   : > { %p8294_p2 = pnand %p8293_p8, %p8287_p0 }
  0x29   : > { %8297 = shalt.err (!%p8294_p2)
}
  0x2a   : > { %s8446_s25 = smov 128   ;;  %s8447_s28 = smov 8  }
  0x2b   : > { %8034 = dma.hbm_to_vmem [thread:$0]  (!%p8539_p11), %s12490_s1, 4096, %s8532_s26, [#allocation6], %s8446_s25, %s8446_s25, %s8447_s28  }
  0x2c   : > { %s8298_s7 = scalar_lea.hbm %s12491_s2, 4096  ;;  %s8303_s18 = scalar_lea.hbm %s12491_s2, 8192 }
  0x2d   : > { %p8299_p1 = scmp.ne.s32.totalorder %s12491_s2, %s8298_s7  ;;  %p8304_p6 = scmp.lt.u32.totalorder %s8303_s18, %s8298_s7 }
  0x2e   : > { %p8305_p8 = scmp.lt.u32.totalorder %s8298_s7, %s12491_s2 }
  0x2f   : > { %p8301_p2 = pnand %p8299_p1, %p8272_p13 }
  0x30   : > { %p8306_p10 = por %p8305_p8, %p8304_p6 }
  0x31   : > { %p8302_p4 = pneg %p8301_p2 }
  0x33   : > { %p8307_p3 = pnand %p8306_p10, %p8302_p4 }
  0x35   : > { %8310 = shalt.err (!%p8307_p3)
}
  0x36   : > { %s8311_s26 = scalar_lea.vmem %s8543_s29, 4096  ;;  %p8319_p12 = scmp.lt.s32.totalorder %s8543_s29, %s8543_s29 }
  0x37   : > { %p8312_p5 = scmp.ne.s32.totalorder %s8543_s29, %s8311_s26  ;;  %p8320_p0 = scmp.lt.s32.totalorder %s8311_s26, %s8311_s26 }
  0x39   : > { %p8314_p7 = pnand %p8312_p5, %p8272_p13  ;;  %p8321_p1 = por %p8320_p0, %p8319_p12 }
  0x3b   : > { %p8315_p9 = pneg %p8314_p7 }
  0x3d   : > { %p8322_p2 = pnand %p8321_p1, %p8315_p9 }
  0x3f   : > { %8325 = shalt.err (!%p8322_p2)
}
  0x40   : > { %8037 = dma.hbm_to_vmem [thread:$0]  (!%p8539_p11), %s12491_s2, 4096, %s8543_s29, [#allocation6], %s8446_s25, %s8446_s25, %s8447_s28  }
  0x41   : > { %s29_s27 = sadd.s32 1, %s8438_s16  ;;  %s41_s6 = sadd.s32 1, %s8430_s14 }
  0x42   : > { %p30_p13 = scmp.ge.s32.totalorder %s29_s27, 2  ;;  %p48_p4 = scmp.ne.s32.totalorder %s8430_s14, %s8426_s13 }
  0x43   : > { %p49_p6 = scmp.eq.s32.totalorder %s8442_s17, 0  ;;  %p8048_p8 = scmp.lt.s32.totalorder %s8442_s17, 2 }
  0x44   : > { %s12715_s27 = smov (%p30_p13, %s29_s27), 0  ;;  %p12525_p3 = scmp.ne.s32.totalorder %s12520_s21, 0 }
  0x45   : > { %p50_p10 = por %p49_p6, %p48_p4  ;;  %s36_s8 = ssub.s32 %s8438_s16, %s12715_s27 }
  0x46   : > { %p8619_p5 = por %p12525_p3, %p48_p4  ;;  %s190_s9 = sand.u32 1, %s8430_s14  }
  0x47   : > { %p39_p7 = scmp.eq.s32.totalorder %s36_s8, 0  ;;  %s8004_s29 = sshll.u32 %s190_s9, 11 }
  0x48   : > { %s8017_s10 = sshll.u32 %s8438_s16, 15  ;;  %s194_s21 = scalar_lea.vmem [#allocation2], %s8004_s29 }
  0x49   : > { %s8628_s11 = scalar_select %p39_p7, %s8430_s14, %s41_s6  }
  0x4a   : > { %s8633_s30 = scalar_lea.hbm %s12489_s0, %s8017_s10  ;;  %s203_s26 = sshll.u32 %s194_s21, 4  ;;  %s8641_s26 = int_to_ptr.vmem [resolvable:$true] %s203_s26 }
  0x4b   : > { %p8637_p11 = pnand %p8048_p8, %p50_p10  ;;  %s8643_s5 = scalar_lea.sflag [#allocation3], %s190_s9 }
  0x4c   : > { %s8326_s6 = scalar_lea.hbm %s8633_s30, 32768  ;;  %s8331_s10 = scalar_lea.hbm %s12489_s0, 65536 }
  0x4d   : > { %p8327_p9 = scmp.ne.s32.totalorder %s8633_s30, %s8326_s6  ;;  %p8328_p12 = pneg %p8637_p11 }
  0x4e   : > { %p8332_p2 = scmp.lt.u32.totalorder %s8633_s30, %s12489_s0  ;;  %p8333_p13 = scmp.lt.u32.totalorder %s8331_s10, %s8326_s6 }
  0x4f   : > { %p8329_p0 = pnand %p8328_p12, %p8327_p9  ;;  %p8335_p6 = scmp.lt.u32.totalorder %s8326_s6, %s8633_s30 }
  0x50   : > { %p8334_p4 = por %p8333_p13, %p8332_p2 }
  0x51   : > { %p8330_p1 = pneg %p8329_p0 }
  0x52   : > { %p8336_p8 = por %p8335_p6, %p8334_p4 }
  0x54   : > { %p8337_p10 = pnand %p8336_p8, %p8330_p1 }
  0x56   : > { %8340 = shalt.err (!%p8337_p10)
}
  0x57   : > { %s8341_s9 = scalar_lea.vmem %s8641_s26, 32768  ;;  %s8448_s21 = smov [#allocation2]  }
  0x58   : > { %p8342_p3 = scmp.ne.s32.totalorder %s8641_s26, %s8341_s9  ;;  %s8346_s8 = sshll.u32 %s8448_s21, 4  ;;  %s8347_s8 = int_to_ptr.vmem [resolvable:$false] %s8346_s8 }
  0x59   : > { %s8348_s29 = scalar_lea.vmem %s8347_s8, 65536  ;;  %p8349_p0 = scmp.lt.s32.totalorder %s8641_s26, %s8347_s8 }
  0x5a   : > { %p8344_p7 = pnand %p8342_p3, %p8328_p12  ;;  %p8350_p2 = scmp.lt.s32.totalorder %s8348_s29, %s8341_s9 }
  0x5c   : > { %p8345_p9 = pneg %p8344_p7  ;;  %p8351_p13 = por %p8350_p2, %p8349_p0 }
  0x5e   : > { %p8352_p4 = pnand %p8351_p13, %p8345_p9 }
  0x60   : > { %8355 = shalt.err (!%p8352_p4)
}
  0x61   : > { %8041 = dma.hbm_to_vmem [thread:$0]  (!%p8637_p11), %s8633_s30, 32768, %s8641_s26, %s8643_s5, %s8446_s25, %s8446_s25, %s8447_s28  }
  0x62   : > { %p12528_p12 = scmp.ne.s32.totalorder %s12523_s24, 0 }
  0x64   : > { %215 = sbr.rel (%p12528_p12) target bundleno = 767 (0x2ff), region = 32 }
  0x6b   : > { %s8677_s6 = sand.u32 1, %s8426_s13   ;;  %p12529_p1 = scmp.ne.s32.totalorder %s12521_s22, 0 }
  0x6c   : > { %s8008_s10 = sshll.u32 %s8677_s6, 11  ;;  %s218_s18 = scalar_lea.sflag [#allocation3], %s8677_s6 }
  0x6d   : > { %s8683_s4 = scalar_lea.vmem [#allocation2], %s8008_s10 }
  0x6e   : > { %8409 = dma.done.wait (%p12529_p1), %s218_s18, 32768  }
  0x6f   : > { %8411 = vsyncadd (%p12529_p1), %s218_s18, 4294934528  ;;  %p12530_p11 = scmp.ne.s32.totalorder %s12519_s20, 0 }
  0x71   : > { %8413 = dma.done.wait (%p12530_p11), [#allocation6], 8192  }
  0x72   : > { %8415 = vsyncadd (%p12530_p11), [#allocation6], 4294959104  ;;  %v8694_v0 = vld [vmem:[%s8683_s4 + $0x10] sm:$0xff]  ;;  %v8697_v1 = vld [vmem:[%s8683_s4] sm:$0xff]  ;;  %s8449_s22 = smov 64   ;;  %v1092_v26 = vlaneseq  ;;  %s9275_s20 = scalar_lea.vmem [#allocation8], %s8008_s10 }
  0x73   : > { %516 = vrot.lane.b32.xlu1 %v8694_v0, %s8449_s22  ;;  %512 = vrot.lane.b32.xlu0 %v8697_v1, %s8449_s22  ;;  %v8704_v2 = vld [vmem:[%s8683_s4 + $0x18] sm:$0xff]  ;;  %v8707_v3 = vld [vmem:[%s8683_s4 + $0x8] sm:$0xff]  ;;  %v8450_v24 = vmov 1966171168   ;;  %v1024_v34 = vld [vmem:[#allocation5] sm:$0xff]  ;;  %s8018_s24 = sshll.u32 %s8434_s15, 15 }
  0x74   : > { %v8714_v4 = vld [vmem:[%s8683_s4 + $0x28] sm:$0xff]  ;;  %v8717_v5 = vld [vmem:[%s8683_s4 + $0x20] sm:$0xff]  ;;  %v8724_v6 = vld [vmem:[%s8683_s4 + $0x38] sm:$0xff]  ;;  %v1090_v25 = vunpack.c.l.s4 %v8450_v24  ;;  %v1093_v30 = vshrl.u32 %v1092_v26, 7  ;;  %v1088_v37 = vcombine.high %v1024_v34, %v1024_v34  ;;  %s7888_s25 = sshll.u32 %s9275_s20, 4  ;;  %s12436_s26 = scalar_lea.hbm %s12492_s3, %s8018_s24  ;;  %s12438_s25 = int_to_ptr.vmem [resolvable:$true] %s7888_s25 }
  0x75   : > { %v8727_v7 = vld [vmem:[%s8683_s4 + $0x30] sm:$0xff]  ;;  %v8734_v8 = vld [vmem:[%s8683_s4 + $0x48] sm:$0xff]  ;;  %v8737_v9 = vld [vmem:[%s8683_s4 + $0x40] sm:$0xff]  ;;  %s7873_s15 = scalar_lea.sflag [#allocation4], %s8677_s6  ;;  %s8356_s5 = scalar_lea.vmem %s12438_s25, 32768 }
  0x76   : > { %v8744_v10 = vld [vmem:[%s8683_s4 + $0x58] sm:$0xff]  ;;  %v8747_v11 = vld [vmem:[%s8683_s4 + $0x50] sm:$0xff]  ;;  %v8754_v12 = vld [vmem:[%s8683_s4 + $0x68] sm:$0xff]  ;;  %v1091_v29 = vunpack.c.0.s8 %v1090_v25  ;;  %v8866_v51 = vsub.s32 0, %v1093_v30  ;;  %p8357_p6 = scmp.ne.s32.totalorder %s12438_s25, %s8356_s5  ;;  %s8451_s19 = smov [#allocation8]  }
  0x77   : > { %518 = vrot.lane.b32.xlu1 %v8704_v2, %s8449_s22  ;;  %514 = vrot.lane.b32.xlu0 %v8707_v3, %s8449_s22  ;;  %v8757_v13 = vld [vmem:[%s8683_s4 + $0x60] sm:$0xff]  ;;  %v8764_v14 = vld [vmem:[%s8683_s4 + $0x78] sm:$0xff]  ;;  %v1025_v39 = vld [vmem:[#allocation5 + $0x8] sm:$0xff]  ;;  %s8360_s9 = sshll.u32 %s8451_s19, 4  ;;  %s8361_s9 = int_to_ptr.vmem [resolvable:$false] %s8360_s9 }
  0x78   : > { %v8767_v15 = vld [vmem:[%s8683_s4 + $0x70] sm:$0xff]  ;;  %v8774_v16 = vld [vmem:[%s8683_s4 + $0x88] sm:$0xff]  ;;  %v8777_v17 = vld [vmem:[%s8683_s4 + $0x80] sm:$0xff]  ;;  %v8829_v33 = vsub.s32 %v1091_v29, %v1093_v30  ;;  %v1137_v53 = vcombine.high %v1025_v39, %v1025_v39  ;;  %p8358_p8 = pnand %p8357_p6, %p8619_p5  ;;  %s8362_s21 = scalar_lea.vmem %s8361_s9, 65536 }
  0x79   : > { %v8784_v18 = vld [vmem:[%s8683_s4 + $0x98] sm:$0xff]  ;;  %v8787_v19 = vld [vmem:[%s8683_s4 + $0x90] sm:$0xff]  ;;  %v8794_v20 = vld [vmem:[%s8683_s4 + $0xa8] sm:$0xff]  ;;  %p8363_p3 = scmp.lt.s32.totalorder %s12438_s25, %s8361_s9  ;;  %p8364_p7 = scmp.lt.s32.totalorder %s8362_s21, %s8356_s5 }
  0x7a   : > { %v8797_v21 = vld [vmem:[%s8683_s4 + $0xa0] sm:$0xff]  ;;  %v8804_v22 = vld [vmem:[%s8683_s4 + $0xb8] sm:$0xff]  ;;  %v8807_v23 = vld [vmem:[%s8683_s4 + $0xb0] sm:$0xff]  ;;  %v1095_v38 = vrot.slane %v1024_v34, %v8829_v33  ;;  %v1144_v43 = vrot.slane %v1025_v39, %v8829_v33  ;;  %v1102_v45 = vrot.slane %v1088_v37, %v8829_v33  ;;  %v1151_v24 = vrot.slane %v1137_v53, %v8829_v33  ;;  %p8359_p10 = pneg %p8358_p8 }
  0x7b   : > { %522 = vrot.lane.b32.xlu1 %v8714_v4, %s8449_s22  ;;  %520 = vrot.lane.b32.xlu0 %v8717_v5, %s8449_s22  ;;  %v8814_v27 = vld [vmem:[%s8683_s4 + $0xc8] sm:$0xff]  ;;  %v8817_v28 = vld [vmem:[%s8683_s4 + $0xc0] sm:$0xff]  ;;  %v1026_v60 = vld [vmem:[#allocation5 + $0x10] sm:$0xff]  ;;  %p8365_p9 = por %p8364_p7, %p8363_p3 }
  0x7c   : > { %v8824_v31 = vld [vmem:[%s8683_s4 + $0xd8] sm:$0xff]  ;;  %v8827_v32 = vld [vmem:[%s8683_s4 + $0xd0] sm:$0xff]  ;;  %v8836_v35 = vld [vmem:[%s8683_s4 + $0xe8] sm:$0xff]  ;;  %v1103_v42 = vcombine.high %v1095_v38, %v1095_v38  ;;  %v1111_v44 = vrot.slane %v1095_v38, %v8829_v33  ;;  %v1152_v49 = vcombine.high %v1144_v43, %v1144_v43  ;;  %v1104_v52 = vcombine.high %v1102_v45, %v1102_v45 }
  0x7d   : > { %v8839_v36 = vld [vmem:[%s8683_s4 + $0xe0] sm:$0xff]  ;;  %v8847_v40 = vld [vmem:[%s8683_s4 + $0xf8] sm:$0xff]  ;;  %v8850_v41 = vld [vmem:[%s8683_s4 + $0xf0] sm:$0xff]  ;;  %v1118_v54 = vrot.slane %v1102_v45, %v8829_v33  ;;  %v1160_v55 = vrot.slane %v1144_v43, %v8829_v33  ;;  %v1193_v34 = vrot.slane %v1026_v60, %v8829_v33  ;;  %v1186_v37 = vcombine.high %v1026_v60, %v1026_v60  ;;  %p8366_p0 = pnand %p8365_p9, %p8359_p10 }
  0x7e   : > { %v8860_v46 = vld [vmem:[%s8683_s4 + $0x108] sm:$0xff]  ;;  %v8863_v47 = vld [vmem:[%s8683_s4 + $0x100] sm:$0xff]  ;;  %v1125_v48 = vrot.slane %v1103_v42, %v8829_v33  ;;  %v1133_v50 = vcombine.high %v1111_v44, %v1111_v44  ;;  %v8875_v56 = vld [vmem:[%s8683_s4 + $0x118] sm:$0xff]  ;;  %v1174_v59 = vrot.slane %v1152_v49, %v8829_v33  ;;  %v4291_v62 = vrot.slane %v1111_v44, %v8866_v51 }
  0x7f   : > { %526 = vrot.lane.b32.xlu1 %v8724_v6, %s8449_s22  ;;  %524 = vrot.lane.b32.xlu0 %v8727_v7, %s8449_s22  ;;  %v8878_v57 = vld [vmem:[%s8683_s4 + $0x110] sm:$0xff]  ;;  %v1132_v63 = vrot.slane %v1104_v52, %v8829_v33  ;;  %v4307_v26 = vrot.slane %v1118_v54, %v8866_v51  ;;  %v1134_v29 = vcombine.high %v1118_v54, %v1118_v54  ;;  %v8894_v38 = vld [vmem:[%s8683_s4 + $0x128] sm:$0xff] }
  0x80   : > { %v1135_v58 = vcombine.high %v1125_v48, %v1125_v48  ;;  %v4299_v61 = vrot.slane %v1133_v50, %v8866_v51  ;;  %v4295_v25 = vrot.slane %v1125_v48, %v8866_v51  ;;  %v4323_v30 = vrot.slane %v1160_v55, %v8866_v51  ;;  %v8897_v39 = vld [vmem:[%s8683_s4 + $0x120] sm:$0xff] }
  0x81   : > { %v1136_v43 = vcombine.high %v1132_v63, %v1132_v63  ;;  %v4327_v44 = vrot.slane %v1174_v59, %v8866_v51  ;;  %v1184_v45 = vcombine.high %v1174_v59, %v1174_v59  ;;  %v8905_v49 = vmul.f32 %v4291_v62, %v8697_v1 }
  0x82   : > { %v4303_v42 = vrot.slane %v1135_v58, %v8866_v51  ;;  %v8902_v48 = vmul.f32 %v4299_v61, %v8694_v0  ;;  %v4311_v50 = vrot.slane %v1132_v63, %v8866_v51  ;;  %v1153_v52 = vcombine.high %v1151_v24, %v1151_v24  ;;  %v8922_v61 = vld [vmem:[%s8683_s4 + $0x138] sm:$0xff] }
  0x83   : > { %530 = vrot.lane.b32.xlu1 %v8734_v8, %s8449_s22  ;;  %528 = vrot.lane.b32.xlu0 %v8737_v9, %s8449_s22  ;;  %v8909_v53 = vmul.f32 %v4295_v25, %v8707_v3  ;;  %v8912_v54 = vmul.f32 %v4307_v26, %v8717_v5  ;;  %v4315_v58 = vrot.slane %v1134_v29, %v8866_v51  ;;  %v8925_v3 = vld [vmem:[%s8683_s4 + $0x130] sm:$0xff] }
  0x84   : > { %v1182_v0 = vcombine.high %v1160_v55, %v1160_v55  ;;  %v1167_v1 = vrot.slane %v1151_v24, %v8829_v33  ;;  %v1201_v59 = vcombine.high %v1193_v34, %v1193_v34  ;;  %v1200_v60 = vrot.slane %v1186_v37, %v8829_v33 }
  0x85   : > { %v8928_v5 = vmul.f32 %v4303_v42, %v8704_v2  ;;  %v4319_v62 = vrot.slane %v1136_v43, %v8866_v51  ;;  %v8932_v63 = vmul.f32 %v4327_v44, %v8734_v8  ;;  %v4335_v55 = vrot.slane %v1184_v45, %v8866_v51  ;;  %v1027_v2 = vld [vmem:[#allocation5 + $0x18] sm:$0xff]  ;;  %v8953_v44 = vld [vmem:[%s8683_s4 + $0x148] sm:$0xff]  ;;  %v8956_v45 = vld [vmem:[%s8683_s4 + $0x140] sm:$0xff] }
  0x86   : > { %v8936_v24 = vmul.f32 %v4311_v50, %v8714_v4  ;;  %v8939_v25 = vmul.f32 %v4323_v30, %v8737_v9  ;;  %v1181_v26 = vrot.slane %v1153_v52, %v8829_v33  ;;  %v1183_v29 = vcombine.high %v1167_v1, %v1167_v1 }
  0x87   : > { %534 = vrot.lane.b32.xlu1 %v8744_v10, %s8449_s22  ;;  %532 = vrot.lane.b32.xlu0 %v8747_v11, %s8449_s22  ;;  %12531 = vst [vmem:[#allocation12_spill] sm:$0xff] %v8932_v63  ;;  %v8943_v37 = vmul.f32 %v4315_v58, %v8727_v7  ;;  %v1209_v8 = vrot.slane %v1193_v34, %v8829_v33  ;;  %v1028_v63 = vld [vmem:[#allocation5 + $0x20] sm:$0xff] }
  0x88   : > { %12532 = vst [vmem:[#allocation13_spill] sm:$0xff] %v8939_v25  ;;  %v1235_v42 = vcombine.high %v1027_v2, %v1027_v2  ;;  %v4331_v4 = vrot.slane %v1182_v0, %v8866_v51  ;;  %v1185_v9 = vcombine.high %v1181_v26, %v1181_v26  ;;  %v1223_v30 = vrot.slane %v1201_v59, %v8829_v33 }
  0x89   : > { %12533 = vst [vmem:[#allocation14_spill] sm:$0xff] %v8943_v37  ;;  %v1202_v43 = vcombine.high %v1200_v60, %v1200_v60  ;;  %v8959_v7 = vmul.f32 %v4319_v62, %v8724_v6  ;;  %v8962_v34 = vmul.f32 %v4335_v55, %v8744_v10  ;;  %v4339_v50 = vrot.slane %v1167_v1, %v8866_v51 }
  0x8a   : > { %v1231_v52 = vcombine.high %v1209_v8, %v1209_v8  ;;  %v4343_v58 = vrot.slane %v1181_v26, %v8866_v51  ;;  %v4347_v0 = vrot.slane %v1183_v29, %v8866_v51  ;;  %v1233_v59 = vcombine.high %v1223_v30, %v1223_v30  ;;  %v8982_v29 = vld [vmem:[%s8683_s4 + $0x158] sm:$0xff] }
  0x8b   : > { %538 = vrot.lane.b32.xlu1 %v8754_v12, %s8449_s22  ;;  %536 = vrot.lane.b32.xlu0 %v8757_v13, %s8449_s22  ;;  %v1242_v25 = vrot.slane %v1027_v2, %v8829_v33  ;;  %v4355_v37 = vrot.slane %v1209_v8, %v8866_v51  ;;  %v1216_v6 = vrot.slane %v1200_v60, %v8829_v33  ;;  %v8985_v60 = vld [vmem:[%s8683_s4 + $0x150] sm:$0xff] }
  0x8c   : > { %v1249_v10 = vrot.slane %v1235_v42, %v8829_v33  ;;  %v8976_v1 = vmul.f32 %v4331_v4, %v8747_v11  ;;  %v4351_v62 = vrot.slane %v1185_v9, %v8866_v51  ;;  %v4359_v55 = vrot.slane %v1223_v30, %v8866_v51 }
  0x8d   : > { %v1230_v26 = vrot.slane %v1202_v43, %v8829_v33  ;;  %v8988_v2 = vmul.f32 %v4339_v50, %v8757_v13  ;;  %v4363_v8 = vrot.slane %v1231_v52, %v8866_v51  ;;  %v1232_v42 = vcombine.high %v1216_v6, %v1216_v6 }
  0x8e   : > { %12534 = vst [vmem:[#allocation15_spill] sm:$0xff] %v8976_v1  ;;  %v1291_v11 = vrot.slane %v1028_v63, %v8829_v33  ;;  %v8993_v4 = vmul.f32 %v4343_v58, %v8754_v12  ;;  %v4367_v9 = vrot.slane %v1233_v59, %v8866_v51  ;;  %v1250_v43 = vcombine.high %v1242_v25, %v1242_v25 }
  0x8f   : > { %542 = vrot.lane.b32.xlu1 %v8764_v14, %s8449_s22  ;;  %540 = vrot.lane.b32.xlu0 %v8767_v15, %s8449_s22  ;;  %v1234_v30 = vcombine.high %v1230_v26, %v1230_v26  ;;  %v8997_v1 = vmul.f32 %v4347_v0, %v8767_v15  ;;  %v9000_v13 = vmul.f32 %v4355_v37, %v8777_v17  ;;  %v9015_v0 = vld [vmem:[%s8683_s4 + $0x168] sm:$0xff] }
  0x90   : > { %v1251_v50 = vcombine.high %v1249_v10, %v1249_v10  ;;  %v9007_v12 = vmul.f32 %v4351_v62, %v8764_v14  ;;  %v9010_v52 = vmul.f32 %v4359_v55, %v8774_v16  ;;  %v4375_v58 = vrot.slane %v1230_v26, %v8866_v51 }
  0x91   : > { %12535 = vst [vmem:[#allocation16_spill] sm:$0xff] %v9000_v13  ;;  %v4371_v15 = vrot.slane %v1216_v6, %v8866_v51  ;;  %v9021_v37 = vmul.f32 %v4363_v8, %v8787_v19  ;;  %v4379_v59 = vrot.slane %v1232_v42, %v8866_v51  ;;  %v1258_v13 = vrot.slane %v1242_v25, %v8829_v33 }
  0x92   : > { %12536 = vst [vmem:[#allocation17_spill] sm:$0xff] %v9010_v52  ;;  %v1299_v14 = vcombine.high %v1291_v11, %v1291_v11  ;;  %v9028_v62 = vmul.f32 %v4367_v9, %v8784_v18  ;;  %v4383_v6 = vrot.slane %v1234_v30, %v8866_v51  ;;  %v1272_v55 = vrot.slane %v1250_v43, %v8829_v33  ;;  %v9047_v9 = vld [vmem:[%s8683_s4 + $0x178] sm:$0xff]  ;;  %v9050_v30 = vld [vmem:[%s8683_s4 + $0x170] sm:$0xff] }
  0x93   : > { %546 = vrot.lane.b32.xlu1 %v8774_v16, %s8449_s22  ;;  %544 = vrot.lane.b32.xlu0 %v8777_v17, %s8449_s22  ;;  %v9018_v17 = vld [vmem:[%s8683_s4 + $0x160] sm:$0xff]  ;;  %12537 = vst [vmem:[#allocation18_spill] sm:$0xff] %v9021_v37  ;;  %v9025_v16 = vld [vmem:[#allocation5 + $0x28] sm:$0xff]  ;;  %v1284_v26 = vcombine.high %v1028_v63, %v1028_v63  ;;  %v1280_v52 = vcombine.high %v1258_v13, %v1258_v13 }
  0x94   : > { %12538 = vst [vmem:[#allocation19_spill] sm:$0xff] %v9028_v62  ;;  %v1265_v8 = vrot.slane %v1249_v10, %v8829_v33  ;;  %v9039_v25 = vmul.f32 %v4375_v58, %v8794_v20  ;;  %v1282_v42 = vcombine.high %v1272_v55, %v1272_v55  ;;  %v1340_v63 = vrot.slane %v9025_v16, %v8829_v33 }
  0x95   : > { %v9053_v10 = vmul.f32 %v4379_v59, %v8807_v23  ;;  %v4387_v58 = vrot.slane %v1258_v13, %v8866_v51 }
  0x96   : > { %12539 = vst [vmem:[#allocation20_spill] sm:$0xff] %v9039_v25  ;;  %v9061_v25 = vmul.f32 %v4383_v6, %v8804_v22  ;;  %v4403_v59 = vrot.slane %v1265_v8, %v8866_v51 }
  0x97   : > { %550 = vrot.lane.b32.xlu1 %v8784_v18, %s8449_s22  ;;  %548 = vrot.lane.b32.xlu0 %v8787_v19, %s8449_s22  ;;  %v1279_v19 = vrot.slane %v1251_v50, %v8829_v33  ;;  %v9042_v18 = vmul.f32 %v4371_v15, %v8797_v21  ;;  %12541 = vst [vmem:[#allocation22_spill] sm:$0xff] %v9053_v10 }
  0x98   : > { %v1281_v50 = vcombine.high %v1265_v8, %v1265_v8  ;;  %v1307_v15 = vrot.slane %v1291_v11, %v8829_v33  ;;  %12542 = vst [vmem:[#allocation23_spill] sm:$0xff] %v9061_v25 }
  0x99   : > { %12540 = vst [vmem:[#allocation21_spill] sm:$0xff] %v9042_v18  ;;  %v1283_v43 = vcombine.high %v1279_v19, %v1279_v19  ;;  %v1298_v18 = vrot.slane %v1284_v26, %v8829_v33  ;;  %v4407_v13 = vrot.slane %v1279_v19, %v8866_v51  ;;  %v9072_v26 = vld [vmem:[%s8683_s4 + $0x188] sm:$0xff]  ;;  %v9084_v19 = vmul.f32 %v4387_v58, %v8817_v28 }
  0x9a   : > { %v4411_v6 = vrot.slane %v1281_v50, %v8866_v51  ;;  %v1329_v10 = vcombine.high %v1307_v15, %v1307_v15 }
  0x9b   : > { %554 = vrot.lane.b32.xlu1 %v8794_v20, %s8449_s22  ;;  %552 = vrot.lane.b32.xlu0 %v8797_v21, %s8449_s22  ;;  %v1321_v20 = vrot.slane %v1299_v14, %v8829_v33  ;;  %v4391_v21 = vrot.slane %v1272_v55, %v8866_v51  ;;  %v4399_v14 = vrot.slane %v1282_v42, %v8866_v51 }
  0x9c   : > { %v1348_v55 = vcombine.high %v1340_v63, %v1340_v63  ;;  %v4419_v42 = vrot.slane %v1307_v15, %v8866_v51  ;;  %v1300_v37 = vcombine.high %v1298_v18, %v1298_v18  ;;  %v1314_v50 = vrot.slane %v1298_v18, %v8829_v33  ;;  %v9110_v18 = vld [vmem:[%s8683_s4 + $0x190] sm:$0xff] }
  0x9d   : > { %v1331_v11 = vcombine.high %v1321_v20, %v1321_v20  ;;  %v4423_v8 = vrot.slane %v1321_v20, %v8866_v51  ;;  %v9081_v25 = vmul.f32 %v4391_v21, %v8814_v27  ;;  %v9102_v20 = vmul.f32 %v4407_v13, %v8836_v35  ;;  %v9107_v21 = vld [vmem:[%s8683_s4 + $0x198] sm:$0xff] }
  0x9e   : > { %v9116_v15 = vmul.f32 %v4411_v6, %v8850_v41  ;;  %v1356_v13 = vrot.slane %v1340_v63, %v8829_v33 }
  0x9f   : > { %558 = vrot.lane.b32.xlu1 %v8804_v22, %s8449_s22  ;;  %556 = vrot.lane.b32.xlu0 %v8807_v23, %s8449_s22  ;;  %v4395_v23 = vrot.slane %v1280_v52, %v8866_v51  ;;  %v9075_v22 = vld [vmem:[%s8683_s4 + $0x180] sm:$0xff]  ;;  %v4415_v52 = vrot.slane %v1283_v43, %v8866_v51  ;;  %v9091_v43 = vmul.f32 %v4403_v59, %v8839_v36 }
  0xa0   : > { %12543 = vst [vmem:[#allocation24_spill] sm:$0xff] %v9116_v15  ;;  %v9123_v59 = vmul.f32 %v4419_v42, %v8863_v47 }
  0xa1   : > { %v9088_v62 = vmul.f32 %v4395_v23, %v8827_v32  ;;  %v9113_v58 = vmul.f32 %v4415_v52, %v8847_v40  ;;  %v1030_v23 = vld [vmem:[#allocation5 + $0x30] sm:$0xff]  ;;  %v9144_v52 = vld [vmem:[%s8683_s4 + $0x1a0] sm:$0xff] }
  0xa2   : > { %12545 = vst [vmem:[#allocation26_spill] sm:$0xff] %v9123_v59 }
  0xa3   : > { %562 = vrot.lane.b32.xlu1 %v8814_v27, %s8449_s22  ;;  %560 = vrot.lane.b32.xlu0 %v8817_v28, %s8449_s22  ;;  %v2656_v27 = vld [vmem:[#allocation7] sm:$0xff]  ;;  %v9099_v28 = vmul.f32 %v4399_v14, %v8824_v31  ;;  %v1328_v14 = vrot.slane %v1300_v37, %v8829_v33 }
  0xa4   : > { %v2720_v42 = vcombine.high %v2656_v27, %v2656_v27 }
  0xa5   : > { %v1332_v6 = vcombine.high %v1328_v14, %v1328_v14 }
  0xa7   : > { %566 = vrot.lane.b32.xlu1 %v8824_v31, %s8449_s22  ;;  %564 = vrot.lane.b32.xlu0 %v8827_v32, %s8449_s22  ;;  %v4431_v32 = vrot.slane %v1331_v11, %v8866_v51  ;;  %v9119_v31 = vmul.f32 %v4423_v8, %v8860_v46  ;;  %v1330_v11 = vcombine.high %v1314_v50, %v1314_v50 }
  0xa8   : > { %v1378_v8 = vcombine.high %v1356_v13, %v1356_v13 }
  0xa9   : > { %12544 = vst [vmem:[#allocation25_spill] sm:$0xff] %v9119_v31  ;;  %v4443_v59 = vrot.slane %v1330_v11, %v8866_v51 }
  0xab   : > { %570 = vrot.lane.b32.xlu1 %v8836_v35, %s8449_s22  ;;  %568 = vrot.lane.b32.xlu0 %v8839_v36, %s8449_s22  ;;  %v1370_v36 = vrot.slane %v1348_v55, %v8829_v33  ;;  %v4427_v35 = vrot.slane %v1329_v10, %v8866_v51  ;;  %v1389_v10 = vrot.slane %v1030_v23, %v8829_v33  ;;  %v9141_v55 = vld [vmem:[%s8683_s4 + $0x1a8] sm:$0xff] }
  0xad   : > { %v4455_v37 = vrot.slane %v1370_v36, %v8866_v51  ;;  %v1380_v63 = vcombine.high %v1370_v36, %v1370_v36 }
  0xaf   : > { %574 = vrot.lane.b32.xlu1 %v8847_v40, %s8449_s22  ;;  %572 = vrot.lane.b32.xlu0 %v8850_v41, %s8449_s22  ;;  %v2727_v40 = vrot.slane %v2656_v27, %v8829_v33  ;;  %v4435_v41 = vrot.slane %v1314_v50, %v8866_v51  ;;  %v4451_v50 = vrot.slane %v1356_v13, %v8866_v51 }
  0xb0   : > { %v4463_v27 = vrot.slane %v1380_v63, %v8866_v51  ;;  %v1382_v13 = vcombine.high %v1030_v23, %v1030_v23  ;;  %v9171_v11 = vmul.f32 %v4455_v37, %v8953_v44 }
  0xb1   : > { %v2735_v36 = vcombine.high %v2727_v40, %v2727_v40  ;;  %v9179_v23 = vmul.f32 %v4451_v50, %v8956_v45 }
  0xb2   : > { %12549 = vst [vmem:[#allocation30_spill] sm:$0xff] %v9171_v11 }
  0xb3   : > { %578 = vrot.lane.b32.xlu1 %v8860_v46, %s8449_s22  ;;  %576 = vrot.lane.b32.xlu0 %v8863_v47, %s8449_s22  ;;  %v1333_v46 = vcombine.high %v9025_v16, %v9025_v16  ;;  %v9136_v47 = vmul.f32 %v4431_v32, %v8875_v56  ;;  %v9147_v16 = vmul.f32 %v4427_v35, %v8878_v57 }
  0xb4   : > { %v2743_v32 = vrot.slane %v2727_v40, %v8829_v33  ;;  %v1397_v35 = vcombine.high %v1389_v10, %v1389_v10  ;;  %v9164_v40 = vld [vmem:[%s8683_s4 + $0x1b8] sm:$0xff]  ;;  %12551 = vst [vmem:[#allocation32_spill] sm:$0xff] %v9179_v23 }
  0xb5   : > { %12546 = vst [vmem:[#allocation27_spill] sm:$0xff] %v9136_v47  ;;  %12547 = vst [vmem:[#allocation28_spill] sm:$0xff] %v9147_v16  ;;  %v9153_v47 = vmul.f32 %v4435_v41, %v8897_v39  ;;  %v4447_v41 = vrot.slane %v1332_v6, %v8866_v51  ;;  %v9184_v6 = vrot.slane %v2735_v36, %v8829_v33  ;;  %v9239_v23 = vld [vmem:[%s8683_s4 + $0x1d8] sm:$0xff] }
  0xb6   : > { %v2765_v16 = vcombine.high %v2743_v32, %v2743_v32 }
  0xb7   : > { %582 = vrot.lane.b32.xlu1 %v8875_v56, %s8449_s22  ;;  %580 = vrot.lane.b32.xlu0 %v8878_v57, %s8449_s22  ;;  %v4439_v56 = vrot.slane %v1328_v14, %v8866_v51  ;;  %12548 = vst [vmem:[#allocation29_spill] sm:$0xff] %v9153_v47  ;;  %v1347_v57 = vrot.slane %v1333_v46, %v8829_v33 }
  0xb8   : > { %v1405_v14 = vrot.slane %v1389_v10, %v8829_v33  ;;  %v4459_v46 = vrot.slane %v1378_v8, %v8866_v51  ;;  %v2734_v47 = vrot.slane %v2720_v42, %v8829_v33  ;;  %v9181_v10 = vld [vmem:[#allocation5 + $0x38] sm:$0xff]  ;;  %v9209_v50 = vmul.f32 %v4447_v41, %v8922_v61  ;;  %v9224_v41 = vld [vmem:[#allocation7 + $0x8] sm:$0xff] }
  0xb9   : > { %v9176_v63 = vmul.f32 %v4439_v56, %v8894_v38  ;;  %v1349_v37 = vcombine.high %v1347_v57, %v1347_v57  ;;  %v1363_v8 = vrot.slane %v1347_v57, %v8829_v33  ;;  %v9200_v56 = vrot.slane %v1382_v13, %v8829_v33 }
  0xba   : > { %v4483_v42 = vrot.slane %v1405_v14, %v8866_v51  ;;  %12554 = vst [vmem:[#allocation35_spill] sm:$0xff] %v9209_v50  ;;  %v9212_v36 = vmul.f32 %v4459_v46, %v8985_v60  ;;  %v2736_v57 = vcombine.high %v2734_v47, %v2734_v47  ;;  %v2767_v13 = vcombine.high %v9184_v6, %v9184_v6 }
  0xbb   : > { %586 = vrot.lane.b32.xlu1 %v8894_v38, %s8449_s22  ;;  %584 = vrot.lane.b32.xlu0 %v8897_v39, %s8449_s22  ;;  %v9167_v39 = vld [vmem:[%s8683_s4 + $0x1b0] sm:$0xff]  ;;  %12550 = vst [vmem:[#allocation31_spill] sm:$0xff] %v9176_v63  ;;  %v9195_v38 = vmul.f32 %v4463_v27, %v8982_v29  ;;  %v5835_v27 = vrot.slane %v2765_v16, %v8866_v51 }
  0xbc   : > { %12555 = vst [vmem:[#allocation36_spill] sm:$0xff] %v9212_v36  ;;  %v4467_v46 = vrot.slane %v1363_v8, %v8866_v51  ;;  %v1427_v36 = vcombine.high %v1405_v14, %v1405_v14  ;;  %v1379_v16 = vcombine.high %v1363_v8, %v1363_v8  ;;  %v2764_v50 = vrot.slane %v2736_v57, %v8829_v33 }
  0xbd   : > { %12553 = vst [vmem:[#allocation34_spill] sm:$0xff] %v9195_v38  ;;  %v9234_v38 = vmul.f32 %v4483_v42, %v9075_v22  ;;  %v2750_v8 = vrot.slane %v2734_v47, %v8829_v33  ;;  %v5839_v63 = vrot.slane %v2767_v13, %v8866_v51  ;;  %v5831_v31 = vrot.slane %v9184_v6, %v8866_v51 }
  0xbe   : > { %v9253_v15 = vmul.f32 %v4467_v46, %v9018_v17  ;;  %v4491_v57 = vrot.slane %v1427_v36, %v8866_v51  ;;  %v5847_v36 = vrot.slane %v2764_v50, %v8866_v51 }
  0xbf   : > { %590 = vrot.lane.b32.xlu1 %v8922_v61, %s8449_s22  ;;  %588 = vrot.lane.b32.xlu0 %v8925_v3, %s8449_s22  ;;  %12556 = vst [vmem:[#allocation37_spill] sm:$0xff] %v9234_v38  ;;  %v1398_v61 = vcombine.high %v9200_v56, %v9200_v56  ;;  %v5843_v46 = vrot.slane %v2750_v8, %v8866_v51 }
  0xc0   : > { %12557 = vst [vmem:[#allocation38_spill] sm:$0xff] %v9253_v15  ;;  %v2766_v15 = vcombine.high %v2750_v8, %v2750_v8 }
  0xc3   : > { %594 = vrot.lane.b32.xlu1 %v8953_v44, %s8449_s22  ;;  %592 = vrot.lane.b32.xlu0 %v8956_v45, %s8449_s22  ;;  %v9187_v44 = vmul.f32 %v4443_v59, %v8925_v3  ;;  %v1419_v45 = vrot.slane %v1397_v35, %v8829_v33  ;;  %v9203_v3 = vld [vmem:[%s8683_s4 + $0x1c8] sm:$0xff]  ;;  %v9206_v59 = vld [vmem:[%s8683_s4 + $0x1c0] sm:$0xff]  ;;  %v5827_v35 = vrot.slane %v2743_v32, %v8866_v51 }
  0xc5   : > { %12552 = vst [vmem:[#allocation33_spill] sm:$0xff] %v9187_v44  ;;  %v4487_v32 = vrot.slane %v1419_v45, %v8866_v51  ;;  %v1429_v14 = vcombine.high %v1419_v45, %v1419_v45 }
  0xc7   : > { %598 = vrot.lane.b32.xlu1 %v8982_v29, %s8449_s22  ;;  %596 = vrot.lane.b32.xlu0 %v8985_v60, %s8449_s22  ;;  %v9216_v29 = vrot.slane %v9181_v10, %v8829_v33  ;;  %v1377_v60 = vrot.slane %v1349_v37, %v8829_v33  ;;  %v9242_v37 = vld [vmem:[%s8683_s4 + $0x1d0] sm:$0xff]  ;;  %v4495_v8 = vrot.slane %v1429_v14, %v8866_v51 }
  0xc9   : > { %v4471_v45 = vrot.slane %v1377_v60, %v8866_v51  ;;  %v1381_v47 = vcombine.high %v1377_v60, %v1377_v60  ;;  %v2769_v60 = vcombine.high %v9224_v41, %v9224_v41 }
  0xcb   : > { %602 = vrot.lane.b32.xlu1 %v9015_v0, %s8449_s22  ;;  %600 = vrot.lane.b32.xlu0 %v9018_v17, %s8449_s22  ;;  %v9267_v17 = vld [vmem:[%s8683_s4 + $0x1e0] sm:$0xff]  ;;  %v4479_v14 = vrot.slane %v1381_v47, %v8866_v51 }
  0xcf   : > { %606 = vrot.lane.b32.xlu1 %v9047_v9, %s8449_s22  ;;  %604 = vrot.lane.b32.xlu0 %v9050_v30, %s8449_s22 }
  0xd3   : > { %610 = vrot.lane.b32.xlu1 %v9072_v26, %s8449_s22  ;;  %608 = vrot.lane.b32.xlu0 %v9075_v22, %s8449_s22  ;;  %v2776_v22 = vrot.slane %v9224_v41, %v8829_v33  ;;  %v9284_v41 = vmul.f32 %v4491_v57, %v9110_v18 }
  0xd7   : > { %614 = vrot.lane.b32.xlu1 %v9107_v21, %s8449_s22  ;;  %612 = vrot.lane.b32.xlu0 %v9110_v18, %s8449_s22  ;;  %v9300_v18 = vld [vmem:[%s8683_s4 + $0x1f0] sm:$0xff] }
  0xdb   : > { %618 = vrot.lane.b32.xlu1 %v9141_v55, %s8449_s22  ;;  %616 = vrot.lane.b32.xlu0 %v9144_v52, %s8449_s22 }
  0xdf   : > { %622 = vrot.lane.b32.xlu1 %v9164_v40, %s8449_s22  ;;  %620 = vrot.lane.b32.xlu0 %v9167_v39, %s8449_s22 }
  0xe3   : > { %626 = vrot.lane.b32.xlu1 %v9203_v3, %s8449_s22  ;;  %624 = vrot.lane.b32.xlu0 %v9206_v59, %s8449_s22 }
  0xe5   : > { %v517_v11 = vpop.permute.xlu1 %516  ;;  %v513_v44 = vpop.permute.xlu0 %512 }
  0xe6   : > { %v7106_v42 = vmul.f32 %v5835_v27, %v517_v11  ;;  %v7104_v38 = vmul.f32 %v5827_v35, %v513_v44  ;;  %v4475_v11 = vrot.slane %v1379_v16, %v8866_v51  ;;  %v9264_v27 = vld [vmem:[%s8683_s4 + $0x1e8] sm:$0xff]  ;;  %v2784_v16 = vcombine.high %v2776_v22, %v2776_v22 }
  0xe7   : > { %630 = vrot.lane.b32.xlu1 %v9239_v23, %s8449_s22  ;;  %628 = vrot.lane.b32.xlu0 %v9242_v37, %s8449_s22 }
  0xe8   : > { %v7362_v44 = vadd.f32 %v7106_v42, %v8902_v48  ;;  %v7360_v6 = vadd.f32 %v7104_v38, %v8905_v49  ;;  %v2768_v38 = vcombine.high %v2764_v50, %v2764_v50  ;;  %v9280_v42 = vmul.f32 %v4487_v32, %v9072_v26  ;;  %v9297_v32 = vld [vmem:[%s8683_s4 + $0x1f8] sm:$0xff] }
  0xe9   : > { %v519_v35 = vpop.permute.xlu1 %518  ;;  %v515_v13 = vpop.permute.xlu0 %514  ;;  %v9311_v47 = vmul.f32 %v4475_v11, %v9050_v30  ;;  %v9328_v11 = vld [vmem:[%s8683_s4 + $0x208] sm:$0xff] }
  0xea   : > { %7618 = vst [vmem:[%s9275_s20 + $0x10] sm:$0xff] %v7362_v44  ;;  %7616 = vst [vmem:[%s9275_s20] sm:$0xff] %v7360_v6  ;;  %v7107_v48 = vmul.f32 %v5839_v63, %v519_v35  ;;  %v7105_v49 = vmul.f32 %v5831_v31, %v515_v13  ;;  %v9291_v31 = vmul.f32 %v4471_v45, %v9015_v0 }
  0xeb   : > { %634 = vrot.lane.b32.xlu1 %v9264_v27, %s8449_s22  ;;  %632 = vrot.lane.b32.xlu0 %v9267_v17, %s8449_s22  ;;  %v1426_v63 = vrot.slane %v1398_v61, %v8829_v33  ;;  %v5851_v6 = vrot.slane %v2766_v15, %v8866_v51  ;;  %v2792_v35 = vrot.slane %v2776_v22, %v8829_v33 }
  0xec   : > { %v7363_v26 = vadd.f32 %v7107_v48, %v8928_v5  ;;  %v7361_v50 = vadd.f32 %v7105_v49, %v8909_v53  ;;  %v2783_v0 = vrot.slane %v2769_v60, %v8829_v33  ;;  %v5855_v61 = vrot.slane %v2768_v38, %v8866_v51 }
  0xed   : > { %v523_v57 = vpop.permute.xlu1 %522  ;;  %v521_v44 = vpop.permute.xlu0 %520  ;;  %v2806_v45 = vrot.slane %v2784_v16, %v8829_v33  ;;  %v9314_v13 = vmul.f32 %v4495_v8, %v9107_v21  ;;  %v9318_v15 = vrot.slane %v9200_v56, %v8829_v33  ;;  %v4503_v22 = vrot.slane %v1426_v63, %v8866_v51 }
  0xee   : > { %7619 = vst [vmem:[%s9275_s20 + $0x18] sm:$0xff] %v7363_v26  ;;  %7617 = vst [vmem:[%s9275_s20 + $0x8] sm:$0xff] %v7361_v50  ;;  %v7109_v5 = vmul.f32 %v5847_v36, %v523_v57  ;;  %v7108_v53 = vmul.f32 %v5843_v46, %v521_v44  ;;  %v1430_v36 = vcombine.high %v1426_v63, %v1426_v63  ;;  %v9331_v46 = vld [vmem:[%s8683_s4 + $0x200] sm:$0xff] }
  0xef   : > { %638 = vrot.lane.b32.xlu1 %v9297_v32, %s8449_s22  ;;  %636 = vrot.lane.b32.xlu0 %v9300_v18, %s8449_s22  ;;  %v9334_v56 = vmul.f32 %v4479_v14, %v9047_v9  ;;  %v5859_v49 = vrot.slane %v2792_v35, %v8866_v51  ;;  %v2814_v38 = vcombine.high %v2792_v35, %v2792_v35  ;;  %v2658_v14 = vld [vmem:[#allocation7 + $0x10] sm:$0xff] }
  0xf0   : > { %v7365_v30 = vadd.f32 %v7109_v5, %v8936_v24  ;;  %v7364_v21 = vadd.f32 %v7108_v53, %v8912_v54  ;;  %v2785_v16 = vcombine.high %v2783_v0, %v2783_v0  ;;  %v5863_v54 = vrot.slane %v2806_v45, %v8866_v51  ;;  %v12558_v35 = vld [vmem:[#allocation14_spill] sm:$0xff] }
  0xf1   : > { %v527_v60 = vpop.permute.xlu1 %526  ;;  %v525_v48 = vpop.permute.xlu0 %524  ;;  %v2816_v63 = vcombine.high %v2806_v45, %v2806_v45  ;;  %v4499_v26 = vrot.slane %v9318_v15, %v8866_v51  ;;  %v1446_v9 = vcombine.high %v9216_v29, %v9216_v29  ;;  %v9346_v50 = vrot.slane %v9216_v29, %v8829_v33  ;;  %v9359_v29 = vld [vmem:[%s8683_s4 + $0x218] sm:$0xff]  ;;  %v9362_v53 = vld [vmem:[%s8683_s4 + $0x210] sm:$0xff] }
  0xf2   : > { %7621 = vst [vmem:[%s9275_s20 + $0x28] sm:$0xff] %v7365_v30  ;;  %7620 = vst [vmem:[%s9275_s20 + $0x20] sm:$0xff] %v7364_v21  ;;  %v7111_v24 = vmul.f32 %v5855_v61, %v527_v60  ;;  %v7110_v8 = vmul.f32 %v5851_v6, %v525_v48  ;;  %v9353_v57 = vmul.f32 %v4503_v22, %v9141_v55 }
  0xf3   : > { %642 = vrot.lane.b32.xlu1 %v9328_v11, %s8449_s22  ;;  %640 = vrot.lane.b32.xlu0 %v9331_v46, %s8449_s22  ;;  %v4511_v44 = vrot.slane %v1430_v36, %v8866_v51  ;;  %v1428_v61 = vcombine.high %v9318_v15, %v9318_v15  ;;  %v5867_v21 = vrot.slane %v2814_v38, %v8866_v51 }
  0xf4   : > { %v7367_v6 = vadd.f32 %v7111_v24, %v8959_v7  ;;  %v7366_v5 = vadd.f32 %v7110_v8, %v12558_v35  ;;  %v2813_v55 = vrot.slane %v2785_v16, %v8829_v33  ;;  %v2799_v22 = vrot.slane %v2783_v0, %v8829_v33  ;;  %v12561_v16 = vld [vmem:[#allocation12_spill] sm:$0xff] }
  0xf5   : > { %v531_v45 = vpop.permute.xlu1 %530  ;;  %v529_v30 = vpop.permute.xlu0 %528  ;;  %v5871_v60 = vrot.slane %v2816_v63, %v8866_v51  ;;  %v2825_v48 = vrot.slane %v2658_v14, %v8829_v33  ;;  %v9374_v15 = vmul.f32 %v4499_v26, %v9144_v52  ;;  %v1468_v24 = vrot.slane %v1446_v9, %v8829_v33  ;;  %v9393_v26 = vld [vmem:[%s8683_s4 + $0x228] sm:$0xff]  ;;  %v9396_v9 = vld [vmem:[%s8683_s4 + $0x220] sm:$0xff] }
  0xf6   : > { %7623 = vst [vmem:[%s9275_s20 + $0x38] sm:$0xff] %v7367_v6  ;;  %7622 = vst [vmem:[%s9275_s20 + $0x30] sm:$0xff] %v7366_v5  ;;  %v7113_v7 = vmul.f32 %v5863_v54, %v531_v45  ;;  %v7112_v36 = vmul.f32 %v5859_v49, %v529_v30  ;;  %v4515_v38 = vrot.slane %v9346_v50, %v8866_v51  ;;  %v12562_v54 = vld [vmem:[#allocation13_spill] sm:$0xff] }
  0xf7   : > { %646 = vrot.lane.b32.xlu1 %v9359_v29, %s8449_s22  ;;  %644 = vrot.lane.b32.xlu0 %v9362_v53, %s8449_s22  ;;  %v9384_v0 = vmul.f32 %v4511_v44, %v9164_v40  ;;  %v12560_v52 = vcombine.high %v9181_v10, %v9181_v10  ;;  %v5879_v5 = vrot.slane %v2813_v55, %v8866_v51 }
  0xf8   : > { %v7369_v8 = vadd.f32 %v7113_v7, %v12561_v16  ;;  %v7368_v63 = vadd.f32 %v7112_v36, %v12562_v54  ;;  %v5875_v40 = vrot.slane %v2799_v22, %v8866_v51  ;;  %v2815_v44 = vcombine.high %v2799_v22, %v2799_v22 }
  0xf9   : > { %12559 = vst [vmem:[#allocation14_spill] sm:$0xff] %v9384_v0  ;;  %v1445_v49 = vrot.slane %v12560_v52, %v8829_v33  ;;  %v535_v6 = vpop.permute.xlu1 %534  ;;  %v533_v35 = vpop.permute.xlu0 %532  ;;  %v2818_v45 = vcombine.high %v2658_v14, %v2658_v14  ;;  %v2817_v7 = vcombine.high %v2813_v55, %v2813_v55  ;;  %v2833_v36 = vcombine.high %v2825_v48, %v2825_v48  ;;  %v12564_v55 = vld [vmem:[#allocation15_spill] sm:$0xff] }
  0xfa   : > { %7625 = vst [vmem:[%s9275_s20 + $0x48] sm:$0xff] %v7369_v8  ;;  %7624 = vst [vmem:[%s9275_s20 + $0x40] sm:$0xff] %v7368_v63  ;;  %v7115_v10 = vmul.f32 %v5871_v60, %v535_v6  ;;  %v7114_v30 = vmul.f32 %v5867_v21, %v533_v35  ;;  %v4507_v52 = vrot.slane %v1428_v61, %v8866_v51  ;;  %v9414_v61 = vld [vmem:[%s8683_s4 + $0x238] sm:$0xff]  ;;  %v9417_v8 = vld [vmem:[%s8683_s4 + $0x230] sm:$0xff] }
  0xfb   : > { %v4519_v16 = vrot.slane %v1468_v24, %v8866_v51  ;;  %v1478_v54 = vcombine.high %v1468_v24, %v1468_v24  ;;  %650 = vrot.lane.b32.xlu1 %v9393_v26, %s8449_s22  ;;  %648 = vrot.lane.b32.xlu0 %v9396_v9, %s8449_s22  ;;  %v9409_v14 = vmul.f32 %v4515_v38, %v9206_v59 }
  0xfc   : > { %v1447_v22 = vcombine.high %v1445_v49, %v1445_v49  ;;  %v7371_v21 = vadd.f32 %v7115_v10, %v8962_v34  ;;  %v7370_v60 = vadd.f32 %v7114_v30, %v12564_v55  ;;  %v1476_v24 = vcombine.high %v9346_v50, %v9346_v50 }
  0xfd   : > { %12563 = vst [vmem:[#allocation12_spill] sm:$0xff] %v9409_v14  ;;  %v539_v63 = vpop.permute.xlu1 %538  ;;  %v537_v6 = vpop.permute.xlu0 %536  ;;  %v5883_v35 = vrot.slane %v2815_v44, %v8866_v51  ;;  %v2841_v0 = vrot.slane %v2825_v48, %v8829_v33  ;;  %v2832_v59 = vrot.slane %v2818_v45, %v8829_v33  ;;  %v5887_v10 = vrot.slane %v2817_v7, %v8866_v51  ;;  %v9448_v45 = vld [vmem:[%s8683_s4 + $0x248] sm:$0xff]  ;;  %v9451_v7 = vld [vmem:[%s8683_s4 + $0x240] sm:$0xff] }
  0xfe   : > { %7627 = vst [vmem:[%s9275_s20 + $0x58] sm:$0xff] %v7371_v21  ;;  %7626 = vst [vmem:[%s9275_s20 + $0x50] sm:$0xff] %v7370_v60  ;;  %v7117_v34 = vmul.f32 %v5879_v5, %v539_v63  ;;  %v7116_v38 = vmul.f32 %v5875_v40, %v537_v6  ;;  %v2855_v30 = vrot.slane %v2833_v36, %v8829_v33 }
  0xff   : > { %v9429_v50 = vmul.f32 %v4507_v52, %v9167_v39  ;;  %v9432_v55 = vmul.f32 %v4519_v16, %v9203_v3  ;;  %v4527_v48 = vrot.slane %v1478_v54, %v8866_v51  ;;  %654 = vrot.lane.b32.xlu1 %v9414_v61, %s8449_s22  ;;  %652 = vrot.lane.b32.xlu0 %v9417_v8, %s8449_s22  ;;  %v9443_v39 = vld [vmem:[#allocation5 + $0x40] sm:$0xff] }
 0x100   : > { %v1475_v5 = vrot.slane %v1447_v22, %v8829_v33  ;;  %v9441_v40 = vrot.slane %v1445_v49, %v8829_v33  ;;  %v7373_v3 = vadd.f32 %v7117_v34, %v8993_v4  ;;  %v7372_v44 = vadd.f32 %v7116_v38, %v8988_v2 }
 0x101   : > { %v4523_v36 = vrot.slane %v1476_v24, %v8866_v51  ;;  %v543_v52 = vpop.permute.xlu1 %542  ;;  %v541_v16 = vpop.permute.xlu0 %540  ;;  %v5891_v54 = vrot.slane %v2841_v0, %v8866_v51  ;;  %v2863_v22 = vcombine.high %v2841_v0, %v2841_v0  ;;  %v2834_v21 = vcombine.high %v2832_v59, %v2832_v59  ;;  %v2659_v0 = vld [vmem:[#allocation7 + $0x18] sm:$0xff] }
 0x102   : > { %7629 = vst [vmem:[%s9275_s20 + $0x68] sm:$0xff] %v7373_v3  ;;  %7628 = vst [vmem:[%s9275_s20 + $0x60] sm:$0xff] %v7372_v44  ;;  %v7119_v49 = vmul.f32 %v5887_v10, %v543_v52  ;;  %v7118_v4 = vmul.f32 %v5883_v35, %v541_v16  ;;  %v5895_v2 = vrot.slane %v2855_v30, %v8866_v51  ;;  %v9473_v10 = vld [vmem:[%s8683_s4 + $0x258] sm:$0xff] }
 0x103   : > { %v2865_v60 = vcombine.high %v2855_v30, %v2855_v30  ;;  %v9459_v63 = vmul.f32 %v4527_v48, %v9239_v23  ;;  %v1479_v6 = vcombine.high %v1475_v5, %v1475_v5  ;;  %v1487_v24 = vrot.slane %v9443_v39, %v8829_v33  ;;  %658 = vrot.lane.b32.xlu1 %v9448_v45, %s8449_s22  ;;  %v9476_v30 = vld [vmem:[%s8683_s4 + $0x250] sm:$0xff] }
 0x104   : > { %656 = vrot.lane.b32.xlu0 %v9451_v7, %s8449_s22  ;;  %v4535_v35 = vrot.slane %v1475_v5, %v8866_v51  ;;  %v4531_v34 = vrot.slane %v9441_v40, %v8866_v51  ;;  %v7375_v23 = vadd.f32 %v7119_v49, %v9007_v12  ;;  %v7374_v38 = vadd.f32 %v7118_v4, %v8997_v1 }
 0x105   : > { %12565 = vst [vmem:[#allocation13_spill] sm:$0xff] %v9459_v63  ;;  %v9479_v48 = vmul.f32 %v4523_v36, %v9242_v37  ;;  %v547_v3 = vpop.permute.xlu1 %546  ;;  %v545_v44 = vpop.permute.xlu0 %544  ;;  %v5899_v52 = vrot.slane %v2863_v22, %v8866_v51  ;;  %v2862_v5 = vrot.slane %v2834_v21, %v8829_v33  ;;  %v2848_v16 = vrot.slane %v2832_v59, %v8829_v33  ;;  %v12569_v21 = vld [vmem:[#allocation17_spill] sm:$0xff] }
 0x106   : > { %7631 = vst [vmem:[%s9275_s20 + $0x78] sm:$0xff] %v7375_v23  ;;  %7630 = vst [vmem:[%s9275_s20 + $0x70] sm:$0xff] %v7374_v38  ;;  %v7121_v1 = vmul.f32 %v5895_v2, %v547_v3  ;;  %v7120_v12 = vmul.f32 %v5891_v54, %v545_v44  ;;  %v5903_v49 = vrot.slane %v2865_v60, %v8866_v51  ;;  %v12570_v60 = vld [vmem:[#allocation16_spill] sm:$0xff] }
 0x107   : > { %12566 = vst [vmem:[#allocation15_spill] sm:$0xff] %v9479_v48  ;;  %v2874_v4 = vrot.slane %v2659_v0, %v8829_v33  ;;  %v4543_v37 = vrot.slane %v1479_v6, %v8866_v51  ;;  %v1477_v36 = vcombine.high %v9441_v40, %v9441_v40  ;;  %v1495_v22 = vcombine.high %v1487_v24, %v1487_v24  ;;  %v9504_v40 = vld [vmem:[%s8683_s4 + $0x268] sm:$0xff]  ;;  %v9507_v23 = vld [vmem:[%s8683_s4 + $0x260] sm:$0xff] }
 0x108   : > { %662 = vrot.lane.b32.xlu1 %v9473_v10, %s8449_s22  ;;  %660 = vrot.lane.b32.xlu0 %v9476_v30, %s8449_s22  ;;  %v9496_v59 = vmul.f32 %v4535_v35, %v9264_v27  ;;  %v9499_v54 = vmul.f32 %v4531_v34, %v9267_v17  ;;  %v7377_v2 = vadd.f32 %v7121_v1, %v12569_v21 }
 0x109   : > { %v7376_v6 = vadd.f32 %v7120_v12, %v12570_v60  ;;  %v551_v38 = vpop.permute.xlu1 %550  ;;  %v549_v3 = vpop.permute.xlu0 %548  ;;  %v5911_v44 = vrot.slane %v2862_v5, %v8866_v51  ;;  %v5907_v48 = vrot.slane %v2848_v16, %v8866_v51  ;;  %v2864_v63 = vcombine.high %v2848_v16, %v2848_v16  ;;  %v12573_v16 = vld [vmem:[#allocation18_spill] sm:$0xff] }
 0x10a   : > { %12567 = vst [vmem:[#allocation39_spill] sm:$0xff] %v9496_v59  ;;  %12568 = vst [vmem:[#allocation40_spill] sm:$0xff] %v9499_v54  ;;  %v2867_v27 = vcombine.high %v2659_v0, %v2659_v0  ;;  %v7123_v17 = vmul.f32 %v5903_v49, %v551_v38  ;;  %v7122_v35 = vmul.f32 %v5899_v52, %v549_v3 }
 0x10b   : > { %7633 = vst [vmem:[%s9275_s20 + $0x88] sm:$0xff] %v7377_v2  ;;  %7632 = vst [vmem:[%s9275_s20 + $0x80] sm:$0xff] %v7376_v6  ;;  %v2866_v34 = vcombine.high %v2862_v5, %v2862_v5  ;;  %v2882_v1 = vcombine.high %v2874_v4, %v2874_v4  ;;  %v9514_v12 = vmul.f32 %v4543_v37, %v9297_v32  ;;  %v12572_v5 = vld [vmem:[#allocation19_spill] sm:$0xff] }
 0x10c   : > { %v4539_v21 = vrot.slane %v1477_v36, %v8866_v51  ;;  %v1517_v60 = vrot.slane %v1495_v22, %v8829_v33  ;;  %666 = vrot.lane.b32.xlu1 %v9504_v40, %s8449_s22  ;;  %664 = vrot.lane.b32.xlu0 %v9507_v23, %s8449_s22  ;;  %v1503_v0 = vrot.slane %v1487_v24, %v8829_v33  ;;  %v9528_v37 = vld [vmem:[%s8683_s4 + $0x278] sm:$0xff]  ;;  %v9531_v36 = vld [vmem:[%s8683_s4 + $0x270] sm:$0xff] }
 0x10d   : > { %12571 = vst [vmem:[#allocation17_spill] sm:$0xff] %v9514_v12  ;;  %v1480_v52 = vcombine.high %v9443_v39, %v9443_v39  ;;  %v7379_v32 = vadd.f32 %v7123_v17, %v12572_v5  ;;  %v7378_v49 = vadd.f32 %v7122_v35, %v12573_v16  ;;  %v555_v2 = vpop.permute.xlu1 %554  ;;  %v553_v6 = vpop.permute.xlu0 %552  ;;  %v5915_v38 = vrot.slane %v2864_v63, %v8866_v51 }
 0x10e   : > { %v1527_v22 = vcombine.high %v1517_v60, %v1517_v60  ;;  %v2890_v3 = vrot.slane %v2874_v4, %v8829_v33  ;;  %v2881_v24 = vrot.slane %v2867_v27, %v8829_v33  ;;  %v7125_v39 = vmul.f32 %v5911_v44, %v555_v2  ;;  %v9550_v44 = vld [vmem:[#allocation5 + $0x48] sm:$0xff]  ;;  %v12575_v27 = vld [vmem:[#allocation20_spill] sm:$0xff] }
 0x10f   : > { %7635 = vst [vmem:[%s9275_s20 + $0x98] sm:$0xff] %v7379_v32  ;;  %7634 = vst [vmem:[%s9275_s20 + $0x90] sm:$0xff] %v7378_v49  ;;  %v7124_v17 = vmul.f32 %v5907_v48, %v553_v6  ;;  %v5919_v35 = vrot.slane %v2866_v34, %v8866_v51  ;;  %v2904_v5 = vrot.slane %v2882_v1, %v8829_v33  ;;  %v12576_v34 = vld [vmem:[#allocation21_spill] sm:$0xff] }
 0x110   : > { %v9541_v16 = vmul.f32 %v4539_v21, %v9300_v18  ;;  %v4551_v12 = vrot.slane %v1517_v60, %v8866_v51  ;;  %v1525_v63 = vcombine.high %v1503_v0, %v1503_v0  ;;  %670 = vrot.lane.b32.xlu1 %v9528_v37, %s8449_s22  ;;  %668 = vrot.lane.b32.xlu0 %v9531_v36, %s8449_s22  ;;  %v9555_v21 = vld [vmem:[%s8683_s4 + $0x288] sm:$0xff]  ;;  %v9558_v60 = vld [vmem:[%s8683_s4 + $0x280] sm:$0xff] }
 0x111   : > { %v4547_v48 = vrot.slane %v1503_v0, %v8866_v51  ;;  %v1494_v4 = vrot.slane %v1480_v52, %v8829_v33  ;;  %v7381_v18 = vadd.f32 %v7125_v39, %v12575_v27  ;;  %v7380_v1 = vadd.f32 %v7124_v17, %v12576_v34  ;;  %v559_v49 = vpop.permute.xlu1 %558  ;;  %v557_v2 = vpop.permute.xlu0 %556 }
 0x112   : > { %12574 = vst [vmem:[#allocation16_spill] sm:$0xff] %v9541_v16  ;;  %v4559_v32 = vrot.slane %v1527_v22, %v8866_v51  ;;  %v5923_v6 = vrot.slane %v2890_v3, %v8866_v51  ;;  %v2914_v16 = vcombine.high %v2904_v5, %v2904_v5  ;;  %v2883_v0 = vcombine.high %v2881_v24, %v2881_v24 }
 0x113   : > { %7637 = vst [vmem:[%s9275_s20 + $0xa8] sm:$0xff] %v7381_v18  ;;  %7636 = vst [vmem:[%s9275_s20 + $0xa0] sm:$0xff] %v7380_v1  ;;  %v7127_v52 = vmul.f32 %v5919_v35, %v559_v49  ;;  %v7126_v39 = vmul.f32 %v5915_v38, %v557_v2  ;;  %v5927_v17 = vrot.slane %v2904_v5, %v8866_v51  ;;  %v2660_v38 = vld [vmem:[#allocation7 + $0x20] sm:$0xff]  ;;  %v12579_v5 = vld [vmem:[#allocation22_spill] sm:$0xff] }
 0x114   : > { %v2912_v27 = vcombine.high %v2890_v3, %v2890_v3  ;;  %v9566_v34 = vmul.f32 %v4551_v12, %v9328_v11  ;;  %v4555_v22 = vrot.slane %v1525_v63, %v8866_v51  ;;  %v1536_v54 = vrot.slane %v9550_v44, %v8829_v33  ;;  %674 = vrot.lane.b32.xlu1 %v9555_v21, %s8449_s22  ;;  %v12578_v11 = vld [vmem:[#allocation23_spill] sm:$0xff]  ;;  %v9584_v1 = vld [vmem:[%s8683_s4 + $0x290] sm:$0xff] }
 0x115   : > { %672 = vrot.lane.b32.xlu0 %v9558_v60, %s8449_s22  ;;  %v9576_v35 = vmul.f32 %v4547_v48, %v9331_v46  ;;  %v1496_v3 = vcombine.high %v1494_v4, %v1494_v4  ;;  %v7383_v12 = vadd.f32 %v7127_v52, %v12578_v11  ;;  %v7382_v63 = vadd.f32 %v7126_v39, %v12579_v5  ;;  %v9581_v18 = vld [vmem:[%s8683_s4 + $0x298] sm:$0xff]  ;;  %v563_v2 = vpop.permute.xlu1 %562 }
 0x116   : > { %12577 = vst [vmem:[#allocation19_spill] sm:$0xff] %v9566_v34  ;;  %v9587_v49 = vmul.f32 %v4559_v32, %v9359_v29  ;;  %v561_v34 = vpop.permute.xlu0 %560  ;;  %v5935_v59 = vrot.slane %v2914_v16, %v8866_v51  ;;  %v2911_v14 = vrot.slane %v2883_v0, %v8829_v33  ;;  %v2897_v46 = vrot.slane %v2881_v24, %v8829_v33 }
 0x117   : > { %7639 = vst [vmem:[%s9275_s20 + $0xb8] sm:$0xff] %v7383_v12  ;;  %7638 = vst [vmem:[%s9275_s20 + $0xb0] sm:$0xff] %v7382_v63  ;;  %v7129_v48 = vmul.f32 %v5927_v17, %v563_v2  ;;  %v7128_v52 = vmul.f32 %v5923_v6, %v561_v34  ;;  %v5931_v39 = vrot.slane %v2912_v27, %v8866_v51  ;;  %v9611_v17 = vld [vmem:[%s8683_s4 + $0x2a8] sm:$0xff] }
 0x118   : > { %12580 = vst [vmem:[#allocation18_spill] sm:$0xff] %v9587_v49  ;;  %v2923_v11 = vrot.slane %v2660_v38, %v8829_v33  ;;  %v9597_v29 = vmul.f32 %v4555_v22, %v9362_v53  ;;  %v1510_v32 = vrot.slane %v1494_v4, %v8829_v33  ;;  %v1544_v16 = vcombine.high %v1536_v54, %v1536_v54  ;;  %v9614_v4 = vld [vmem:[%s8683_s4 + $0x2a0] sm:$0xff] }
 0x119   : > { %678 = vrot.lane.b32.xlu1 %v9581_v18, %s8449_s22  ;;  %676 = vrot.lane.b32.xlu0 %v9584_v1, %s8449_s22  ;;  %v1524_v24 = vrot.slane %v1496_v3, %v8829_v33  ;;  %v9606_v6 = vrot.slane %v1536_v54, %v8829_v33  ;;  %v7385_v0 = vadd.f32 %v7129_v48, %v9081_v25  ;;  %v567_v27 = vpop.permute.xlu1 %566 }
 0x11a   : > { %12581 = vst [vmem:[#allocation20_spill] sm:$0xff] %v9597_v29  ;;  %v7384_v53 = vadd.f32 %v7128_v52, %v9084_v19  ;;  %v565_v34 = vpop.permute.xlu0 %564  ;;  %v5943_v22 = vrot.slane %v2911_v14, %v8866_v51  ;;  %v5939_v12 = vrot.slane %v2897_v46, %v8866_v51  ;;  %v2913_v5 = vcombine.high %v2897_v46, %v2897_v46 }
 0x11b   : > { %v2916_v63 = vcombine.high %v2660_v38, %v2660_v38  ;;  %7641 = vst [vmem:[%s9275_s20 + $0xc8] sm:$0xff] %v7385_v0  ;;  %v7131_v54 = vmul.f32 %v5935_v59, %v567_v27  ;;  %v7130_v25 = vmul.f32 %v5931_v39, %v565_v34  ;;  %v2915_v3 = vcombine.high %v2911_v14, %v2911_v14  ;;  %v9631_v39 = vld [vmem:[%s8683_s4 + $0x2b8] sm:$0xff] }
 0x11c   : > { %7640 = vst [vmem:[%s9275_s20 + $0xc0] sm:$0xff] %v7384_v53  ;;  %v2931_v19 = vcombine.high %v2923_v11, %v2923_v11  ;;  %v4563_v2 = vrot.slane %v1510_v32, %v8866_v51  ;;  %v1526_v48 = vcombine.high %v1510_v32, %v1510_v32  ;;  %v1529_v52 = vcombine.high %v9550_v44, %v9550_v44  ;;  %v9634_v32 = vld [vmem:[%s8683_s4 + $0x2b0] sm:$0xff] }
 0x11d   : > { %682 = vrot.lane.b32.xlu1 %v9611_v17, %s8449_s22  ;;  %680 = vrot.lane.b32.xlu0 %v9614_v4, %s8449_s22  ;;  %v4567_v38 = vrot.slane %v1524_v24, %v8866_v51  ;;  %v1528_v59 = vcombine.high %v1524_v24, %v1524_v24  ;;  %v7387_v14 = vadd.f32 %v7131_v54, %v9099_v28  ;;  %v571_v0 = vpop.permute.xlu1 %570 }
 0x11e   : > { %v7386_v46 = vadd.f32 %v7130_v25, %v9088_v62  ;;  %v9637_v44 = vrot.slane %v1544_v16, %v8829_v33  ;;  %v569_v53 = vpop.permute.xlu0 %568  ;;  %v5947_v27 = vrot.slane %v2913_v5, %v8866_v51  ;;  %v2939_v34 = vrot.slane %v2923_v11, %v8829_v33 }
 0x11f   : > { %v2930_v29 = vrot.slane %v2916_v63, %v8829_v33  ;;  %7643 = vst [vmem:[%s9275_s20 + $0xd8] sm:$0xff] %v7387_v14  ;;  %v7133_v62 = vmul.f32 %v5943_v22, %v571_v0  ;;  %v7132_v28 = vmul.f32 %v5939_v12, %v569_v53  ;;  %v5951_v24 = vrot.slane %v2915_v3, %v8866_v51  ;;  %v9663_v63 = vld [vmem:[%s8683_s4 + $0x2c8] sm:$0xff]  ;;  %v9666_v3 = vld [vmem:[%s8683_s4 + $0x2c0] sm:$0xff] }
 0x120   : > { %7642 = vst [vmem:[%s9275_s20 + $0xd0] sm:$0xff] %v7386_v46  ;;  %v2953_v54 = vrot.slane %v2931_v19, %v8829_v33  ;;  %v9647_v16 = vmul.f32 %v4563_v2, %v9396_v9  ;;  %v4571_v25 = vrot.slane %v1526_v48, %v8866_v51  ;;  %v4579_v11 = vrot.slane %v9606_v6, %v8866_v51  ;;  %v9674_v0 = vld [vmem:[#allocation7 + $0x28] sm:$0xff] }
 0x121   : > { %686 = vrot.lane.b32.xlu1 %v9631_v39, %s8449_s22  ;;  %684 = vrot.lane.b32.xlu0 %v9634_v32, %s8449_s22  ;;  %v9657_v22 = vmul.f32 %v4567_v38, %v9393_v26  ;;  %v4575_v12 = vrot.slane %v1528_v59, %v8866_v51  ;;  %v7389_v9 = vadd.f32 %v7133_v62, %v9102_v20  ;;  %v575_v2 = vpop.permute.xlu1 %574 }
 0x122   : > { %12582 = vst [vmem:[#allocation21_spill] sm:$0xff] %v9647_v16  ;;  %v7388_v5 = vadd.f32 %v7132_v28, %v9091_v43  ;;  %v4583_v19 = vrot.slane %v9637_v44, %v8866_v51  ;;  %v573_v48 = vpop.permute.xlu0 %572  ;;  %v5955_v14 = vrot.slane %v2939_v34, %v8866_v51  ;;  %v2961_v46 = vcombine.high %v2939_v34, %v2939_v34  ;;  %v9691_v28 = vld [vmem:[#allocation5 + $0x50] sm:$0xff] }
 0x123   : > { %12583 = vst [vmem:[#allocation23_spill] sm:$0xff] %v9657_v22  ;;  %v2932_v26 = vcombine.high %v2930_v29, %v2930_v29  ;;  %7645 = vst [vmem:[%s9275_s20 + $0xe8] sm:$0xff] %v7389_v9  ;;  %v7135_v38 = vmul.f32 %v5951_v24, %v575_v2  ;;  %v7134_v20 = vmul.f32 %v5947_v27, %v573_v48  ;;  %v12586_v24 = vld [vmem:[#allocation24_spill] sm:$0xff] }
 0x124   : > { %7644 = vst [vmem:[%s9275_s20 + $0xe0] sm:$0xff] %v7388_v5  ;;  %v5959_v43 = vrot.slane %v2953_v54, %v8866_v51  ;;  %v2963_v59 = vcombine.high %v2953_v54, %v2953_v54  ;;  %v9677_v53 = vmul.f32 %v4579_v11, %v9451_v7  ;;  %v1576_v62 = vcombine.high %v9637_v44, %v9637_v44  ;;  %v9696_v54 = vld [vmem:[%s8683_s4 + $0x2d8] sm:$0xff]  ;;  %v9699_v11 = vld [vmem:[%s8683_s4 + $0x2d0] sm:$0xff] }
 0x125   : > { %v1543_v34 = vrot.slane %v1529_v52, %v8829_v33  ;;  %690 = vrot.lane.b32.xlu1 %v9663_v63, %s8449_s22  ;;  %688 = vrot.lane.b32.xlu0 %v9666_v3, %s8449_s22  ;;  %v9687_v27 = vmul.f32 %v4571_v25, %v9417_v8  ;;  %v1574_v7 = vcombine.high %v9606_v6, %v9606_v6  ;;  %v579_v5 = vpop.permute.xlu1 %578 }
 0x126   : > { %12584 = vst [vmem:[#allocation22_spill] sm:$0xff] %v9677_v53  ;;  %v7391_v44 = vadd.f32 %v7135_v38, %v9113_v58  ;;  %v7390_v52 = vadd.f32 %v7134_v20, %v12586_v24  ;;  %v9702_v9 = vmul.f32 %v4575_v12, %v9414_v61  ;;  %v577_v2 = vpop.permute.xlu0 %576  ;;  %v2960_v8 = vrot.slane %v2932_v26, %v8829_v33  ;;  %v9729_v24 = vld [vmem:[%s8683_s4 + $0x2e0] sm:$0xff] }
 0x127   : > { %12585 = vst [vmem:[#allocation41_spill] sm:$0xff] %v9687_v27  ;;  %v2946_v25 = vrot.slane %v2930_v29, %v8829_v33  ;;  %v2972_v6 = vrot.slane %v9674_v0, %v8829_v33  ;;  %v7137_v58 = vmul.f32 %v5959_v43, %v579_v5  ;;  %v7136_v48 = vmul.f32 %v5955_v14, %v577_v2 }
 0x128   : > { %12587 = vst [vmem:[#allocation24_spill] sm:$0xff] %v9702_v9  ;;  %7647 = vst [vmem:[%s9275_s20 + $0xf8] sm:$0xff] %v7391_v44  ;;  %v5967_v38 = vrot.slane %v2963_v59, %v8866_v51  ;;  %v5963_v61 = vrot.slane %v2961_v46, %v8866_v51  ;;  %v4591_v12 = vrot.slane %v1576_v62, %v8866_v51  ;;  %v12588_v46 = vld [vmem:[#allocation25_spill] sm:$0xff]  ;;  %v12589_v59 = vld [vmem:[#allocation26_spill] sm:$0xff] }
 0x129   : > { %7646 = vst [vmem:[%s9275_s20 + $0xf0] sm:$0xff] %v7390_v52  ;;  %v1545_v20 = vcombine.high %v1543_v34, %v1543_v34  ;;  %v1585_v29 = vrot.slane %v9691_v28, %v8829_v33  ;;  %694 = vrot.lane.b32.xlu1 %v9696_v54, %s8449_s22  ;;  %692 = vrot.lane.b32.xlu0 %v9699_v11, %s8449_s22  ;;  %v9726_v44 = vld [vmem:[%s8683_s4 + $0x2e8] sm:$0xff]  ;;  %v583_v52 = vpop.permute.xlu1 %582 }
 0x12a   : > { %v4587_v14 = vrot.slane %v1574_v7, %v8866_v51  ;;  %v9721_v26 = vrot.slane %v1543_v34, %v8829_v33  ;;  %v7393_v43 = vadd.f32 %v7137_v58, %v12588_v46  ;;  %v7392_v62 = vadd.f32 %v7136_v48, %v12589_v59  ;;  %v581_v5 = vpop.permute.xlu0 %580 }
 0x12b   : > { %v5975_v2 = vrot.slane %v2960_v8, %v8866_v51  ;;  %v5971_v53 = vrot.slane %v2946_v25, %v8866_v51  ;;  %v2980_v27 = vcombine.high %v2972_v6, %v2972_v6  ;;  %v2965_v7 = vcombine.high %v9674_v0, %v9674_v0 }
 0x12c   : > { %7649 = vst [vmem:[%s9275_s20 + $0x108] sm:$0xff] %v7393_v43  ;;  %7648 = vst [vmem:[%s9275_s20 + $0x100] sm:$0xff] %v7392_v62  ;;  %v7139_v34 = vmul.f32 %v5967_v38, %v583_v52  ;;  %v7138_v58 = vmul.f32 %v5963_v61, %v581_v5  ;;  %v2964_v48 = vcombine.high %v2960_v8, %v2960_v8  ;;  %v9756_v38 = vld [vmem:[%s8683_s4 + $0x2f8] sm:$0xff]  ;;  %v9759_v61 = vld [vmem:[%s8683_s4 + $0x2f0] sm:$0xff] }
 0x12d   : > { %v2962_v46 = vcombine.high %v2946_v25, %v2946_v25  ;;  %v9738_v59 = vmul.f32 %v4583_v19, %v9448_v45  ;;  %v9741_v9 = vmul.f32 %v4591_v12, %v9473_v10  ;;  %v1573_v16 = vrot.slane %v1545_v20, %v8829_v33  ;;  %698 = vrot.lane.b32.xlu1 %v9726_v44, %s8449_s22  ;;  %v12593_v19 = vld [vmem:[#allocation27_spill] sm:$0xff]  ;;  %v12594_v10 = vld [vmem:[#allocation28_spill] sm:$0xff]  ;;  %v587_v20 = vpop.permute.xlu1 %586 }
 0x12e   : > { %696 = vrot.lane.b32.xlu0 %v9729_v24, %s8449_s22  ;;  %v9749_v0 = vmul.f32 %v4587_v14, %v9476_v30  ;;  %v1575_v45 = vcombine.high %v9721_v26, %v9721_v26  ;;  %v7395_v8 = vadd.f32 %v7139_v34, %v12593_v19  ;;  %v7394_v25 = vadd.f32 %v7138_v58, %v12594_v10  ;;  %v585_v43 = vpop.permute.xlu0 %584 }
 0x12f   : > { %12590 = vst [vmem:[#allocation25_spill] sm:$0xff] %v9738_v59  ;;  %12591 = vst [vmem:[#allocation26_spill] sm:$0xff] %v9741_v9  ;;  %v1593_v12 = vcombine.high %v1585_v29, %v1585_v29  ;;  %v3002_v62 = vrot.slane %v2980_v27, %v8829_v33  ;;  %v2988_v52 = vrot.slane %v2972_v6, %v8829_v33 }
 0x130   : > { %12592 = vst [vmem:[#allocation42_spill] sm:$0xff] %v9749_v0  ;;  %v2979_v30 = vrot.slane %v2965_v7, %v8829_v33  ;;  %7651 = vst [vmem:[%s9275_s20 + $0x118] sm:$0xff] %v7395_v8  ;;  %v7141_v14 = vmul.f32 %v5975_v2, %v587_v20  ;;  %v7140_v5 = vmul.f32 %v5971_v53, %v585_v43  ;;  %v12595_v2 = vld [vmem:[#allocation31_spill] sm:$0xff]  ;;  %v9782_v8 = vld [vmem:[%s8683_s4 + $0x308] sm:$0xff] }
 0x131   : > { %7650 = vst [vmem:[%s9275_s20 + $0x110] sm:$0xff] %v7394_v25  ;;  %v5983_v34 = vrot.slane %v2964_v48, %v8866_v51  ;;  %v5979_v58 = vrot.slane %v2962_v46, %v8866_v51  ;;  %v4599_v19 = vrot.slane %v1573_v16, %v8866_v51  ;;  %v4595_v10 = vrot.slane %v9721_v26, %v8866_v51  ;;  %v12596_v48 = vld [vmem:[#allocation29_spill] sm:$0xff]  ;;  %v9785_v26 = vld [vmem:[%s8683_s4 + $0x300] sm:$0xff]  ;;  %v591_v25 = vpop.permute.xlu1 %590 }
 0x132   : > { %v1577_v27 = vcombine.high %v1573_v16, %v1573_v16  ;;  %702 = vrot.lane.b32.xlu1 %v9756_v38, %s8449_s22  ;;  %700 = vrot.lane.b32.xlu0 %v9759_v61, %s8449_s22  ;;  %v4603_v53 = vrot.slane %v1575_v45, %v8866_v51  ;;  %v9777_v6 = vrot.slane %v1585_v29, %v8829_v33  ;;  %v589_v20 = vpop.permute.xlu0 %588 }
 0x133   : > { %v7397_v7 = vadd.f32 %v7141_v14, %v12595_v2  ;;  %v7396_v46 = vadd.f32 %v7140_v5, %v12596_v48  ;;  %v9788_v16 = vrot.slane %v1593_v12, %v8829_v33  ;;  %v5991_v43 = vrot.slane %v3002_v62, %v8866_v51  ;;  %v9794_v48 = vld [vmem:[#allocation7 + $0x30] sm:$0xff] }
 0x134   : > { %v5987_v45 = vrot.slane %v2988_v52, %v8866_v51  ;;  %v2981_v0 = vcombine.high %v2979_v30, %v2979_v30  ;;  %v7143_v29 = vmul.f32 %v5983_v34, %v591_v25  ;;  %v7142_v14 = vmul.f32 %v5979_v58, %v589_v20 }
 0x135   : > { %7653 = vst [vmem:[%s9275_s20 + $0x128] sm:$0xff] %v7397_v7  ;;  %7652 = vst [vmem:[%s9275_s20 + $0x120] sm:$0xff] %v7396_v46  ;;  %v3012_v5 = vcombine.high %v3002_v62, %v3002_v62  ;;  %v3010_v2 = vcombine.high %v2988_v52, %v2988_v52  ;;  %v9797_v12 = vmul.f32 %v4599_v19, %v9504_v40  ;;  %v12600_v52 = vld [vmem:[#allocation35_spill] sm:$0xff]  ;;  %v595_v46 = vpop.permute.xlu1 %594 }
 0x136   : > { %v9800_v9 = vmul.f32 %v4595_v10, %v9507_v23  ;;  %v4607_v59 = vrot.slane %v1577_v27, %v8866_v51  ;;  %706 = vrot.lane.b32.xlu1 %v9782_v8, %s8449_s22  ;;  %704 = vrot.lane.b32.xlu0 %v9785_v26, %s8449_s22  ;;  %v9808_v62 = vmul.f32 %v4603_v53, %v9531_v36  ;;  %v12601_v23 = vld [vmem:[#allocation33_spill] sm:$0xff]  ;;  %v9815_v19 = vld [vmem:[%s8683_s4 + $0x318] sm:$0xff]  ;;  %v9818_v10 = vld [vmem:[%s8683_s4 + $0x310] sm:$0xff]  ;;  %v593_v25 = vpop.permute.xlu0 %592 }
 0x137   : > { %12597 = vst [vmem:[#allocation27_spill] sm:$0xff] %v9797_v12  ;;  %v1578_v40 = vcombine.high %v9691_v28, %v9691_v28  ;;  %v7399_v34 = vadd.f32 %v7143_v29, %v12600_v52  ;;  %v7398_v58 = vadd.f32 %v7142_v14, %v12601_v23  ;;  %v4615_v27 = vrot.slane %v9788_v16, %v8866_v51  ;;  %v9822_v7 = vld [vmem:[#allocation5 + $0x58] sm:$0xff] }
 0x138   : > { %12598 = vst [vmem:[#allocation28_spill] sm:$0xff] %v9800_v9  ;;  %12599 = vst [vmem:[#allocation31_spill] sm:$0xff] %v9808_v62  ;;  %v3009_v36 = vrot.slane %v2981_v0, %v8829_v33  ;;  %v2995_v53 = vrot.slane %v2979_v30, %v8829_v33  ;;  %v3021_v28 = vrot.slane %v9794_v48, %v8829_v33 }
 0x139   : > { %7655 = vst [vmem:[%s9275_s20 + $0x138] sm:$0xff] %v7399_v34  ;;  %7654 = vst [vmem:[%s9275_s20 + $0x130] sm:$0xff] %v7398_v58  ;;  %v7145_v20 = vmul.f32 %v5991_v43, %v595_v46  ;;  %v7144_v29 = vmul.f32 %v5987_v45, %v593_v25  ;;  %v5999_v14 = vrot.slane %v3012_v5, %v8866_v51  ;;  %v12602_v5 = vld [vmem:[#allocation30_spill] sm:$0xff]  ;;  %v9850_v58 = vld [vmem:[%s8683_s4 + $0x328] sm:$0xff]  ;;  %v599_v46 = vpop.permute.xlu1 %598 }
 0x13a   : > { %v5995_v52 = vrot.slane %v3010_v2, %v8866_v51  ;;  %v4611_v23 = vrot.slane %v9777_v6, %v8866_v51  ;;  %v1625_v0 = vcombine.high %v9788_v16, %v9788_v16  ;;  %v1623_v30 = vcombine.high %v9777_v6, %v9777_v6  ;;  %710 = vrot.lane.b32.xlu1 %v9815_v19, %s8449_s22  ;;  %v12603_v16 = vld [vmem:[#allocation32_spill] sm:$0xff]  ;;  %v597_v25 = vpop.permute.xlu0 %596 }
 0x13b   : > { %708 = vrot.lane.b32.xlu0 %v9818_v10, %s8449_s22  ;;  %v1592_v43 = vrot.slane %v1578_v40, %v8829_v33  ;;  %v9845_v45 = vrot.slane %v9822_v7, %v8829_v33  ;;  %v7401_v2 = vadd.f32 %v7145_v20, %v12602_v5  ;;  %v7400_v34 = vadd.f32 %v7144_v29, %v12603_v16  ;;  %v9853_v6 = vld [vmem:[%s8683_s4 + $0x320] sm:$0xff] }
 0x13c   : > { %v6007_v62 = vrot.slane %v3009_v36, %v8866_v51  ;;  %v6003_v9 = vrot.slane %v2995_v53, %v8866_v51  ;;  %v3013_v12 = vcombine.high %v3009_v36, %v3009_v36  ;;  %v3029_v40 = vcombine.high %v3021_v28, %v3021_v28 }
 0x13d   : > { %7657 = vst [vmem:[%s9275_s20 + $0x148] sm:$0xff] %v7401_v2  ;;  %7656 = vst [vmem:[%s9275_s20 + $0x140] sm:$0xff] %v7400_v34  ;;  %v7147_v22 = vmul.f32 %v5999_v14, %v599_v46  ;;  %v7146_v20 = vmul.f32 %v5995_v52, %v597_v25  ;;  %v3011_v5 = vcombine.high %v2995_v53, %v2995_v53  ;;  %v9876_v2 = vld [vmem:[%s8683_s4 + $0x338] sm:$0xff] }
 0x13e   : > { %v3014_v29 = vcombine.high %v9794_v48, %v9794_v48  ;;  %v9862_v16 = vmul.f32 %v4607_v59, %v9528_v37  ;;  %v9865_v49 = vmul.f32 %v4615_v27, %v9555_v21  ;;  %v4623_v36 = vrot.slane %v1625_v0, %v8866_v51  ;;  %714 = vrot.lane.b32.xlu1 %v9850_v58, %s8449_s22  ;;  %v12606_v48 = vld [vmem:[#allocation34_spill] sm:$0xff]  ;;  %v12607_v37 = vld [vmem:[#allocation36_spill] sm:$0xff]  ;;  %v603_v0 = vpop.permute.xlu1 %602  ;;  %v601_v34 = vpop.permute.xlu0 %600 }
 0x13f   : > { %712 = vrot.lane.b32.xlu0 %v9853_v6, %s8449_s22  ;;  %v4619_v53 = vrot.slane %v1623_v30, %v8866_v51  ;;  %v1594_v14 = vcombine.high %v1592_v43, %v1592_v43  ;;  %v7403_v52 = vadd.f32 %v7147_v22, %v12606_v48  ;;  %v7402_v59 = vadd.f32 %v7146_v20, %v12607_v37  ;;  %v9879_v21 = vld [vmem:[%s8683_s4 + $0x330] sm:$0xff] }
 0x140   : > { %12604 = vst [vmem:[#allocation29_spill] sm:$0xff] %v9862_v16  ;;  %12605 = vst [vmem:[#allocation35_spill] sm:$0xff] %v9865_v49  ;;  %v1642_v27 = vcombine.high %v9845_v45, %v9845_v45  ;;  %v6015_v46 = vrot.slane %v3013_v12, %v8866_v51  ;;  %v3051_v25 = vrot.slane %v3029_v40, %v8829_v33  ;;  %v9911_v40 = vld [vmem:[%s8683_s4 + $0x340] sm:$0xff] }
 0x141   : > { %v3037_v30 = vrot.slane %v3021_v28, %v8829_v33  ;;  %7659 = vst [vmem:[%s9275_s20 + $0x158] sm:$0xff] %v7403_v52  ;;  %7658 = vst [vmem:[%s9275_s20 + $0x150] sm:$0xff] %v7402_v59  ;;  %v7149_v22 = vmul.f32 %v6007_v62, %v603_v0  ;;  %v7148_v20 = vmul.f32 %v6003_v9, %v601_v34  ;;  %v12608_v28 = vld [vmem:[#allocation38_spill] sm:$0xff]  ;;  %v9920_v0 = vld [vmem:[#allocation7 + $0x38] sm:$0xff] }
 0x142   : > { %v6011_v48 = vrot.slane %v3011_v5, %v8866_v51  ;;  %v3028_v37 = vrot.slane %v3014_v29, %v8829_v33  ;;  %v9891_v49 = vmul.f32 %v4611_v23, %v9558_v60  ;;  %v9894_v16 = vmul.f32 %v4623_v36, %v9581_v18  ;;  %718 = vrot.lane.b32.xlu1 %v9876_v2, %s8449_s22  ;;  %v9908_v23 = vld [vmem:[%s8683_s4 + $0x348] sm:$0xff]  ;;  %v607_v5 = vpop.permute.xlu1 %606  ;;  %v605_v29 = vpop.permute.xlu0 %604 }
 0x143   : > { %v1608_v12 = vrot.slane %v1592_v43, %v8829_v33  ;;  %716 = vrot.lane.b32.xlu0 %v9879_v21, %s8449_s22  ;;  %v9902_v9 = vmul.f32 %v4619_v53, %v9584_v1  ;;  %v1622_v62 = vrot.slane %v1594_v14, %v8829_v33  ;;  %v7405_v60 = vadd.f32 %v7149_v22, %v9291_v31 }
 0x144   : > { %v7404_v18 = vadd.f32 %v7148_v20, %v12608_v28  ;;  %v9914_v43 = vrot.slane %v1642_v27, %v8829_v33  ;;  %v6023_v36 = vrot.slane %v3051_v25, %v8866_v51  ;;  %v6019_v1 = vrot.slane %v3037_v30, %v8866_v51 }
 0x145   : > { %v3061_v53 = vcombine.high %v3051_v25, %v3051_v25  ;;  %7661 = vst [vmem:[%s9275_s20 + $0x168] sm:$0xff] %v7405_v60  ;;  %v7151_v31 = vmul.f32 %v6015_v46, %v607_v5  ;;  %v7150_v14 = vmul.f32 %v6011_v48, %v605_v29  ;;  %v3059_v52 = vcombine.high %v3037_v30, %v3037_v30  ;;  %v9935_v48 = vld [vmem:[%s8683_s4 + $0x358] sm:$0xff] }
 0x146   : > { %7660 = vst [vmem:[%s9275_s20 + $0x160] sm:$0xff] %v7404_v18  ;;  %v3030_v59 = vcombine.high %v3028_v37, %v3028_v37  ;;  %v4627_v27 = vrot.slane %v1608_v12, %v8866_v51  ;;  %v1624_v34 = vcombine.high %v1608_v12, %v1608_v12  ;;  %v9925_v22 = vrot.slane %v9845_v45, %v8829_v33  ;;  %v9938_v12 = vld [vmem:[%s8683_s4 + $0x350] sm:$0xff]  ;;  %v611_v60 = vpop.permute.xlu1 %610  ;;  %v609_v28 = vpop.permute.xlu0 %608 }
 0x147   : > { %722 = vrot.lane.b32.xlu1 %v9908_v23, %s8449_s22  ;;  %720 = vrot.lane.b32.xlu0 %v9911_v40, %s8449_s22  ;;  %v4631_v46 = vrot.slane %v1622_v62, %v8866_v51  ;;  %v1626_v25 = vcombine.high %v1622_v62, %v1622_v62  ;;  %v7407_v30 = vadd.f32 %v7151_v31, %v9334_v56 }
 0x148   : > { %v7406_v20 = vadd.f32 %v7150_v14, %v9311_v47  ;;  %v4647_v45 = vrot.slane %v9914_v43, %v8866_v51  ;;  %v6031_v18 = vrot.slane %v3061_v53, %v8866_v51  ;;  %v3044_v5 = vrot.slane %v3028_v37, %v8829_v33 }
 0x149   : > { %v3070_v62 = vrot.slane %v9920_v0, %v8829_v33  ;;  %7663 = vst [vmem:[%s9275_s20 + $0x178] sm:$0xff] %v7407_v30  ;;  %v7153_v47 = vmul.f32 %v6023_v36, %v611_v60  ;;  %v7152_v56 = vmul.f32 %v6019_v1, %v609_v28  ;;  %v6027_v29 = vrot.slane %v3059_v52, %v8866_v51  ;;  %v12609_v52 = vld [vmem:[#allocation37_spill] sm:$0xff] }
 0x14a   : > { %7662 = vst [vmem:[%s9275_s20 + $0x170] sm:$0xff] %v7406_v20  ;;  %v3058_v31 = vrot.slane %v3030_v59, %v8829_v33  ;;  %v9951_v14 = vmul.f32 %v4627_v27, %v9614_v4  ;;  %v4635_v53 = vrot.slane %v1624_v34, %v8866_v51  ;;  %v1627_v37 = vcombine.high %v9822_v7, %v9822_v7  ;;  %v9967_v27 = vld [vmem:[%s8683_s4 + $0x368] sm:$0xff]  ;;  %v9970_v34 = vld [vmem:[%s8683_s4 + $0x360] sm:$0xff]  ;;  %v615_v7 = vpop.permute.xlu1 %614  ;;  %v613_v30 = vpop.permute.xlu0 %612 }
 0x14b   : > { %726 = vrot.lane.b32.xlu1 %v9935_v48, %s8449_s22  ;;  %724 = vrot.lane.b32.xlu0 %v9938_v12, %s8449_s22  ;;  %v9961_v36 = vmul.f32 %v4631_v46, %v9611_v17  ;;  %v4639_v1 = vrot.slane %v1626_v25, %v8866_v51  ;;  %v7409_v4 = vadd.f32 %v7153_v47, %v9280_v42 }
 0x14c   : > { %v7408_v59 = vadd.f32 %v7152_v56, %v12609_v52  ;;  %v6035_v20 = vrot.slane %v3044_v5, %v8866_v51  ;;  %v3060_v60 = vcombine.high %v3044_v5, %v3044_v5  ;;  %v3078_v28 = vcombine.high %v3070_v62, %v3070_v62 }
 0x14d   : > { %v3063_v17 = vcombine.high %v9920_v0, %v9920_v0  ;;  %7665 = vst [vmem:[%s9275_s20 + $0x188] sm:$0xff] %v7409_v4  ;;  %v7155_v42 = vmul.f32 %v6031_v18, %v615_v7  ;;  %v7154_v46 = vmul.f32 %v6027_v29, %v613_v30  ;;  %v6039_v25 = vrot.slane %v3058_v31, %v8866_v51  ;;  %v9995_v29 = vld [vmem:[%s8683_s4 + $0x378] sm:$0xff] }
 0x14e   : > { %7664 = vst [vmem:[%s9275_s20 + $0x180] sm:$0xff] %v7408_v59  ;;  %v3062_v47 = vcombine.high %v3058_v31, %v3058_v31  ;;  %v9979_v56 = vmul.f32 %v4635_v53, %v9634_v32  ;;  %v1674_v52 = vcombine.high %v9914_v43, %v9914_v43  ;;  %v1641_v5 = vrot.slane %v1627_v37, %v8829_v33  ;;  %v9998_v31 = vld [vmem:[%s8683_s4 + $0x370] sm:$0xff]  ;;  %v619_v37 = vpop.permute.xlu1 %618  ;;  %v617_v4 = vpop.permute.xlu0 %616 }
 0x14f   : > { %730 = vrot.lane.b32.xlu1 %v9967_v27, %s8449_s22  ;;  %728 = vrot.lane.b32.xlu0 %v9970_v34, %s8449_s22  ;;  %v4643_v0 = vrot.slane %v9925_v22, %v8866_v51  ;;  %v1672_v32 = vcombine.high %v9925_v22, %v9925_v22  ;;  %v7411_v18 = vadd.f32 %v7155_v42, %v9314_v13 }
 0x150   : > { %v7410_v43 = vadd.f32 %v7154_v46, %v9284_v41  ;;  %v10001_v53 = vmul.f32 %v4647_v45, %v9663_v63  ;;  %v6043_v59 = vrot.slane %v3060_v60, %v8866_v51  ;;  %v3100_v7 = vrot.slane %v3078_v28, %v8829_v33 }
 0x151   : > { %v3077_v30 = vrot.slane %v3063_v17, %v8829_v33  ;;  %7667 = vst [vmem:[%s9275_s20 + $0x198] sm:$0xff] %v7411_v18  ;;  %v7157_v41 = vmul.f32 %v6039_v25, %v619_v37  ;;  %v7156_v13 = vmul.f32 %v6035_v20, %v617_v4  ;;  %v6047_v22 = vrot.slane %v3062_v47, %v8866_v51  ;;  %v10028_v17 = vld [vmem:[%s8683_s4 + $0x380] sm:$0xff] }
 0x152   : > { %12610 = vst [vmem:[#allocation33_spill] sm:$0xff] %v10001_v53  ;;  %7666 = vst [vmem:[%s9275_s20 + $0x190] sm:$0xff] %v7410_v43  ;;  %v3086_v42 = vrot.slane %v3070_v62, %v8829_v33  ;;  %v10011_v63 = vmul.f32 %v4639_v1, %v9631_v39  ;;  %v4655_v45 = vrot.slane %v1674_v52, %v8866_v51  ;;  %v10025_v1 = vld [vmem:[%s8683_s4 + $0x388] sm:$0xff]  ;;  %v10031_v25 = vld [vmem:[#allocation5 + $0x60] sm:$0xff]  ;;  %v623_v47 = vpop.permute.xlu1 %622  ;;  %v621_v52 = vpop.permute.xlu0 %620 }
 0x153   : > { %v1643_v60 = vcombine.high %v1641_v5, %v1641_v5  ;;  %734 = vrot.lane.b32.xlu1 %v9995_v29, %s8449_s22  ;;  %732 = vrot.lane.b32.xlu0 %v9998_v31, %s8449_s22  ;;  %v10019_v20 = vmul.f32 %v4643_v0, %v9666_v3  ;;  %v4651_v28 = vrot.slane %v1672_v32, %v8866_v51 }
 0x154   : > { %v7413_v62 = vadd.f32 %v7157_v41, %v9353_v57  ;;  %v7412_v39 = vadd.f32 %v7156_v13, %v9374_v15  ;;  %v1657_v46 = vrot.slane %v1641_v5, %v8829_v33  ;;  %v6055_v18 = vrot.slane %v3100_v7, %v8866_v51 }
 0x155   : > { %12611 = vst [vmem:[#allocation30_spill] sm:$0xff] %v10019_v20  ;;  %v3110_v3 = vcombine.high %v3100_v7, %v3100_v7  ;;  %v3079_v0 = vcombine.high %v3077_v30, %v3077_v30  ;;  %v7159_v57 = vmul.f32 %v6047_v22, %v623_v47  ;;  %v7158_v15 = vmul.f32 %v6043_v59, %v621_v52  ;;  %v2664_v59 = vld [vmem:[#allocation7 + $0x40] sm:$0xff] }
 0x156   : > { %7669 = vst [vmem:[%s9275_s20 + $0x1a8] sm:$0xff] %v7413_v62  ;;  %7668 = vst [vmem:[%s9275_s20 + $0x1a0] sm:$0xff] %v7412_v39  ;;  %v6051_v32 = vrot.slane %v3086_v42, %v8866_v51  ;;  %v3108_v43 = vcombine.high %v3086_v42, %v3086_v42  ;;  %v10038_v37 = vmul.f32 %v4655_v45, %v9696_v54  ;;  %v12613_v54 = vld [vmem:[#allocation14_spill] sm:$0xff]  ;;  %v10052_v42 = vld [vmem:[%s8683_s4 + $0x398] sm:$0xff]  ;;  %v627_v62 = vpop.permute.xlu1 %626  ;;  %v625_v39 = vpop.permute.xlu0 %624 }
 0x157   : > { %v1671_v5 = vrot.slane %v1643_v60, %v8829_v33  ;;  %738 = vrot.lane.b32.xlu1 %v10025_v1, %s8449_s22  ;;  %736 = vrot.lane.b32.xlu0 %v10028_v17, %s8449_s22  ;;  %v1673_v7 = vcombine.high %v1657_v46, %v1657_v46  ;;  %v1683_v41 = vrot.slane %v10031_v25, %v8829_v33  ;;  %v10055_v45 = vld [vmem:[%s8683_s4 + $0x390] sm:$0xff] }
 0x158   : > { %12612 = vst [vmem:[#allocation32_spill] sm:$0xff] %v10038_v37  ;;  %v7415_v13 = vadd.f32 %v7159_v57, %v12613_v54  ;;  %v7414_v22 = vadd.f32 %v7158_v15, %v9429_v50  ;;  %v10058_v60 = vmul.f32 %v4651_v28, %v9699_v11  ;;  %v6063_v47 = vrot.slane %v3110_v3, %v8866_v51 }
 0x159   : > { %v3107_v52 = vrot.slane %v3079_v0, %v8829_v33  ;;  %v3093_v4 = vrot.slane %v3077_v30, %v8829_v33  ;;  %v7161_v50 = vmul.f32 %v6055_v18, %v627_v62  ;;  %v7160_v57 = vmul.f32 %v6051_v32, %v625_v39  ;;  %v12615_v32 = vld [vmem:[#allocation12_spill] sm:$0xff] }
 0x15a   : > { %12614 = vst [vmem:[#allocation34_spill] sm:$0xff] %v10058_v60  ;;  %7671 = vst [vmem:[%s9275_s20 + $0x1b8] sm:$0xff] %v7415_v13  ;;  %v6059_v15 = vrot.slane %v3108_v43, %v8866_v51  ;;  %v3119_v54 = vrot.slane %v2664_v59, %v8829_v33  ;;  %v4663_v11 = vrot.slane %v1671_v5, %v8866_v51  ;;  %v10077_v13 = vld [vmem:[%s8683_s4 + $0x3a8] sm:$0xff] }
 0x15b   : > { %7670 = vst [vmem:[%s9275_s20 + $0x1b0] sm:$0xff] %v7414_v22  ;;  %v4659_v28 = vrot.slane %v1657_v46, %v8866_v51  ;;  %v1675_v3 = vcombine.high %v1671_v5, %v1671_v5  ;;  %742 = vrot.lane.b32.xlu1 %v10052_v42, %s8449_s22  ;;  %740 = vrot.lane.b32.xlu0 %v10055_v45, %s8449_s22  ;;  %v10080_v22 = vld [vmem:[%s8683_s4 + $0x3a0] sm:$0xff]  ;;  %v631_v46 = vpop.permute.xlu1 %630  ;;  %v629_v5 = vpop.permute.xlu0 %628 }
 0x15c   : > { %v4667_v30 = vrot.slane %v1673_v7, %v8866_v51  ;;  %v1691_v18 = vcombine.high %v1683_v41, %v1683_v41  ;;  %v7417_v0 = vadd.f32 %v7161_v50, %v9432_v55  ;;  %v7416_v43 = vadd.f32 %v7160_v57, %v12615_v32 }
 0x15d   : > { %v6071_v62 = vrot.slane %v3107_v52, %v8866_v51  ;;  %v6067_v39 = vrot.slane %v3093_v4, %v8866_v51  ;;  %v3109_v60 = vcombine.high %v3093_v4, %v3093_v4  ;;  %v3112_v37 = vcombine.high %v2664_v59, %v2664_v59 }
 0x15e   : > { %7673 = vst [vmem:[%s9275_s20 + $0x1c8] sm:$0xff] %v7417_v0  ;;  %7672 = vst [vmem:[%s9275_s20 + $0x1c0] sm:$0xff] %v7416_v43  ;;  %v7163_v7 = vmul.f32 %v6063_v47, %v631_v46  ;;  %v7162_v55 = vmul.f32 %v6059_v15, %v629_v5  ;;  %v3111_v50 = vcombine.high %v3107_v52, %v3107_v52  ;;  %v12616_v47 = vld [vmem:[#allocation13_spill] sm:$0xff]  ;;  %v12617_v52 = vld [vmem:[#allocation15_spill] sm:$0xff] }
 0x15f   : > { %v3127_v57 = vcombine.high %v3119_v54, %v3119_v54  ;;  %v10087_v32 = vmul.f32 %v4663_v11, %v9726_v44  ;;  %v10090_v20 = vmul.f32 %v4659_v28, %v9729_v24  ;;  %v4671_v53 = vrot.slane %v1675_v3, %v8866_v51  ;;  %746 = vrot.lane.b32.xlu1 %v10077_v13, %s8449_s22  ;;  %v10102_v24 = vld [vmem:[%s8683_s4 + $0x3b8] sm:$0xff]  ;;  %v10105_v11 = vld [vmem:[%s8683_s4 + $0x3b0] sm:$0xff]  ;;  %v635_v3 = vpop.permute.xlu1 %634  ;;  %v633_v0 = vpop.permute.xlu0 %632 }
 0x160   : > { %744 = vrot.lane.b32.xlu0 %v10080_v22, %s8449_s22  ;;  %v1713_v4 = vrot.slane %v1691_v18, %v8829_v33  ;;  %v1699_v59 = vrot.slane %v1683_v41, %v8829_v33  ;;  %v7419_v44 = vadd.f32 %v7163_v7, %v12616_v47  ;;  %v7418_v15 = vadd.f32 %v7162_v55, %v12617_v52 }
 0x161   : > { %v10108_v28 = vmul.f32 %v4667_v30, %v9759_v61  ;;  %v6075_v43 = vrot.slane %v3109_v60, %v8866_v51  ;;  %v3135_v46 = vrot.slane %v3119_v54, %v8829_v33  ;;  %v3126_v18 = vrot.slane %v3112_v37, %v8829_v33 }
 0x162   : > { %7675 = vst [vmem:[%s9275_s20 + $0x1d8] sm:$0xff] %v7419_v44  ;;  %7674 = vst [vmem:[%s9275_s20 + $0x1d0] sm:$0xff] %v7418_v15  ;;  %v7165_v41 = vmul.f32 %v6071_v62, %v635_v3  ;;  %v7164_v5 = vmul.f32 %v6067_v39, %v633_v0  ;;  %v6079_v7 = vrot.slane %v3111_v50, %v8866_v51  ;;  %v12622_v39 = vld [vmem:[#allocation40_spill] sm:$0xff] }
 0x163   : > { %12618 = vst [vmem:[#allocation36_spill] sm:$0xff] %v10108_v28  ;;  %v3149_v55 = vrot.slane %v3127_v57, %v8829_v33  ;;  %v10118_v61 = vmul.f32 %v4671_v53, %v9756_v38  ;;  %v1723_v30 = vcombine.high %v1713_v4, %v1713_v4  ;;  %v12620_v60 = vcombine.high %v10031_v25, %v10031_v25  ;;  %v12621_v38 = vld [vmem:[#allocation39_spill] sm:$0xff]  ;;  %v10133_v57 = vld [vmem:[%s8683_s4 + $0x3c8] sm:$0xff]  ;;  %v10136_v25 = vld [vmem:[%s8683_s4 + $0x3c0] sm:$0xff]  ;;  %v639_v44 = vpop.permute.xlu1 %638  ;;  %v637_v52 = vpop.permute.xlu0 %636 }
 0x164   : > { %750 = vrot.lane.b32.xlu1 %v10102_v24, %s8449_s22  ;;  %748 = vrot.lane.b32.xlu0 %v10105_v11, %s8449_s22  ;;  %v4679_v54 = vrot.slane %v1713_v4, %v8866_v51  ;;  %v4675_v62 = vrot.slane %v1699_v59, %v8866_v51  ;;  %v7421_v53 = vadd.f32 %v7165_v41, %v12621_v38  ;;  %v10142_v38 = vld [vmem:[#allocation7 + $0x48] sm:$0xff] }
 0x165   : > { %12619 = vst [vmem:[#allocation38_spill] sm:$0xff] %v10118_v61  ;;  %v1690_v37 = vrot.slane %v12620_v60, %v8829_v33  ;;  %v7420_v50 = vadd.f32 %v7164_v5, %v12622_v39  ;;  %12623 = vst [vmem:[#allocation37_spill] sm:$0xff] %v10136_v25  ;;  %v1721_v47 = vcombine.high %v1699_v59, %v1699_v59 }
 0x166   : > { %v6083_v15 = vrot.slane %v3135_v46, %v8866_v51  ;;  %v3157_v3 = vcombine.high %v3135_v46, %v3135_v46  ;;  %v3128_v0 = vcombine.high %v3126_v18, %v3126_v18  ;;  %7677 = vst [vmem:[%s9275_s20 + $0x1e8] sm:$0xff] %v7421_v53  ;;  %v7167_v4 = vmul.f32 %v6079_v7, %v639_v44  ;;  %v12626_v7 = vld [vmem:[#allocation17_spill] sm:$0xff] }
 0x167   : > { %7676 = vst [vmem:[%s9275_s20 + $0x1e0] sm:$0xff] %v7420_v50  ;;  %v7166_v60 = vmul.f32 %v6075_v43, %v637_v52  ;;  %v6087_v41 = vrot.slane %v3149_v55, %v8866_v51  ;;  %v3159_v5 = vcombine.high %v3149_v55, %v3149_v55  ;;  %v4687_v39 = vrot.slane %v1723_v30, %v8866_v51  ;;  %v12627_v30 = vld [vmem:[#allocation16_spill] sm:$0xff]  ;;  %v10159_v50 = vld [vmem:[%s8683_s4 + $0x3d8] sm:$0xff]  ;;  %v10165_v52 = vld [vmem:[#allocation5 + $0x68] sm:$0xff]  ;;  %v643_v61 = vpop.permute.xlu1 %642 }
 0x168   : > { %v1692_v59 = vcombine.high %v1690_v37, %v1690_v37  ;;  %v1706_v28 = vrot.slane %v1690_v37, %v8829_v33  ;;  %754 = vrot.lane.b32.xlu1 %v10133_v57, %s8449_s22  ;;  %752 = vrot.lane.b32.xlu0 %v10136_v25, %s8449_s22  ;;  %v10151_v43 = vmul.f32 %v4679_v54, %v9782_v8  ;;  %v10162_v37 = vld [vmem:[%s8683_s4 + $0x3d0] sm:$0xff]  ;;  %v641_v25 = vpop.permute.xlu0 %640 }
 0x169   : > { %v10154_v46 = vmul.f32 %v4675_v62, %v9785_v26  ;;  %v7423_v55 = vadd.f32 %v7167_v4, %v12626_v7  ;;  %v7422_v53 = vadd.f32 %v7166_v60, %v12627_v30  ;;  %v4683_v44 = vrot.slane %v1721_v47, %v8866_v51 }
 0x16a   : > { %12624 = vst [vmem:[#allocation14_spill] sm:$0xff] %v10151_v43  ;;  %v3156_v8 = vrot.slane %v3128_v0, %v8829_v33  ;;  %v3142_v54 = vrot.slane %v3126_v18, %v8829_v33  ;;  %v3168_v26 = vrot.slane %v10142_v38, %v8829_v33  ;;  %v7169_v62 = vmul.f32 %v6087_v41, %v643_v61  ;;  %v10189_v41 = vld [vmem:[%s8683_s4 + $0x3e8] sm:$0xff] }
 0x16b   : > { %12625 = vst [vmem:[#allocation12_spill] sm:$0xff] %v10154_v46  ;;  %7679 = vst [vmem:[%s9275_s20 + $0x1f8] sm:$0xff] %v7423_v55  ;;  %v7168_v4 = vmul.f32 %v6083_v15, %v641_v25  ;;  %v6095_v60 = vrot.slane %v3159_v5, %v8866_v51  ;;  %v6091_v47 = vrot.slane %v3157_v3, %v8866_v51  ;;  %v12629_v15 = vld [vmem:[#allocation19_spill] sm:$0xff]  ;;  %v10192_v5 = vld [vmem:[%s8683_s4 + $0x3e0] sm:$0xff] }
 0x16c   : > { %7678 = vst [vmem:[%s9275_s20 + $0x1f0] sm:$0xff] %v7422_v53  ;;  %v10176_v7 = vmul.f32 %v4687_v39, %v9815_v19  ;;  %v1720_v0 = vrot.slane %v1692_v59, %v8829_v33  ;;  %v4691_v18 = vrot.slane %v1706_v28, %v8866_v51  ;;  %758 = vrot.lane.b32.xlu1 %v10159_v50, %s8449_s22  ;;  %v647_v39 = vpop.permute.xlu1 %646  ;;  %v645_v59 = vpop.permute.xlu0 %644 }
 0x16d   : > { %756 = vrot.lane.b32.xlu0 %v10162_v37, %s8449_s22  ;;  %v1722_v61 = vcombine.high %v1706_v28, %v1706_v28  ;;  %v1732_v25 = vrot.slane %v10165_v52, %v8829_v33  ;;  %v7425_v3 = vadd.f32 %v7169_v62, %v12629_v15  ;;  %v7424_v19 = vadd.f32 %v7168_v4, %v9576_v35 }
 0x16e   : > { %12628 = vst [vmem:[#allocation13_spill] sm:$0xff] %v10176_v7  ;;  %v6103_v55 = vrot.slane %v3156_v8, %v8866_v51  ;;  %v6099_v30 = vrot.slane %v3142_v54, %v8866_v51  ;;  %v3176_v53 = vcombine.high %v3168_v26, %v3168_v26  ;;  %v3161_v28 = vcombine.high %v10142_v38, %v10142_v38 }
 0x16f   : > { %7681 = vst [vmem:[%s9275_s20 + $0x208] sm:$0xff] %v7425_v3  ;;  %7680 = vst [vmem:[%s9275_s20 + $0x200] sm:$0xff] %v7424_v19  ;;  %v7171_v62 = vmul.f32 %v6095_v60, %v647_v39  ;;  %v7170_v35 = vmul.f32 %v6091_v47, %v645_v59  ;;  %v3160_v4 = vcombine.high %v3156_v8, %v3156_v8  ;;  %v12632_v8 = vld [vmem:[#allocation18_spill] sm:$0xff]  ;;  %v12633_v47 = vld [vmem:[#allocation20_spill] sm:$0xff] }
 0x170   : > { %v3158_v15 = vcombine.high %v3142_v54, %v3142_v54  ;;  %v10201_v7 = vmul.f32 %v4683_v44, %v9818_v10  ;;  %v4695_v46 = vrot.slane %v1720_v0, %v8866_v51  ;;  %v1724_v43 = vcombine.high %v1720_v0, %v1720_v0  ;;  %762 = vrot.lane.b32.xlu1 %v10189_v41, %s8449_s22  ;;  %v10214_v44 = vld [vmem:[%s8683_s4 + $0x3f8] sm:$0xff]  ;;  %v10217_v3 = vld [vmem:[%s8683_s4 + $0x3f0] sm:$0xff]  ;;  %v651_v19 = vpop.permute.xlu1 %650  ;;  %v649_v39 = vpop.permute.xlu0 %648 }
 0x171   : > { %760 = vrot.lane.b32.xlu0 %v10192_v5, %s8449_s22  ;;  %v10209_v38 = vmul.f32 %v4691_v18, %v9853_v6  ;;  %v1740_v60 = vcombine.high %v1732_v25, %v1732_v25  ;;  %v7427_v54 = vadd.f32 %v7171_v62, %v12632_v8  ;;  %v7426_v10 = vadd.f32 %v7170_v35, %v12633_v47 }
 0x172   : > { %12630 = vst [vmem:[#allocation15_spill] sm:$0xff] %v10201_v7  ;;  %v4699_v0 = vrot.slane %v1722_v61, %v8866_v51  ;;  %v3198_v59 = vrot.slane %v3176_v53, %v8829_v33  ;;  %v3184_v7 = vrot.slane %v3168_v26, %v8829_v33  ;;  %v3175_v6 = vrot.slane %v3161_v28, %v8829_v33  ;;  %v12634_v53 = vld [vmem:[#allocation23_spill] sm:$0xff] }
 0x173   : > { %12631 = vst [vmem:[#allocation39_spill] sm:$0xff] %v10209_v38  ;;  %7683 = vst [vmem:[%s9275_s20 + $0x218] sm:$0xff] %v7427_v54  ;;  %v7173_v18 = vmul.f32 %v6103_v55, %v651_v19  ;;  %v7172_v62 = vmul.f32 %v6099_v30, %v649_v39  ;;  %v6111_v35 = vrot.slane %v3160_v4, %v8866_v51  ;;  %v10245_v4 = vld [vmem:[%s8683_s4 + $0x400] sm:$0xff] }
 0x174   : > { %7682 = vst [vmem:[%s9275_s20 + $0x210] sm:$0xff] %v7426_v10  ;;  %v6107_v8 = vrot.slane %v3158_v15, %v8866_v51  ;;  %v10228_v61 = vmul.f32 %v4695_v46, %v9850_v58  ;;  %v4703_v47 = vrot.slane %v1724_v43, %v8866_v51  ;;  %v1725_v26 = vcombine.high %v10165_v52, %v10165_v52  ;;  %v12635_v46 = vld [vmem:[#allocation21_spill] sm:$0xff]  ;;  %v655_v15 = vpop.permute.xlu1 %654  ;;  %v653_v54 = vpop.permute.xlu0 %652 }
 0x175   : > { %766 = vrot.lane.b32.xlu1 %v10214_v44, %s8449_s22  ;;  %764 = vrot.lane.b32.xlu0 %v10217_v3, %s8449_s22  ;;  %v1762_v55 = vrot.slane %v1740_v60, %v8829_v33  ;;  %v1748_v30 = vrot.slane %v1732_v25, %v8829_v33  ;;  %v7429_v58 = vadd.f32 %v7173_v18, %v12634_v53  ;;  %v10242_v43 = vld [vmem:[%s8683_s4 + $0x408] sm:$0xff]  ;;  %v10254_v53 = vld [vmem:[#allocation7 + $0x50] sm:$0xff] }
 0x176   : > { %v7428_v28 = vadd.f32 %v7172_v62, %v12635_v46  ;;  %12636 = vst [vmem:[#allocation40_spill] sm:$0xff] %v10242_v43  ;;  %12637 = vst [vmem:[#allocation17_spill] sm:$0xff] %v10245_v4  ;;  %v10248_v52 = vmul.f32 %v4699_v0, %v9879_v21  ;;  %v6119_v10 = vrot.slane %v3198_v59, %v8866_v51 }
 0x177   : > { %v6115_v19 = vrot.slane %v3184_v7, %v8866_v51  ;;  %v3177_v60 = vcombine.high %v3175_v6, %v3175_v6  ;;  %7685 = vst [vmem:[%s9275_s20 + $0x228] sm:$0xff] %v7429_v58  ;;  %v7175_v25 = vmul.f32 %v6111_v35, %v655_v15  ;;  %v7174_v39 = vmul.f32 %v6107_v8, %v653_v54  ;;  %v12640_v8 = vld [vmem:[#allocation41_spill] sm:$0xff]  ;;  %v10266_v15 = vld [vmem:[%s8683_s4 + $0x418] sm:$0xff]  ;;  %v10269_v54 = vld [vmem:[%s8683_s4 + $0x410] sm:$0xff] }
 0x178   : > { %12638 = vst [vmem:[#allocation16_spill] sm:$0xff] %v10248_v52  ;;  %7684 = vst [vmem:[%s9275_s20 + $0x220] sm:$0xff] %v7428_v28  ;;  %v3208_v18 = vcombine.high %v3198_v59, %v3198_v59  ;;  %v3206_v62 = vcombine.high %v3184_v7, %v3184_v7  ;;  %v1772_v46 = vcombine.high %v1762_v55, %v1762_v55  ;;  %v12639_v59 = vld [vmem:[#allocation24_spill] sm:$0xff]  ;;  %v659_v52 = vpop.permute.xlu1 %658 }
 0x179   : > { %v1770_v21 = vcombine.high %v1748_v30, %v1748_v30  ;;  %v1739_v0 = vrot.slane %v1725_v26, %v8829_v33  ;;  %770 = vrot.lane.b32.xlu1 %v10242_v43, %s8449_s22  ;;  %768 = vrot.lane.b32.xlu0 %v10245_v4, %s8449_s22  ;;  %v4711_v58 = vrot.slane %v1762_v55, %v8866_v51  ;;  %v657_v43 = vpop.permute.xlu0 %656 }
 0x17a   : > { %v4707_v35 = vrot.slane %v1748_v30, %v8866_v51  ;;  %v7431_v7 = vadd.f32 %v7175_v25, %v12639_v59  ;;  %v7430_v28 = vadd.f32 %v7174_v39, %v12640_v8  ;;  %12641 = vst [vmem:[#allocation19_spill] sm:$0xff] %v10269_v54  ;;  %v10272_v26 = vmul.f32 %v4703_v47, %v9876_v2 }
 0x17b   : > { %v3205_v38 = vrot.slane %v3177_v60, %v8829_v33  ;;  %v3191_v4 = vrot.slane %v3175_v6, %v8829_v33  ;;  %v3217_v55 = vrot.slane %v10254_v53, %v8829_v33  ;;  %v7177_v30 = vmul.f32 %v6119_v10, %v659_v52  ;;  %v12643_v52 = vld [vmem:[#allocation25_spill] sm:$0xff] }
 0x17c   : > { %7687 = vst [vmem:[%s9275_s20 + $0x238] sm:$0xff] %v7431_v7  ;;  %7686 = vst [vmem:[%s9275_s20 + $0x230] sm:$0xff] %v7430_v28  ;;  %v7176_v25 = vmul.f32 %v6115_v19, %v657_v43  ;;  %v6127_v39 = vrot.slane %v3208_v18, %v8866_v51  ;;  %v6123_v2 = vrot.slane %v3206_v62, %v8866_v51  ;;  %v12644_v19 = vld [vmem:[#allocation22_spill] sm:$0xff]  ;;  %v10297_v62 = vld [vmem:[%s8683_s4 + $0x428] sm:$0xff]  ;;  %v663_v7 = vpop.permute.xlu1 %662 }
 0x17d   : > { %v4719_v47 = vrot.slane %v1772_v46, %v8866_v51  ;;  %v4715_v59 = vrot.slane %v1770_v21, %v8866_v51  ;;  %v1741_v60 = vcombine.high %v1739_v0, %v1739_v0  ;;  %774 = vrot.lane.b32.xlu1 %v10266_v15, %s8449_s22  ;;  %772 = vrot.lane.b32.xlu0 %v10269_v54, %s8449_s22  ;;  %v10300_v46 = vld [vmem:[%s8683_s4 + $0x420] sm:$0xff]  ;;  %v10302_v21 = vld [vmem:[#allocation5 + $0x70] sm:$0xff]  ;;  %v661_v8 = vpop.permute.xlu0 %660 }
 0x17e   : > { %v10289_v6 = vmul.f32 %v4711_v58, %v9908_v23  ;;  %v10292_v43 = vmul.f32 %v4707_v35, %v9911_v40  ;;  %v7433_v10 = vadd.f32 %v7177_v30, %v12643_v52  ;;  %v7432_v18 = vadd.f32 %v7176_v25, %v12644_v19  ;;  %12645 = vst [vmem:[#allocation20_spill] sm:$0xff] %v10297_v62 }
 0x17f   : > { %12646 = vst [vmem:[#allocation23_spill] sm:$0xff] %v10300_v46  ;;  %v6135_v28 = vrot.slane %v3205_v38, %v8866_v51  ;;  %v6131_v23 = vrot.slane %v3191_v4, %v8866_v51  ;;  %v3225_v58 = vcombine.high %v3217_v55, %v3217_v55  ;;  %v3210_v40 = vcombine.high %v10254_v53, %v10254_v53 }
 0x180   : > { %12642 = vst [vmem:[#allocation18_spill] sm:$0xff] %v10292_v43  ;;  %7689 = vst [vmem:[%s9275_s20 + $0x248] sm:$0xff] %v7433_v10  ;;  %v7179_v35 = vmul.f32 %v6127_v39, %v663_v7  ;;  %v7178_v30 = vmul.f32 %v6123_v2, %v661_v8  ;;  %v3209_v25 = vcombine.high %v3205_v38, %v3205_v38  ;;  %v12649_v39 = vld [vmem:[#allocation42_spill] sm:$0xff]  ;;  %v10327_v2 = vld [vmem:[%s8683_s4 + $0x438] sm:$0xff] }
 0x181   : > { %7688 = vst [vmem:[%s9275_s20 + $0x240] sm:$0xff] %v7432_v18  ;;  %v3207_v52 = vcombine.high %v3191_v4, %v3191_v4  ;;  %v10311_v19 = vmul.f32 %v4719_v47, %v9935_v48  ;;  %v10314_v54 = vmul.f32 %v4715_v59, %v9938_v12  ;;  %v1769_v43 = vrot.slane %v1741_v60, %v8829_v33  ;;  %v12648_v48 = vld [vmem:[#allocation26_spill] sm:$0xff]  ;;  %v667_v60 = vpop.permute.xlu1 %666  ;;  %v665_v10 = vpop.permute.xlu0 %664 }
 0x182   : > { %778 = vrot.lane.b32.xlu1 %v10297_v62, %s8449_s22  ;;  %776 = vrot.lane.b32.xlu0 %v10300_v46, %s8449_s22  ;;  %v1755_v53 = vrot.slane %v1739_v0, %v8829_v33  ;;  %v1781_v38 = vrot.slane %v10302_v21, %v8829_v33  ;;  %v7435_v4 = vadd.f32 %v7179_v35, %v12648_v48  ;;  %v10330_v47 = vld [vmem:[%s8683_s4 + $0x430] sm:$0xff] }
 0x183   : > { %12647 = vst [vmem:[#allocation21_spill] sm:$0xff] %v10314_v54  ;;  %v7434_v12 = vadd.f32 %v7178_v30, %v12649_v39  ;;  %12650 = vst [vmem:[#allocation24_spill] sm:$0xff] %v10327_v2  ;;  %v1773_v59 = vcombine.high %v1769_v43, %v1769_v43  ;;  %v3247_v18 = vrot.slane %v3225_v58, %v8829_v33 }
 0x184   : > { %12651 = vst [vmem:[#allocation41_spill] sm:$0xff] %v10330_v47  ;;  %v3233_v7 = vrot.slane %v3217_v55, %v8829_v33  ;;  %v3224_v0 = vrot.slane %v3210_v40, %v8829_v33  ;;  %7691 = vst [vmem:[%s9275_s20 + $0x258] sm:$0xff] %v7435_v4  ;;  %v7181_v8 = vmul.f32 %v6135_v28, %v667_v60  ;;  %v10353_v4 = vld [vmem:[%s8683_s4 + $0x440] sm:$0xff] }
 0x185   : > { %7690 = vst [vmem:[%s9275_s20 + $0x250] sm:$0xff] %v7434_v12  ;;  %v7180_v35 = vmul.f32 %v6131_v23, %v665_v10  ;;  %v6143_v30 = vrot.slane %v3209_v25, %v8866_v51  ;;  %v6139_v48 = vrot.slane %v3207_v52, %v8866_v51  ;;  %v4727_v39 = vrot.slane %v1769_v43, %v8866_v51  ;;  %v12652_v23 = vld [vmem:[#allocation27_spill] sm:$0xff]  ;;  %v12653_v25 = vld [vmem:[#allocation28_spill] sm:$0xff]  ;;  %v10350_v43 = vld [vmem:[%s8683_s4 + $0x448] sm:$0xff]  ;;  %v671_v12 = vpop.permute.xlu1 %670  ;;  %v669_v60 = vpop.permute.xlu0 %668 }
 0x186   : > { %v1771_v62 = vcombine.high %v1755_v53, %v1755_v53  ;;  %v1774_v58 = vcombine.high %v10302_v21, %v10302_v21  ;;  %782 = vrot.lane.b32.xlu1 %v10327_v2, %s8449_s22  ;;  %780 = vrot.lane.b32.xlu0 %v10330_v47, %s8449_s22  ;;  %v4723_v55 = vrot.slane %v1755_v53, %v8866_v51 }
 0x187   : > { %v1789_v28 = vcombine.high %v1781_v38, %v1781_v38  ;;  %v7437_v40 = vadd.f32 %v7181_v8, %v12652_v23  ;;  %v7436_v52 = vadd.f32 %v7180_v35, %v12653_v25  ;;  %v4735_v21 = vrot.slane %v1773_v59, %v8866_v51  ;;  %v10360_v25 = vld [vmem:[#allocation7 + $0x58] sm:$0xff] }
 0x188   : > { %v6151_v10 = vrot.slane %v3247_v18, %v8866_v51  ;;  %v6147_v2 = vrot.slane %v3233_v7, %v8866_v51  ;;  %v3226_v47 = vcombine.high %v3224_v0, %v3224_v0  ;;  %v7183_v53 = vmul.f32 %v6143_v30, %v671_v12 }
 0x189   : > { %7693 = vst [vmem:[%s9275_s20 + $0x268] sm:$0xff] %v7437_v40  ;;  %7692 = vst [vmem:[%s9275_s20 + $0x260] sm:$0xff] %v7436_v52  ;;  %v7182_v8 = vmul.f32 %v6139_v48, %v669_v60  ;;  %v3257_v35 = vcombine.high %v3247_v18, %v3247_v18  ;;  %v3255_v23 = vcombine.high %v3233_v7, %v3233_v7  ;;  %v12655_v48 = vld [vmem:[#allocation31_spill] sm:$0xff]  ;;  %v675_v52 = vpop.permute.xlu1 %674  ;;  %v673_v12 = vpop.permute.xlu0 %672 }
 0x18a   : > { %v10363_v46 = vmul.f32 %v4727_v39, %v9967_v27  ;;  %v4731_v59 = vrot.slane %v1771_v62, %v8866_v51  ;;  %v10367_v54 = vrot.slane %v1781_v38, %v8829_v33  ;;  %786 = vrot.lane.b32.xlu1 %v10350_v43, %s8449_s22  ;;  %784 = vrot.lane.b32.xlu0 %v10353_v4, %s8449_s22  ;;  %v12654_v27 = vld [vmem:[#allocation29_spill] sm:$0xff]  ;;  %v10380_v39 = vld [vmem:[%s8683_s4 + $0x458] sm:$0xff]  ;;  %v10383_v38 = vld [vmem:[%s8683_s4 + $0x450] sm:$0xff] }
 0x18b   : > { %v10374_v18 = vmul.f32 %v4723_v55, %v9970_v34  ;;  %v1811_v7 = vrot.slane %v1789_v28, %v8829_v33  ;;  %v7439_v30 = vadd.f32 %v7183_v53, %v12654_v27  ;;  %v7438_v62 = vadd.f32 %v7182_v8, %v12655_v48  ;;  %12656 = vst [vmem:[#allocation25_spill] sm:$0xff] %v10380_v39  ;;  %v10413_v27 = vld [vmem:[%s8683_s4 + $0x460] sm:$0xff] }
 0x18c   : > { %12657 = vst [vmem:[#allocation22_spill] sm:$0xff] %v10383_v38  ;;  %v10386_v40 = vmul.f32 %v4735_v21, %v9995_v29  ;;  %v3254_v60 = vrot.slane %v3226_v47, %v8829_v33  ;;  %v3240_v34 = vrot.slane %v3224_v0, %v8829_v33  ;;  %v3266_v55 = vrot.slane %v10360_v25, %v8829_v33 }
 0x18d   : > { %7695 = vst [vmem:[%s9275_s20 + $0x278] sm:$0xff] %v7439_v30  ;;  %7694 = vst [vmem:[%s9275_s20 + $0x270] sm:$0xff] %v7438_v62  ;;  %v7185_v28 = vmul.f32 %v6151_v10, %v675_v52  ;;  %v7184_v53 = vmul.f32 %v6147_v2, %v673_v12  ;;  %v6159_v8 = vrot.slane %v3257_v35, %v8866_v51  ;;  %v12658_v35 = vld [vmem:[#allocation35_spill] sm:$0xff]  ;;  %v679_v30 = vpop.permute.xlu1 %678 }
 0x18e   : > { %v6155_v29 = vrot.slane %v3255_v23, %v8866_v51  ;;  %v10397_v21 = vmul.f32 %v4731_v59, %v9998_v31  ;;  %v4739_v47 = vrot.slane %v10367_v54, %v8866_v51  ;;  %v1788_v0 = vrot.slane %v1774_v58, %v8829_v33  ;;  %790 = vrot.lane.b32.xlu1 %v10380_v39, %s8449_s22  ;;  %v10410_v59 = vld [vmem:[%s8683_s4 + $0x468] sm:$0xff]  ;;  %v677_v58 = vpop.permute.xlu0 %676 }
 0x18f   : > { %788 = vrot.lane.b32.xlu0 %v10383_v38, %s8449_s22  ;;  %v4743_v2 = vrot.slane %v1811_v7, %v8866_v51  ;;  %v1821_v10 = vcombine.high %v1811_v7, %v1811_v7  ;;  %v7441_v23 = vadd.f32 %v7185_v28, %v12658_v35  ;;  %v7440_v31 = vadd.f32 %v7184_v53, %v9891_v49 }
 0x190   : > { %v6167_v48 = vrot.slane %v3254_v60, %v8866_v51  ;;  %v6163_v62 = vrot.slane %v3240_v34, %v8866_v51  ;;  %v3274_v52 = vcombine.high %v3266_v55, %v3266_v55  ;;  %v3259_v12 = vcombine.high %v10360_v25, %v10360_v25 }
 0x191   : > { %7697 = vst [vmem:[%s9275_s20 + $0x288] sm:$0xff] %v7441_v23  ;;  %7696 = vst [vmem:[%s9275_s20 + $0x280] sm:$0xff] %v7440_v31  ;;  %v7187_v7 = vmul.f32 %v6159_v8, %v679_v30  ;;  %v7186_v49 = vmul.f32 %v6155_v29, %v677_v58  ;;  %v3258_v28 = vcombine.high %v3254_v60, %v3254_v60  ;;  %v10440_v29 = vld [vmem:[%s8683_s4 + $0x470] sm:$0xff]  ;;  %v683_v23 = vpop.permute.xlu1 %682 }
 0x192   : > { %v3256_v53 = vcombine.high %v3240_v34, %v3240_v34  ;;  %v10422_v35 = vmul.f32 %v4739_v47, %v10028_v17  ;;  %v1819_v38 = vcombine.high %v10367_v54, %v10367_v54  ;;  %v1790_v39 = vcombine.high %v1788_v0, %v1788_v0  ;;  %794 = vrot.lane.b32.xlu1 %v10410_v59, %s8449_s22  ;;  %v10432_v34 = vld [vmem:[#allocation5 + $0x78] sm:$0xff]  ;;  %v681_v31 = vpop.permute.xlu0 %680 }
 0x193   : > { %792 = vrot.lane.b32.xlu0 %v10413_v27, %s8449_s22  ;;  %v4751_v25 = vrot.slane %v1821_v10, %v8866_v51  ;;  %v1804_v60 = vrot.slane %v1788_v0, %v8829_v33  ;;  %v7443_v17 = vadd.f32 %v7187_v7, %v9894_v16  ;;  %v7442_v8 = vadd.f32 %v7186_v49, %v9902_v9  ;;  %v10437_v54 = vld [vmem:[%s8683_s4 + $0x478] sm:$0xff] }
 0x194   : > { %v10443_v47 = vmul.f32 %v4743_v2, %v10025_v1  ;;  %v3296_v30 = vrot.slane %v3274_v52, %v8829_v33  ;;  %v3282_v10 = vrot.slane %v3266_v55, %v8829_v33  ;;  %v3273_v0 = vrot.slane %v3259_v12, %v8829_v33  ;;  %v10467_v52 = vld [vmem:[%s8683_s4 + $0x488] sm:$0xff]  ;;  %v10470_v12 = vld [vmem:[%s8683_s4 + $0x480] sm:$0xff] }
 0x195   : > { %7699 = vst [vmem:[%s9275_s20 + $0x298] sm:$0xff] %v7443_v17  ;;  %7698 = vst [vmem:[%s9275_s20 + $0x290] sm:$0xff] %v7442_v8  ;;  %v7189_v16 = vmul.f32 %v6167_v48, %v683_v23  ;;  %v7188_v9 = vmul.f32 %v6163_v62, %v681_v31  ;;  %v6175_v58 = vrot.slane %v3258_v28, %v8866_v51  ;;  %v687_v28 = vpop.permute.xlu1 %686  ;;  %v10476_v31 = vld [vmem:[#allocation7 + $0x60] sm:$0xff] }
 0x196   : > { %v6171_v7 = vrot.slane %v3256_v53, %v8866_v51  ;;  %v4747_v1 = vrot.slane %v1819_v38, %v8866_v51  ;;  %v1818_v2 = vrot.slane %v1790_v39, %v8829_v33  ;;  %v1830_v55 = vrot.slane %v10432_v34, %v8829_v33  ;;  %798 = vrot.lane.b32.xlu1 %v10437_v54, %s8449_s22  ;;  %v685_v53 = vpop.permute.xlu0 %684 }
 0x197   : > { %796 = vrot.lane.b32.xlu0 %v10440_v29, %s8449_s22  ;;  %v10461_v48 = vmul.f32 %v4751_v25, %v10052_v42  ;;  %v4755_v62 = vrot.slane %v1804_v60, %v8866_v51  ;;  %v7445_v38 = vadd.f32 %v7189_v16, %v9961_v36  ;;  %v7444_v39 = vadd.f32 %v7188_v9, %v9951_v14 }
 0x198   : > { %12659 = vst [vmem:[#allocation26_spill] sm:$0xff] %v10467_v52  ;;  %v1820_v49 = vcombine.high %v1804_v60, %v1804_v60  ;;  %v6183_v17 = vrot.slane %v3296_v30, %v8866_v51  ;;  %v6179_v8 = vrot.slane %v3282_v10, %v8866_v51  ;;  %v3275_v23 = vcombine.high %v3273_v0, %v3273_v0 }
 0x199   : > { %7701 = vst [vmem:[%s9275_s20 + $0x2a8] sm:$0xff] %v7445_v38  ;;  %7700 = vst [vmem:[%s9275_s20 + $0x2a0] sm:$0xff] %v7444_v39  ;;  %v7191_v42 = vmul.f32 %v6175_v58, %v687_v28  ;;  %v7190_v36 = vmul.f32 %v6171_v7, %v685_v53  ;;  %v3306_v25 = vcombine.high %v3296_v30, %v3296_v30  ;;  %v10492_v7 = vld [vmem:[%s8683_s4 + $0x498] sm:$0xff]  ;;  %v691_v39 = vpop.permute.xlu1 %690 }
 0x19a   : > { %v3304_v14 = vcombine.high %v3282_v10, %v3282_v10  ;;  %v10479_v16 = vmul.f32 %v4747_v1, %v10055_v45  ;;  %v4759_v60 = vrot.slane %v1818_v2, %v8866_v51  ;;  %v1838_v9 = vcombine.high %v1830_v55, %v1830_v55  ;;  %802 = vrot.lane.b32.xlu1 %v10467_v52, %s8449_s22  ;;  %v10495_v1 = vld [vmem:[%s8683_s4 + $0x490] sm:$0xff]  ;;  %v689_v28 = vpop.permute.xlu0 %688 }
 0x19b   : > { %800 = vrot.lane.b32.xlu0 %v10470_v12, %s8449_s22  ;;  %v10487_v58 = vmul.f32 %v4755_v62, %v10080_v22  ;;  %v1822_v30 = vcombine.high %v1818_v2, %v1818_v2  ;;  %v7447_v10 = vadd.f32 %v7191_v42, %v10011_v63  ;;  %v7446_v45 = vadd.f32 %v7190_v36, %v9979_v56  ;;  %v12662_v36 = vld [vmem:[#allocation30_spill] sm:$0xff] }
 0x19c   : > { %12660 = vst [vmem:[#allocation42_spill] sm:$0xff] %v10495_v1  ;;  %v4763_v38 = vrot.slane %v1820_v49, %v8866_v51  ;;  %v3303_v53 = vrot.slane %v3275_v23, %v8829_v33  ;;  %v3289_v52 = vrot.slane %v3273_v0, %v8829_v33  ;;  %v3315_v22 = vrot.slane %v10476_v31, %v8829_v33 }
 0x19d   : > { %7703 = vst [vmem:[%s9275_s20 + $0x2b8] sm:$0xff] %v7447_v10  ;;  %7702 = vst [vmem:[%s9275_s20 + $0x2b0] sm:$0xff] %v7446_v45  ;;  %v7193_v56 = vmul.f32 %v6183_v17, %v691_v39  ;;  %v7192_v63 = vmul.f32 %v6179_v8, %v689_v28  ;;  %v6191_v2 = vrot.slane %v3306_v25, %v8866_v51 }
 0x19e   : > { %v6187_v62 = vrot.slane %v3304_v14, %v8866_v51  ;;  %v10507_v49 = vmul.f32 %v4759_v60, %v10077_v13  ;;  %v1860_v23 = vrot.slane %v1838_v9, %v8829_v33  ;;  %v1823_v0 = vcombine.high %v10432_v34, %v10432_v34  ;;  %806 = vrot.lane.b32.xlu1 %v10492_v7, %s8449_s22  ;;  %v12661_v13 = vld [vmem:[#allocation33_spill] sm:$0xff]  ;;  %v10526_v60 = vld [vmem:[%s8683_s4 + $0x4a0] sm:$0xff]  ;;  %v695_v34 = vpop.permute.xlu1 %694  ;;  %v693_v9 = vpop.permute.xlu0 %692 }
 0x19f   : > { %804 = vrot.lane.b32.xlu0 %v10495_v1, %s8449_s22  ;;  %v4767_v17 = vrot.slane %v1822_v30, %v8866_v51  ;;  %v10518_v8 = vrot.slane %v1830_v55, %v8829_v33  ;;  %v7449_v42 = vadd.f32 %v7193_v56, %v12661_v13  ;;  %v7448_v25 = vadd.f32 %v7192_v63, %v12662_v36  ;;  %v10523_v14 = vld [vmem:[%s8683_s4 + $0x4a8] sm:$0xff] }
 0x1a0   : > { %12663 = vst [vmem:[#allocation27_spill] sm:$0xff] %v10523_v14  ;;  %12664 = vst [vmem:[#allocation28_spill] sm:$0xff] %v10526_v60  ;;  %v6199_v10 = vrot.slane %v3303_v53, %v8866_v51  ;;  %v6195_v45 = vrot.slane %v3289_v52, %v8866_v51  ;;  %v3307_v39 = vcombine.high %v3303_v53, %v3303_v53 }
 0x1a1   : > { %v3323_v28 = vcombine.high %v3315_v22, %v3315_v22  ;;  %7705 = vst [vmem:[%s9275_s20 + $0x2c8] sm:$0xff] %v7449_v42  ;;  %7704 = vst [vmem:[%s9275_s20 + $0x2c0] sm:$0xff] %v7448_v25  ;;  %v7195_v55 = vmul.f32 %v6191_v2, %v695_v34  ;;  %v7194_v30 = vmul.f32 %v6187_v62, %v693_v9  ;;  %v10548_v62 = vld [vmem:[%s8683_s4 + $0x4b8] sm:$0xff]  ;;  %v10551_v42 = vld [vmem:[%s8683_s4 + $0x4b0] sm:$0xff] }
 0x1a2   : > { %v3305_v56 = vcombine.high %v3289_v52, %v3289_v52  ;;  %v3308_v63 = vcombine.high %v10476_v31, %v10476_v31  ;;  %v10535_v13 = vmul.f32 %v4763_v38, %v10105_v11  ;;  %v4775_v36 = vrot.slane %v1860_v23, %v8866_v51  ;;  %810 = vrot.lane.b32.xlu1 %v10523_v14, %s8449_s22  ;;  %v12665_v31 = vld [vmem:[#allocation32_spill] sm:$0xff]  ;;  %v12666_v11 = vld [vmem:[#allocation34_spill] sm:$0xff]  ;;  %v699_v25 = vpop.permute.xlu1 %698  ;;  %v697_v34 = vpop.permute.xlu0 %696 }
 0x1a3   : > { %v1837_v1 = vrot.slane %v1823_v0, %v8829_v33  ;;  %808 = vrot.lane.b32.xlu0 %v10526_v60, %s8449_s22  ;;  %v1870_v53 = vcombine.high %v1860_v23, %v1860_v23  ;;  %v1868_v52 = vcombine.high %v10518_v8, %v10518_v8  ;;  %v7451_v2 = vadd.f32 %v7195_v55, %v12665_v31  ;;  %v10559_v14 = vld [vmem:[#allocation5 + $0x80] sm:$0xff] }
 0x1a4   : > { %v7450_v38 = vadd.f32 %v7194_v30, %v12666_v11  ;;  %12667 = vst [vmem:[#allocation29_spill] sm:$0xff] %v10548_v62  ;;  %12668 = vst [vmem:[#allocation31_spill] sm:$0xff] %v10551_v42  ;;  %v10554_v0 = vmul.f32 %v4767_v17, %v10102_v24  ;;  %v6207_v9 = vrot.slane %v3307_v39, %v8866_v51 }
 0x1a5   : > { %v3345_v23 = vrot.slane %v3323_v28, %v8829_v33  ;;  %v3331_v60 = vrot.slane %v3315_v22, %v8829_v33  ;;  %7707 = vst [vmem:[%s9275_s20 + $0x2d8] sm:$0xff] %v7451_v2  ;;  %v7197_v55 = vmul.f32 %v6199_v10, %v699_v25  ;;  %v7196_v30 = vmul.f32 %v6195_v45, %v697_v34  ;;  %v10592_v34 = vld [vmem:[#allocation7 + $0x68] sm:$0xff] }
 0x1a6   : > { %7706 = vst [vmem:[%s9275_s20 + $0x2d0] sm:$0xff] %v7450_v38  ;;  %v6203_v31 = vrot.slane %v3305_v56, %v8866_v51  ;;  %v3322_v24 = vrot.slane %v3308_v63, %v8829_v33  ;;  %v10566_v17 = vmul.f32 %v4775_v36, %v10133_v57  ;;  %v4771_v39 = vrot.slane %v10518_v8, %v8866_v51  ;;  %v10579_v56 = vld [vmem:[%s8683_s4 + $0x4c8] sm:$0xff]  ;;  %v10582_v8 = vld [vmem:[%s8683_s4 + $0x4c0] sm:$0xff]  ;;  %v703_v36 = vpop.permute.xlu1 %702  ;;  %v701_v2 = vpop.permute.xlu0 %700 }
 0x1a7   : > { %v1839_v22 = vcombine.high %v1837_v1, %v1837_v1  ;;  %814 = vrot.lane.b32.xlu1 %v10548_v62, %s8449_s22  ;;  %812 = vrot.lane.b32.xlu0 %v10551_v42, %s8449_s22  ;;  %v4783_v10 = vrot.slane %v1870_v53, %v8866_v51  ;;  %v4779_v45 = vrot.slane %v1868_v52, %v8866_v51 }
 0x1a8   : > { %v7453_v28 = vadd.f32 %v7197_v55, %v10087_v32  ;;  %v7452_v57 = vadd.f32 %v7196_v30, %v10090_v20  ;;  %12669 = vst [vmem:[#allocation35_spill] sm:$0xff] %v10579_v56  ;;  %12670 = vst [vmem:[#allocation33_spill] sm:$0xff] %v10582_v8  ;;  %v10586_v63 = vrot.slane %v10559_v14, %v8829_v33  ;;  %v12671_v55 = vld [vmem:[#allocation37_spill] sm:$0xff] }
 0x1a9   : > { %v6215_v11 = vrot.slane %v3345_v23, %v8866_v51  ;;  %v6211_v53 = vrot.slane %v3331_v60, %v8866_v51  ;;  %v3353_v38 = vcombine.high %v3331_v60, %v3331_v60  ;;  %v7199_v20 = vmul.f32 %v6207_v9, %v703_v36 }
 0x1aa   : > { %7709 = vst [vmem:[%s9275_s20 + $0x2e8] sm:$0xff] %v7453_v28  ;;  %7708 = vst [vmem:[%s9275_s20 + $0x2e0] sm:$0xff] %v7452_v57  ;;  %v7198_v32 = vmul.f32 %v6203_v31, %v701_v2  ;;  %v3355_v52 = vcombine.high %v3345_v23, %v3345_v23  ;;  %v3324_v25 = vcombine.high %v3322_v24, %v3322_v24  ;;  %v12672_v23 = vld [vmem:[#allocation38_spill] sm:$0xff]  ;;  %v10612_v28 = vld [vmem:[%s8683_s4 + $0x4d8] sm:$0xff]  ;;  %v707_v36 = vpop.permute.xlu1 %706  ;;  %v705_v2 = vpop.permute.xlu0 %704 }
 0x1ab   : > { %v10595_v30 = vmul.f32 %v4771_v39, %v12671_v55  ;;  %v1867_v62 = vrot.slane %v1839_v22, %v8829_v33  ;;  %v1853_v42 = vrot.slane %v1837_v1, %v8829_v33  ;;  %818 = vrot.lane.b32.xlu1 %v10579_v56, %s8449_s22  ;;  %816 = vrot.lane.b32.xlu0 %v10582_v8, %s8449_s22  ;;  %v12673_v39 = vld [vmem:[#allocation36_spill] sm:$0xff]  ;;  %v10615_v1 = vld [vmem:[%s8683_s4 + $0x4d0] sm:$0xff] }
 0x1ac   : > { %v10604_v60 = vmul.f32 %v4783_v10, %v10159_v50  ;;  %v10607_v9 = vmul.f32 %v4779_v45, %v10162_v37  ;;  %v7455_v31 = vadd.f32 %v7199_v20, %v12672_v23  ;;  %v7454_v22 = vadd.f32 %v7198_v32, %v12673_v39  ;;  %12674 = vst [vmem:[#allocation30_spill] sm:$0xff] %v10612_v28 }
 0x1ad   : > { %12675 = vst [vmem:[#allocation32_spill] sm:$0xff] %v10615_v1  ;;  %v1887_v57 = vcombine.high %v10586_v63, %v10586_v63  ;;  %v6219_v55 = vrot.slane %v3353_v38, %v8866_v51  ;;  %v3338_v50 = vrot.slane %v3322_v24, %v8829_v33  ;;  %v3364_v37 = vrot.slane %v10592_v34, %v8829_v33 }
 0x1ae   : > { %7711 = vst [vmem:[%s9275_s20 + $0x2f8] sm:$0xff] %v7455_v31  ;;  %7710 = vst [vmem:[%s9275_s20 + $0x2f0] sm:$0xff] %v7454_v22  ;;  %v7201_v10 = vmul.f32 %v6215_v11, %v707_v36  ;;  %v7200_v45 = vmul.f32 %v6211_v53, %v705_v2  ;;  %v6223_v20 = vrot.slane %v3355_v52, %v8866_v51  ;;  %v12676_v53 = vld [vmem:[#allocation14_spill] sm:$0xff]  ;;  %v10640_v22 = vld [vmem:[%s8683_s4 + $0x4e8] sm:$0xff]  ;;  %v709_v2 = vpop.permute.xlu0 %708 }
 0x1af   : > { %v3352_v32 = vrot.slane %v3324_v25, %v8829_v33  ;;  %v4791_v23 = vrot.slane %v1867_v62, %v8866_v51  ;;  %v4787_v39 = vrot.slane %v1853_v42, %v8866_v51  ;;  %v1869_v38 = vcombine.high %v1853_v42, %v1853_v42  ;;  %822 = vrot.lane.b32.xlu1 %v10612_v28, %s8449_s22  ;;  %v12677_v25 = vld [vmem:[#allocation12_spill] sm:$0xff]  ;;  %v711_v42 = vpop.permute.xlu1 %710 }
 0x1b0   : > { %820 = vrot.lane.b32.xlu0 %v10615_v1, %s8449_s22  ;;  %v1871_v24 = vcombine.high %v1867_v62, %v1867_v62  ;;  %v10635_v11 = vrot.slane %v10586_v63, %v8829_v33  ;;  %v7457_v52 = vadd.f32 %v7201_v10, %v12676_v53  ;;  %v7456_v31 = vadd.f32 %v7200_v45, %v12677_v25  ;;  %v10643_v36 = vld [vmem:[%s8683_s4 + $0x4e0] sm:$0xff] }
 0x1b1   : > { %12678 = vst [vmem:[#allocation34_spill] sm:$0xff] %v10640_v22  ;;  %12679 = vst [vmem:[#allocation37_spill] sm:$0xff] %v10643_v36  ;;  %v6227_v28 = vrot.slane %v3338_v50, %v8866_v51  ;;  %v3354_v56 = vcombine.high %v3338_v50, %v3338_v50  ;;  %v3372_v8 = vcombine.high %v3364_v37, %v3364_v37 }
 0x1b2   : > { %v3357_v62 = vcombine.high %v10592_v34, %v10592_v34  ;;  %7713 = vst [vmem:[%s9275_s20 + $0x308] sm:$0xff] %v7457_v52  ;;  %7712 = vst [vmem:[%s9275_s20 + $0x300] sm:$0xff] %v7456_v31  ;;  %v7203_v63 = vmul.f32 %v6223_v20, %v711_v42  ;;  %v7202_v10 = vmul.f32 %v6219_v55, %v709_v2  ;;  %v713_v31 = vpop.permute.xlu0 %712 }
 0x1b3   : > { %v6231_v45 = vrot.slane %v3352_v32, %v8866_v51  ;;  %v3356_v53 = vcombine.high %v3352_v32, %v3352_v32  ;;  %v10652_v25 = vmul.f32 %v4791_v23, %v10189_v41  ;;  %v10655_v1 = vmul.f32 %v4787_v39, %v10192_v5  ;;  %826 = vrot.lane.b32.xlu1 %v10640_v22, %s8449_s22  ;;  %v12680_v41 = vld [vmem:[#allocation13_spill] sm:$0xff]  ;;  %v12681_v32 = vld [vmem:[#allocation15_spill] sm:$0xff]  ;;  %v414_v39 = vld [vmem:[%s8683_s4 + $0x4f0] sm:$0xff]  ;;  %v715_v52 = vpop.permute.xlu1 %714 }
 0x1b4   : > { %v4795_v50 = vrot.slane %v1869_v38, %v8866_v51  ;;  %824 = vrot.lane.b32.xlu0 %v10643_v36, %s8449_s22  ;;  %v4799_v34 = vrot.slane %v1871_v24, %v8866_v51  ;;  %v1872_v55 = vcombine.high %v10559_v14, %v10559_v14  ;;  %v7459_v20 = vadd.f32 %v7203_v63, %v12680_v41  ;;  %v415_v23 = vld [vmem:[%s8683_s4 + $0x4f8] sm:$0xff] }
 0x1b5   : > { %v7458_v5 = vadd.f32 %v7202_v10, %v12681_v32  ;;  %v1909_v38 = vrot.slane %v1887_v57, %v8829_v33  ;;  %v6235_v42 = vrot.slane %v3354_v56, %v8866_v51  ;;  %v3394_v2 = vrot.slane %v3372_v8, %v8829_v33 }
 0x1b6   : > { %v3380_v22 = vrot.slane %v3364_v37, %v8829_v33  ;;  %7715 = vst [vmem:[%s9275_s20 + $0x318] sm:$0xff] %v7459_v20  ;;  %v7205_v14 = vmul.f32 %v6231_v45, %v715_v52  ;;  %v7204_v24 = vmul.f32 %v6227_v28, %v713_v31  ;;  %v6239_v63 = vrot.slane %v3356_v53, %v8866_v51  ;;  %v12682_v45 = vld [vmem:[#allocation39_spill] sm:$0xff]  ;;  %v417_v53 = vld [vmem:[%s8683_s4 + $0x508] sm:$0xff]  ;;  %v717_v32 = vpop.permute.xlu0 %716  ;;  %v10697_v52 = vld [vmem:[#allocation7 + $0x70] sm:$0xff] }
 0x1b7   : > { %7714 = vst [vmem:[%s9275_s20 + $0x310] sm:$0xff] %v7458_v5  ;;  %v3371_v10 = vrot.slane %v3357_v62, %v8829_v33  ;;  %v10678_v57 = vmul.f32 %v4795_v50, %v10217_v3  ;;  %v4803_v56 = vrot.slane %v10635_v11, %v8866_v51  ;;  %v1919_v8 = vcombine.high %v1909_v38, %v1909_v38  ;;  %v416_v50 = vld [vmem:[%s8683_s4 + $0x500] sm:$0xff]  ;;  %v719_v20 = vpop.permute.xlu1 %718  ;;  %v12683_v31 = vld [vmem:[#allocation17_spill] sm:$0xff] }
 0x1b8   : > { %830 = vrot.lane.b32.xlu1 %v415_v23, %s8449_s22  ;;  %828 = vrot.lane.b32.xlu0 %v414_v39, %s8449_s22  ;;  %v10685_v37 = vmul.f32 %v4799_v34, %v10214_v44  ;;  %v1886_v28 = vrot.slane %v1872_v55, %v8829_v33  ;;  %v7461_v62 = vadd.f32 %v7205_v14, %v10228_v61 }
 0x1b9   : > { %v7460_v3 = vadd.f32 %v7204_v24, %v12682_v45  ;;  %v4807_v41 = vrot.slane %v1909_v38, %v8866_v51  ;;  %v6247_v5 = vrot.slane %v3394_v2, %v8866_v51  ;;  %v6243_v23 = vrot.slane %v3380_v22, %v8866_v51  ;;  %v418_v45 = vld [vmem:[%s8683_s4 + $0x510] sm:$0xff] }
 0x1ba   : > { %v3404_v39 = vcombine.high %v3394_v2, %v3394_v2  ;;  %7717 = vst [vmem:[%s9275_s20 + $0x328] sm:$0xff] %v7461_v62  ;;  %v7207_v44 = vmul.f32 %v6239_v63, %v719_v20  ;;  %v7206_v34 = vmul.f32 %v6235_v42, %v717_v32  ;;  %v3402_v61 = vcombine.high %v3380_v22, %v3380_v22  ;;  %v10710_v42 = vld [vmem:[#allocation5 + $0x88] sm:$0xff] }
 0x1bb   : > { %7716 = vst [vmem:[%s9275_s20 + $0x320] sm:$0xff] %v7460_v3  ;;  %v3373_v55 = vcombine.high %v3371_v10, %v3371_v10  ;;  %v10700_v14 = vmul.f32 %v4803_v56, %v12683_v31  ;;  %v4815_v38 = vrot.slane %v1919_v8, %v8866_v51  ;;  %v1917_v24 = vcombine.high %v10635_v11, %v10635_v11  ;;  %v12684_v56 = vld [vmem:[#allocation16_spill] sm:$0xff]  ;;  %v419_v8 = vld [vmem:[%s8683_s4 + $0x518] sm:$0xff]  ;;  %v723_v20 = vpop.permute.xlu1 %722 }
 0x1bc   : > { %834 = vrot.lane.b32.xlu1 %v417_v53, %s8449_s22  ;;  %832 = vrot.lane.b32.xlu0 %v416_v50, %s8449_s22  ;;  %v1888_v2 = vcombine.high %v1886_v28, %v1886_v28  ;;  %v10708_v22 = vrot.slane %v1886_v28, %v8829_v33  ;;  %v7463_v63 = vadd.f32 %v7207_v44, %v10272_v26  ;;  %v12685_v3 = vld [vmem:[#allocation40_spill] sm:$0xff]  ;;  %v721_v53 = vpop.permute.xlu0 %720 }
 0x1bd   : > { %v7462_v62 = vadd.f32 %v7206_v34, %v12684_v56  ;;  %v10717_v11 = vmul.f32 %v4807_v41, %v12685_v3  ;;  %v6255_v32 = vrot.slane %v3404_v39, %v8866_v51  ;;  %v3387_v50 = vrot.slane %v3371_v10, %v8829_v33 }
 0x1be   : > { %v3413_v28 = vrot.slane %v10697_v52, %v8829_v33  ;;  %7719 = vst [vmem:[%s9275_s20 + $0x338] sm:$0xff] %v7463_v63  ;;  %v7209_v26 = vmul.f32 %v6247_v5, %v723_v20  ;;  %v7208_v44 = vmul.f32 %v6243_v23, %v721_v53  ;;  %v6251_v34 = vrot.slane %v3402_v61, %v8866_v51 }
 0x1bf   : > { %7718 = vst [vmem:[%s9275_s20 + $0x330] sm:$0xff] %v7462_v62  ;;  %v3401_v41 = vrot.slane %v3373_v55, %v8829_v33  ;;  %v10728_v31 = vmul.f32 %v4815_v38, %v10266_v15  ;;  %v4811_v39 = vrot.slane %v1917_v24, %v8866_v51  ;;  %v1928_v10 = vrot.slane %v10710_v42, %v8829_v33  ;;  %v12686_v15 = vld [vmem:[#allocation18_spill] sm:$0xff]  ;;  %v421_v38 = vld [vmem:[%s8683_s4 + $0x528] sm:$0xff]  ;;  %v420_v24 = vld [vmem:[%s8683_s4 + $0x520] sm:$0xff]  ;;  %v727_v63 = vpop.permute.xlu1 %726 }
 0x1c0   : > { %838 = vrot.lane.b32.xlu1 %v419_v8, %s8449_s22  ;;  %836 = vrot.lane.b32.xlu0 %v418_v45, %s8449_s22  ;;  %v1916_v5 = vrot.slane %v1888_v2, %v8829_v33  ;;  %v4819_v23 = vrot.slane %v10708_v22, %v8866_v51  ;;  %v7465_v61 = vadd.f32 %v7209_v26, %v10289_v6  ;;  %v725_v56 = vpop.permute.xlu0 %724  ;;  %v12687_v26 = vld [vmem:[#allocation19_spill] sm:$0xff] }
 0x1c1   : > { %v7464_v55 = vadd.f32 %v7208_v44, %v12686_v15  ;;  %v6259_v62 = vrot.slane %v3387_v50, %v8866_v51  ;;  %v3403_v3 = vcombine.high %v3387_v50, %v3387_v50  ;;  %v3421_v20 = vcombine.high %v3413_v28, %v3413_v28 }
 0x1c2   : > { %v3406_v8 = vcombine.high %v10697_v52, %v10697_v52  ;;  %7721 = vst [vmem:[%s9275_s20 + $0x348] sm:$0xff] %v7465_v61  ;;  %v7211_v2 = vmul.f32 %v6255_v32, %v727_v63  ;;  %v7210_v45 = vmul.f32 %v6251_v34, %v725_v56  ;;  %v6263_v6 = vrot.slane %v3401_v41, %v8866_v51  ;;  %v12688_v34 = vld [vmem:[#allocation21_spill] sm:$0xff]  ;;  %v423_v61 = vld [vmem:[%s8683_s4 + $0x538] sm:$0xff] }
 0x1c3   : > { %7720 = vst [vmem:[%s9275_s20 + $0x340] sm:$0xff] %v7464_v55  ;;  %v3405_v53 = vcombine.high %v3401_v41, %v3401_v41  ;;  %v10749_v44 = vmul.f32 %v4811_v39, %v12687_v26  ;;  %v1920_v15 = vcombine.high %v1916_v5, %v1916_v5  ;;  %v1936_v36 = vcombine.high %v1928_v10, %v1928_v10  ;;  %v422_v39 = vld [vmem:[%s8683_s4 + $0x530] sm:$0xff]  ;;  %v12689_v55 = vld [vmem:[#allocation23_spill] sm:$0xff]  ;;  %v731_v56 = vpop.permute.xlu1 %730 }
 0x1c4   : > { %842 = vrot.lane.b32.xlu1 %v421_v38, %s8449_s22  ;;  %840 = vrot.lane.b32.xlu0 %v420_v24, %s8449_s22  ;;  %v4823_v52 = vrot.slane %v1916_v5, %v8866_v51  ;;  %v1918_v32 = vcombine.high %v10708_v22, %v10708_v22  ;;  %v7467_v50 = vadd.f32 %v7211_v2, %v10311_v19  ;;  %v729_v26 = vpop.permute.xlu0 %728 }
 0x1c5   : > { %v7466_v41 = vadd.f32 %v7210_v45, %v12688_v34  ;;  %v10761_v63 = vmul.f32 %v4819_v23, %v12689_v55  ;;  %v6267_v38 = vrot.slane %v3403_v3, %v8866_v51  ;;  %v3443_v24 = vrot.slane %v3421_v20, %v8829_v33 }
 0x1c6   : > { %v3429_v5 = vrot.slane %v3413_v28, %v8829_v33  ;;  %7723 = vst [vmem:[%s9275_s20 + $0x358] sm:$0xff] %v7467_v50  ;;  %v7213_v19 = vmul.f32 %v6263_v6, %v731_v56  ;;  %v7212_v22 = vmul.f32 %v6259_v62, %v729_v26  ;;  %v6271_v2 = vrot.slane %v3405_v53, %v8866_v51  ;;  %v12690_v28 = vld [vmem:[#allocation20_spill] sm:$0xff]  ;;  %v425_v53 = vld [vmem:[%s8683_s4 + $0x548] sm:$0xff] }
 0x1c7   : > { %7722 = vst [vmem:[%s9275_s20 + $0x350] sm:$0xff] %v7466_v41  ;;  %v3420_v45 = vrot.slane %v3406_v8, %v8829_v33  ;;  %v4831_v23 = vrot.slane %v1920_v15, %v8866_v51  ;;  %v1958_v34 = vrot.slane %v1936_v36, %v8829_v33  ;;  %v1921_v3 = vcombine.high %v10710_v42, %v10710_v42  ;;  %v424_v36 = vld [vmem:[%s8683_s4 + $0x540] sm:$0xff]  ;;  %v735_v50 = vpop.permute.xlu1 %734 }
 0x1c8   : > { %846 = vrot.lane.b32.xlu1 %v423_v61, %s8449_s22  ;;  %844 = vrot.lane.b32.xlu0 %v422_v39, %s8449_s22  ;;  %v10777_v20 = vmul.f32 %v4823_v52, %v12690_v28  ;;  %v4827_v62 = vrot.slane %v1918_v32, %v8866_v51  ;;  %v7469_v8 = vadd.f32 %v7213_v19, %v10363_v46  ;;  %v733_v42 = vpop.permute.xlu0 %732  ;;  %v12691_v56 = vld [vmem:[#allocation24_spill] sm:$0xff]  ;;  %v426_v28 = vld [vmem:[%s8683_s4 + $0x550] sm:$0xff] }
 0x1c9   : > { %v7468_v6 = vadd.f32 %v7212_v22, %v10374_v18  ;;  %v1944_v15 = vrot.slane %v1928_v10, %v8829_v33  ;;  %v6279_v41 = vrot.slane %v3443_v24, %v8866_v51  ;;  %v6275_v61 = vrot.slane %v3429_v5, %v8866_v51  ;;  %v10789_v18 = vld [vmem:[#allocation7 + $0x78] sm:$0xff] }
 0x1ca   : > { %v3453_v39 = vcombine.high %v3443_v24, %v3443_v24  ;;  %7725 = vst [vmem:[%s9275_s20 + $0x368] sm:$0xff] %v7469_v8  ;;  %v7215_v52 = vmul.f32 %v6271_v2, %v735_v50  ;;  %v7214_v32 = vmul.f32 %v6267_v38, %v733_v42  ;;  %v3451_v46 = vcombine.high %v3429_v5, %v3429_v5  ;;  %v12692_v24 = vld [vmem:[#allocation41_spill] sm:$0xff] }
 0x1cb   : > { %7724 = vst [vmem:[%s9275_s20 + $0x360] sm:$0xff] %v7468_v6  ;;  %v3422_v55 = vcombine.high %v3420_v45, %v3420_v45  ;;  %v10792_v26 = vmul.f32 %v4831_v23, %v12691_v56  ;;  %v4839_v10 = vrot.slane %v1958_v34, %v8866_v51  ;;  %v1935_v19 = vrot.slane %v1921_v3, %v8829_v33  ;;  %v427_v23 = vld [vmem:[%s8683_s4 + $0x558] sm:$0xff]  ;;  %v739_v6 = vpop.permute.xlu1 %738 }
 0x1cc   : > { %850 = vrot.lane.b32.xlu1 %v425_v53, %s8449_s22  ;;  %848 = vrot.lane.b32.xlu0 %v424_v36, %s8449_s22  ;;  %v10799_v22 = vmul.f32 %v4827_v62, %v12692_v24  ;;  %v1968_v38 = vcombine.high %v1958_v34, %v1958_v34  ;;  %v7471_v5 = vadd.f32 %v7215_v52, %v10386_v40  ;;  %v737_v50 = vpop.permute.xlu0 %736 }
 0x1cd   : > { %v7470_v2 = vadd.f32 %v7214_v32, %v10397_v21  ;;  %v4835_v8 = vrot.slane %v1944_v15, %v8866_v51  ;;  %v6287_v3 = vrot.slane %v3453_v39, %v8866_v51  ;;  %v3436_v53 = vrot.slane %v3420_v45, %v8829_v33 }
 0x1ce   : > { %v3462_v36 = vrot.slane %v10789_v18, %v8829_v33  ;;  %7727 = vst [vmem:[%s9275_s20 + $0x378] sm:$0xff] %v7471_v5  ;;  %v7217_v40 = vmul.f32 %v6279_v41, %v739_v6  ;;  %v7216_v34 = vmul.f32 %v6275_v61, %v737_v50  ;;  %v6283_v21 = vrot.slane %v3451_v46, %v8866_v51  ;;  %v429_v46 = vld [vmem:[%s8683_s4 + $0x568] sm:$0xff] }
 0x1cf   : > { %7726 = vst [vmem:[%s9275_s20 + $0x370] sm:$0xff] %v7470_v2  ;;  %v3450_v62 = vrot.slane %v3422_v55, %v8829_v33  ;;  %v10815_v42 = vmul.f32 %v4839_v10, %v10350_v43  ;;  %v1966_v52 = vcombine.high %v1944_v15, %v1944_v15  ;;  %v1937_v39 = vcombine.high %v1935_v19, %v1935_v19  ;;  %v428_v43 = vld [vmem:[%s8683_s4 + $0x560] sm:$0xff]  ;;  %v743_v55 = vpop.permute.xlu1 %742 }
 0x1d0   : > { %854 = vrot.lane.b32.xlu1 %v427_v23, %s8449_s22  ;;  %852 = vrot.lane.b32.xlu0 %v426_v28, %s8449_s22  ;;  %v4847_v45 = vrot.slane %v1968_v38, %v8866_v51  ;;  %v10821_v41 = vrot.slane %v1935_v19, %v8829_v33  ;;  %v7473_v61 = vadd.f32 %v7217_v40, %v10443_v47  ;;  %v741_v15 = vpop.permute.xlu0 %740  ;;  %v430_v40 = vld [vmem:[%s8683_s4 + $0x570] sm:$0xff] }
 0x1d1   : > { %v7472_v32 = vadd.f32 %v7216_v34, %v10422_v35  ;;  %v6291_v56 = vrot.slane %v3436_v53, %v8866_v51  ;;  %v3452_v10 = vcombine.high %v3436_v53, %v3436_v53  ;;  %v3470_v24 = vcombine.high %v3462_v36, %v3462_v36  ;;  %v431_v53 = vld [vmem:[%s8683_s4 + $0x578] sm:$0xff] }
 0x1d2   : > { %v3455_v5 = vcombine.high %v10789_v18, %v10789_v18  ;;  %7729 = vst [vmem:[%s9275_s20 + $0x388] sm:$0xff] %v7473_v61  ;;  %v7219_v19 = vmul.f32 %v6287_v3, %v743_v55  ;;  %v7218_v38 = vmul.f32 %v6283_v21, %v741_v15  ;;  %v6295_v47 = vrot.slane %v3450_v62, %v8866_v51  ;;  %v12693_v18 = vld [vmem:[#allocation25_spill] sm:$0xff]  ;;  %v10845_v3 = vld [vmem:[#allocation5 + $0x90] sm:$0xff] }
 0x1d3   : > { %7728 = vst [vmem:[%s9275_s20 + $0x380] sm:$0xff] %v7472_v32  ;;  %v3454_v35 = vcombine.high %v3450_v62, %v3450_v62  ;;  %v10834_v2 = vmul.f32 %v4835_v8, %v10353_v4  ;;  %v4843_v23 = vrot.slane %v1966_v52, %v8866_v51  ;;  %v1965_v28 = vrot.slane %v1937_v39, %v8829_v33  ;;  %v747_v21 = vpop.permute.xlu1 %746 }
 0x1d4   : > { %858 = vrot.lane.b32.xlu1 %v429_v46, %s8449_s22  ;;  %856 = vrot.lane.b32.xlu0 %v428_v43, %s8449_s22  ;;  %v10841_v6 = vmul.f32 %v4847_v45, %v12693_v18  ;;  %v4851_v50 = vrot.slane %v10821_v41, %v8866_v51  ;;  %v7475_v4 = vadd.f32 %v7219_v19, %v10461_v48  ;;  %v745_v62 = vpop.permute.xlu0 %744  ;;  %v12694_v46 = vld [vmem:[#allocation22_spill] sm:$0xff] }
 0x1d5   : > { %v7474_v8 = vadd.f32 %v7218_v38, %v10479_v16  ;;  %v1969_v34 = vcombine.high %v1965_v28, %v1965_v28  ;;  %v6299_v52 = vrot.slane %v3452_v10, %v8866_v51  ;;  %v3492_v39 = vrot.slane %v3470_v24, %v8829_v33 }
 0x1d6   : > { %v3478_v45 = vrot.slane %v3462_v36, %v8829_v33  ;;  %7731 = vst [vmem:[%s9275_s20 + $0x398] sm:$0xff] %v7475_v4  ;;  %v7221_v61 = vmul.f32 %v6295_v47, %v747_v21  ;;  %v7220_v32 = vmul.f32 %v6291_v56, %v745_v62  ;;  %v6303_v48 = vrot.slane %v3454_v35, %v8866_v51 }
 0x1d7   : > { %7730 = vst [vmem:[%s9275_s20 + $0x390] sm:$0xff] %v7474_v8  ;;  %v3469_v16 = vrot.slane %v3455_v5, %v8829_v33  ;;  %v10859_v43 = vmul.f32 %v4843_v23, %v12694_v46  ;;  %v1967_v55 = vcombine.high %v10821_v41, %v10821_v41  ;;  %v1977_v36 = vrot.slane %v10845_v3, %v8829_v33  ;;  %v433_v5 = vld [vmem:[%s8683_s4 + $0x588] sm:$0xff]  ;;  %v432_v41 = vld [vmem:[%s8683_s4 + $0x580] sm:$0xff]  ;;  %v751_v38 = vpop.permute.xlu1 %750 }
 0x1d8   : > { %862 = vrot.lane.b32.xlu1 %v431_v53, %s8449_s22  ;;  %860 = vrot.lane.b32.xlu0 %v430_v40, %s8449_s22  ;;  %v4855_v15 = vrot.slane %v1965_v28, %v8866_v51  ;;  %v10869_v56 = vmul.f32 %v4851_v50, %v10413_v27  ;;  %v7477_v10 = vadd.f32 %v7221_v61, %v10507_v49  ;;  %v749_v47 = vpop.permute.xlu0 %748 }
 0x1d9   : > { %v7476_v24 = vadd.f32 %v7220_v32, %v10487_v58  ;;  %v4863_v19 = vrot.slane %v1969_v34, %v8866_v51  ;;  %v6311_v35 = vrot.slane %v3492_v39, %v8866_v51  ;;  %v6307_v23 = vrot.slane %v3478_v45, %v8866_v51  ;;  %v10880_v58 = vld [vmem:[#allocation7 + $0x80] sm:$0xff] }
 0x1da   : > { %v3502_v18 = vcombine.high %v3492_v39, %v3492_v39  ;;  %7733 = vst [vmem:[%s9275_s20 + $0x3a8] sm:$0xff] %v7477_v10  ;;  %v7223_v27 = vmul.f32 %v6303_v48, %v751_v38  ;;  %v7222_v28 = vmul.f32 %v6299_v52, %v749_v47  ;;  %v3500_v49 = vcombine.high %v3478_v45, %v3478_v45  ;;  %v435_v52 = vld [vmem:[%s8683_s4 + $0x598] sm:$0xff]  ;;  %v434_v39 = vld [vmem:[%s8683_s4 + $0x590] sm:$0xff] }
 0x1db   : > { %7732 = vst [vmem:[%s9275_s20 + $0x3a0] sm:$0xff] %v7476_v24  ;;  %v3471_v50 = vcombine.high %v3469_v16, %v3469_v16  ;;  %v4859_v4 = vrot.slane %v1967_v55, %v8866_v51  ;;  %v1985_v8 = vcombine.high %v1977_v36, %v1977_v36  ;;  %v1993_v53 = vrot.slane %v1977_v36, %v8829_v33  ;;  %v755_v61 = vpop.permute.xlu1 %754  ;;  %v10914_v24 = vld [vmem:[#allocation5 + $0x98] sm:$0xff] }
 0x1dc   : > { %866 = vrot.lane.b32.xlu1 %v433_v5, %s8449_s22  ;;  %864 = vrot.lane.b32.xlu0 %v432_v41, %s8449_s22  ;;  %v10887_v40 = vmul.f32 %v4855_v15, %v10410_v59  ;;  %v1970_v34 = vcombine.high %v10845_v3, %v10845_v3  ;;  %v7479_v21 = vadd.f32 %v7223_v27, %v10554_v0  ;;  %v753_v32 = vpop.permute.xlu0 %752  ;;  %v437_v41 = vld [vmem:[%s8683_s4 + $0x5a8] sm:$0xff] }
 0x1dd   : > { %v7478_v62 = vadd.f32 %v7222_v28, %v10535_v13  ;;  %v10896_v45 = vmul.f32 %v4863_v19, %v10437_v54  ;;  %v6319_v48 = vrot.slane %v3502_v18, %v8866_v51  ;;  %v3485_v46 = vrot.slane %v3469_v16, %v8829_v33  ;;  %v436_v19 = vld [vmem:[%s8683_s4 + $0x5a0] sm:$0xff] }
 0x1de   : > { %v3511_v59 = vrot.slane %v10880_v58, %v8829_v33  ;;  %7735 = vst [vmem:[%s9275_s20 + $0x3b8] sm:$0xff] %v7479_v21  ;;  %v7225_v0 = vmul.f32 %v6311_v35, %v755_v61  ;;  %v7224_v13 = vmul.f32 %v6307_v23, %v753_v32  ;;  %v6315_v3 = vrot.slane %v3500_v49, %v8866_v51 }
 0x1df   : > { %7734 = vst [vmem:[%s9275_s20 + $0x3b0] sm:$0xff] %v7478_v62  ;;  %v3499_v54 = vrot.slane %v3471_v50, %v8829_v33  ;;  %v10907_v55 = vmul.f32 %v4859_v4, %v10440_v29  ;;  %v2007_v36 = vrot.slane %v1985_v8, %v8829_v33  ;;  %v4867_v16 = vrot.slane %v1993_v53, %v8866_v51  ;;  %v759_v38 = vpop.permute.xlu1 %758  ;;  %v439_v62 = vld [vmem:[%s8683_s4 + $0x5b8] sm:$0xff] }
 0x1e0   : > { %870 = vrot.lane.b32.xlu1 %v435_v52, %s8449_s22  ;;  %868 = vrot.lane.b32.xlu0 %v434_v39, %s8449_s22  ;;  %v2015_v15 = vcombine.high %v1993_v53, %v1993_v53  ;;  %v1984_v10 = vrot.slane %v1970_v34, %v8829_v33  ;;  %v7481_v5 = vadd.f32 %v7225_v0, %v10566_v17  ;;  %v757_v47 = vpop.permute.xlu0 %756  ;;  %v438_v52 = vld [vmem:[%s8683_s4 + $0x5b0] sm:$0xff] }
 0x1e1   : > { %v7480_v29 = vadd.f32 %v7224_v13, %v10595_v30  ;;  %v6323_v35 = vrot.slane %v3485_v46, %v8866_v51  ;;  %v3501_v23 = vcombine.high %v3485_v46, %v3485_v46  ;;  %v3519_v18 = vcombine.high %v3511_v59, %v3511_v59 }
 0x1e2   : > { %v3504_v27 = vcombine.high %v10880_v58, %v10880_v58  ;;  %7737 = vst [vmem:[%s9275_s20 + $0x3c8] sm:$0xff] %v7481_v5  ;;  %v7227_v28 = vmul.f32 %v6319_v48, %v759_v38  ;;  %v7226_v49 = vmul.f32 %v6315_v3, %v757_v47  ;;  %v6327_v17 = vrot.slane %v3499_v54, %v8866_v51  ;;  %v12695_v3 = vld [vmem:[#allocation26_spill] sm:$0xff] }
 0x1e3   : > { %7736 = vst [vmem:[%s9275_s20 + $0x3c0] sm:$0xff] %v7480_v29  ;;  %v3503_v30 = vcombine.high %v3499_v54, %v3499_v54  ;;  %v4871_v50 = vrot.slane %v2007_v36, %v8866_v51  ;;  %v2017_v4 = vcombine.high %v2007_v36, %v2007_v36  ;;  %v2026_v8 = vrot.slane %v10914_v24, %v8829_v33  ;;  %v763_v61 = vpop.permute.xlu1 %762 }
 0x1e4   : > { %874 = vrot.lane.b32.xlu1 %v437_v41, %s8449_s22  ;;  %872 = vrot.lane.b32.xlu0 %v436_v19, %s8449_s22  ;;  %v10932_v58 = vmul.f32 %v4867_v16, %v10470_v12  ;;  %v4875_v53 = vrot.slane %v2015_v15, %v8866_v51  ;;  %v7483_v34 = vadd.f32 %v7227_v28, %v10604_v60  ;;  %v761_v32 = vpop.permute.xlu0 %760  ;;  %v441_v41 = vld [vmem:[%s8683_s4 + $0x5c8] sm:$0xff]  ;;  %v440_v19 = vld [vmem:[%s8683_s4 + $0x5c0] sm:$0xff] }
 0x1e5   : > { %v7482_v21 = vadd.f32 %v7226_v49, %v10607_v9  ;;  %v1986_v39 = vcombine.high %v1984_v10, %v1984_v10  ;;  %v6331_v48 = vrot.slane %v3501_v23, %v8866_v51  ;;  %v3541_v46 = vrot.slane %v3519_v18, %v8829_v33 }
 0x1e6   : > { %v3527_v0 = vrot.slane %v3511_v59, %v8829_v33  ;;  %7739 = vst [vmem:[%s9275_s20 + $0x3d8] sm:$0xff] %v7483_v34  ;;  %v7229_v12 = vmul.f32 %v6327_v17, %v763_v61  ;;  %v7228_v13 = vmul.f32 %v6323_v35, %v761_v32  ;;  %v6335_v60 = vrot.slane %v3503_v30, %v8866_v51  ;;  %v12696_v30 = vld [vmem:[#allocation42_spill] sm:$0xff] }
 0x1e7   : > { %7738 = vst [vmem:[%s9275_s20 + $0x3d0] sm:$0xff] %v7482_v21  ;;  %v3518_v9 = vrot.slane %v3504_v27, %v8829_v33  ;;  %v10947_v54 = vmul.f32 %v4871_v50, %v12695_v3  ;;  %v4879_v36 = vrot.slane %v2017_v4, %v8866_v51  ;;  %v2034_v16 = vcombine.high %v2026_v8, %v2026_v8  ;;  %v767_v47 = vpop.permute.xlu1 %766 }
 0x1e8   : > { %878 = vrot.lane.b32.xlu1 %v439_v62, %s8449_s22  ;;  %876 = vrot.lane.b32.xlu0 %v438_v52, %s8449_s22  ;;  %v10953_v59 = vrot.slane %v1984_v10, %v8829_v33  ;;  %v10956_v15 = vrot.slane %v2026_v8, %v8829_v33  ;;  %v7485_v5 = vadd.f32 %v7229_v12, %v10652_v25  ;;  %v765_v35 = vpop.permute.xlu0 %764  ;;  %v443_v62 = vld [vmem:[%s8683_s4 + $0x5d8] sm:$0xff] }
 0x1e9   : > { %v7484_v29 = vadd.f32 %v7228_v13, %v10655_v1  ;;  %v2014_v38 = vrot.slane %v1986_v39, %v8829_v33  ;;  %v6343_v23 = vrot.slane %v3541_v46, %v8866_v51  ;;  %v6339_v18 = vrot.slane %v3527_v0, %v8866_v51  ;;  %v10967_v1 = vld [vmem:[#allocation7 + $0x88] sm:$0xff] }
 0x1ea   : > { %v3551_v27 = vcombine.high %v3541_v46, %v3541_v46  ;;  %7741 = vst [vmem:[%s9275_s20 + $0x3e8] sm:$0xff] %v7485_v5  ;;  %v7231_v10 = vmul.f32 %v6335_v60, %v767_v47  ;;  %v7230_v28 = vmul.f32 %v6331_v48, %v765_v35  ;;  %v3549_v25 = vcombine.high %v3527_v0, %v3527_v0 }
 0x1eb   : > { %7740 = vst [vmem:[%s9275_s20 + $0x3e0] sm:$0xff] %v7484_v29  ;;  %v3520_v49 = vcombine.high %v3518_v9, %v3518_v9  ;;  %v10970_v17 = vmul.f32 %v4879_v36, %v10492_v7  ;;  %v10973_v50 = vmul.f32 %v4875_v53, %v12696_v30  ;;  %v2016_v4 = vcombine.high %v10953_v59, %v10953_v59  ;;  %v442_v53 = vld [vmem:[%s8683_s4 + $0x5d0] sm:$0xff]  ;;  %v771_v39 = vpop.permute.xlu1 %770  ;;  %v445_v29 = vld [vmem:[%s8683_s4 + $0x5e8] sm:$0xff] }
 0x1ec   : > { %882 = vrot.lane.b32.xlu1 %v441_v41, %s8449_s22  ;;  %880 = vrot.lane.b32.xlu0 %v440_v19, %s8449_s22  ;;  %v2018_v8 = vcombine.high %v2014_v38, %v2014_v38  ;;  %v10980_v34 = vrot.slane %v2034_v16, %v8829_v33  ;;  %v7487_v21 = vadd.f32 %v7231_v10, %v10685_v37  ;;  %v769_v61 = vpop.permute.xlu0 %768  ;;  %v444_v41 = vld [vmem:[%s8683_s4 + $0x5e0] sm:$0xff] }
 0x1ed   : > { %v7486_v7 = vadd.f32 %v7230_v28, %v10678_v57  ;;  %v4899_v52 = vrot.slane %v10956_v15, %v8866_v51  ;;  %v6351_v32 = vrot.slane %v3551_v27, %v8866_v51  ;;  %v3534_v48 = vrot.slane %v3518_v9, %v8829_v33  ;;  %v12697_v27 = vld [vmem:[#allocation27_spill] sm:$0xff]  ;;  %v12698_v28 = vld [vmem:[#allocation28_spill] sm:$0xff] }
 0x1ee   : > { %v3560_v46 = vrot.slane %v10967_v1, %v8829_v33  ;;  %7743 = vst [vmem:[%s9275_s20 + $0x3f8] sm:$0xff] %v7487_v21  ;;  %v7233_v37 = vmul.f32 %v6343_v23, %v771_v39  ;;  %v7232_v57 = vmul.f32 %v6339_v18, %v769_v61  ;;  %v6347_v0 = vrot.slane %v3549_v25, %v8866_v51 }
 0x1ef   : > { %7742 = vst [vmem:[%s9275_s20 + $0x3f0] sm:$0xff] %v7486_v7  ;;  %v3548_v12 = vrot.slane %v3520_v49, %v8829_v33  ;;  %v4887_v13 = vrot.slane %v2014_v38, %v8866_v51  ;;  %v4883_v60 = vrot.slane %v10953_v59, %v8866_v51  ;;  %v4891_v9 = vrot.slane %v2016_v4, %v8866_v51  ;;  %v775_v59 = vpop.permute.xlu1 %774  ;;  %v12699_v49 = vld [vmem:[#allocation31_spill] sm:$0xff] }
 0x1f0   : > { %886 = vrot.lane.b32.xlu1 %v443_v62, %s8449_s22  ;;  %884 = vrot.lane.b32.xlu0 %v442_v53, %s8449_s22  ;;  %v4895_v3 = vrot.slane %v2018_v8, %v8866_v51  ;;  %v2019_v36 = vcombine.high %v10914_v24, %v10914_v24  ;;  %v7489_v16 = vadd.f32 %v7233_v37, %v10717_v11  ;;  %v773_v19 = vpop.permute.xlu0 %772  ;;  %v447_v7 = vld [vmem:[%s8683_s4 + $0x5f8] sm:$0xff]  ;;  %v446_v62 = vld [vmem:[%s8683_s4 + $0x5f0] sm:$0xff]  ;;  %v12700_v53 = vld [vmem:[#allocation29_spill] sm:$0xff] }
 0x1f1   : > { %v7488_v5 = vadd.f32 %v7232_v57, %v10700_v14  ;;  %v6355_v38 = vrot.slane %v3534_v48, %v8866_v51  ;;  %v3550_v47 = vcombine.high %v3534_v48, %v3534_v48  ;;  %v3568_v35 = vcombine.high %v3560_v46, %v3560_v46 }
 0x1f2   : > { %v3553_v23 = vcombine.high %v10967_v1, %v10967_v1  ;;  %7745 = vst [vmem:[%s9275_s20 + $0x408] sm:$0xff] %v7489_v16  ;;  %v7235_v24 = vmul.f32 %v6351_v32, %v775_v59  ;;  %v7234_v18 = vmul.f32 %v6347_v0, %v773_v19  ;;  %v6359_v11 = vrot.slane %v3548_v12, %v8866_v51 }
 0x1f3   : > { %7744 = vst [vmem:[%s9275_s20 + $0x400] sm:$0xff] %v7488_v5  ;;  %v3552_v14 = vcombine.high %v3548_v12, %v3548_v12  ;;  %v11016_v10 = vmul.f32 %v4887_v13, %v12697_v27  ;;  %v11019_v25 = vmul.f32 %v4883_v60, %v12698_v28  ;;  %v11022_v30 = vmul.f32 %v4891_v9, %v12699_v49  ;;  %v12701_v60 = vld [vmem:[#allocation33_spill] sm:$0xff] }
 0x1f4   : > { %890 = vrot.lane.b32.xlu1 %v445_v29, %s8449_s22  ;;  %888 = vrot.lane.b32.xlu0 %v444_v41, %s8449_s22  ;;  %v2066_v1 = vcombine.high %v10980_v34, %v10980_v34  ;;  %v2033_v4 = vrot.slane %v2019_v36, %v8829_v33  ;;  %v7491_v8 = vadd.f32 %v7235_v24, %v10728_v31  ;;  %v779_v61 = vpop.permute.xlu1 %778  ;;  %v777_v32 = vpop.permute.xlu0 %776  ;;  %v448_v29 = vld [vmem:[%s8683_s4 + $0x600] sm:$0xff] }
 0x1f5   : > { %v7490_v21 = vadd.f32 %v7234_v18, %v10749_v44  ;;  %v11034_v39 = vmul.f32 %v4895_v3, %v12700_v53  ;;  %v3590_v48 = vrot.slane %v3568_v35, %v8829_v33  ;;  %v3576_v37 = vrot.slane %v3560_v46, %v8829_v33 }
 0x1f6   : > { %v3567_v57 = vrot.slane %v3553_v23, %v8829_v33  ;;  %7747 = vst [vmem:[%s9275_s20 + $0x418] sm:$0xff] %v7491_v8  ;;  %v7237_v31 = vmul.f32 %v6359_v11, %v779_v61  ;;  %v7236_v0 = vmul.f32 %v6355_v38, %v777_v32  ;;  %v6367_v44 = vrot.slane %v3552_v14, %v8866_v51  ;;  %v12702_v14 = vld [vmem:[#allocation35_spill] sm:$0xff]  ;;  %v450_v8 = vld [vmem:[%s8683_s4 + $0x610] sm:$0xff] }
 0x1f7   : > { %7746 = vst [vmem:[%s9275_s20 + $0x410] sm:$0xff] %v7490_v21  ;;  %v6363_v12 = vrot.slane %v3550_v47, %v8866_v51  ;;  %v4903_v13 = vrot.slane %v10980_v34, %v8866_v51  ;;  %v11046_v9 = vmul.f32 %v4899_v52, %v12701_v60  ;;  %v2064_v46 = vcombine.high %v10956_v15, %v10956_v15  ;;  %v449_v34 = vld [vmem:[%s8683_s4 + $0x608] sm:$0xff]  ;;  %v2674_v52 = vld [vmem:[#allocation7 + $0x90] sm:$0xff] }
 0x1f8   : > { %894 = vrot.lane.b32.xlu1 %v447_v7, %s8449_s22  ;;  %892 = vrot.lane.b32.xlu0 %v446_v62, %s8449_s22  ;;  %v4911_v3 = vrot.slane %v2066_v1, %v8866_v51  ;;  %v2035_v36 = vcombine.high %v2033_v4, %v2033_v4  ;;  %v7493_v16 = vadd.f32 %v7237_v31, %v10777_v20  ;;  %v783_v41 = vpop.permute.xlu1 %782  ;;  %v781_v59 = vpop.permute.xlu0 %780  ;;  %v12703_v21 = vld [vmem:[#allocation30_spill] sm:$0xff] }
 0x1f9   : > { %v7492_v5 = vadd.f32 %v7236_v0, %v10761_v63  ;;  %v6375_v15 = vrot.slane %v3590_v48, %v8866_v51  ;;  %v6371_v19 = vrot.slane %v3576_v37, %v8866_v51  ;;  %v3598_v38 = vcombine.high %v3576_v37, %v3576_v37  ;;  %v12704_v0 = vld [vmem:[#allocation32_spill] sm:$0xff] }
 0x1fa   : > { %v3569_v47 = vcombine.high %v3567_v57, %v3567_v57  ;;  %7749 = vst [vmem:[%s9275_s20 + $0x428] sm:$0xff] %v7493_v16  ;;  %v7239_v35 = vmul.f32 %v6367_v44, %v783_v41  ;;  %v7238_v23 = vmul.f32 %v6363_v12, %v781_v59  ;;  %v3600_v20 = vcombine.high %v3590_v48, %v3590_v48  ;;  %v452_v16 = vld [vmem:[%s8683_s4 + $0x620] sm:$0xff] }
 0x1fb   : > { %7748 = vst [vmem:[%s9275_s20 + $0x420] sm:$0xff] %v7492_v5  ;;  %v3602_v24 = vcombine.high %v2674_v52, %v2674_v52  ;;  %v4907_v63 = vrot.slane %v2064_v46, %v8866_v51  ;;  %v11063_v18 = vrot.slane %v2033_v4, %v8829_v33  ;;  %v3609_v11 = vrot.slane %v2674_v52, %v8829_v33  ;;  %v451_v4 = vld [vmem:[%s8683_s4 + $0x618] sm:$0xff] }
 0x1fc   : > { %898 = vrot.lane.b32.xlu1 %v449_v34, %s8449_s22  ;;  %896 = vrot.lane.b32.xlu0 %v448_v29, %s8449_s22  ;;  %v11069_v27 = vmul.f32 %v4903_v13, %v12702_v14  ;;  %v11072_v28 = vrot.slane %v2035_v36, %v8829_v33  ;;  %v7495_v49 = vadd.f32 %v7239_v35, %v10792_v26  ;;  %v787_v62 = vpop.permute.xlu1 %786  ;;  %v785_v53 = vpop.permute.xlu0 %784  ;;  %v2675_v13 = vld [vmem:[#allocation7 + $0x98] sm:$0xff]  ;;  %v453_v36 = vld [vmem:[%s8683_s4 + $0x628] sm:$0xff] }
 0x1fd   : > { %v7494_v1 = vadd.f32 %v7238_v23, %v10799_v22  ;;  %v11079_v7 = vmul.f32 %v4911_v3, %v12703_v21  ;;  %v6379_v61 = vrot.slane %v3598_v38, %v8866_v51  ;;  %v3597_v32 = vrot.slane %v3569_v47, %v8829_v33  ;;  %v12705_v47 = vld [vmem:[#allocation37_spill] sm:$0xff] }
 0x1fe   : > { %v3583_v48 = vrot.slane %v3567_v57, %v8829_v33  ;;  %7751 = vst [vmem:[%s9275_s20 + $0x438] sm:$0xff] %v7495_v49  ;;  %v7241_v26 = vmul.f32 %v6375_v15, %v787_v62  ;;  %v7240_v37 = vmul.f32 %v6371_v19, %v785_v53  ;;  %v6383_v22 = vrot.slane %v3600_v20, %v8866_v51  ;;  %v455_v49 = vld [vmem:[%s8683_s4 + $0x638] sm:$0xff] }
 0x1ff   : > { %7750 = vst [vmem:[%s9275_s20 + $0x430] sm:$0xff] %v7494_v1  ;;  %v3616_v31 = vrot.slane %v3602_v24, %v8829_v33  ;;  %v11089_v44 = vmul.f32 %v4907_v63, %v12704_v0  ;;  %v4915_v12 = vrot.slane %v11063_v18, %v8866_v51  ;;  %v3617_v57 = vcombine.high %v3609_v11, %v3609_v11  ;;  %v12706_v24 = vld [vmem:[#allocation34_spill] sm:$0xff] }
 0x200   : > { %902 = vrot.lane.b32.xlu1 %v451_v4, %s8449_s22  ;;  %900 = vrot.lane.b32.xlu0 %v450_v8, %s8449_s22  ;;  %v4919_v60 = vrot.slane %v11072_v28, %v8866_v51  ;;  %v7497_v46 = vadd.f32 %v7241_v26, %v10815_v42  ;;  %v7496_v3 = vadd.f32 %v7240_v37, %v10834_v2  ;;  %v791_v34 = vpop.permute.xlu1 %790  ;;  %v454_v1 = vld [vmem:[%s8683_s4 + $0x630] sm:$0xff] }
 0x201   : > { %v11102_v5 = vrot.slane %v3609_v11, %v8829_v33  ;;  %v789_v29 = vpop.permute.xlu0 %788  ;;  %v6391_v52 = vrot.slane %v3597_v32, %v8866_v51  ;;  %v6387_v41 = vrot.slane %v3583_v48, %v8866_v51  ;;  %v3601_v59 = vcombine.high %v3597_v32, %v3597_v32 }
 0x202   : > { %v3599_v15 = vcombine.high %v3583_v48, %v3583_v48  ;;  %7753 = vst [vmem:[%s9275_s20 + $0x448] sm:$0xff] %v7497_v46  ;;  %7752 = vst [vmem:[%s9275_s20 + $0x440] sm:$0xff] %v7496_v3  ;;  %v7243_v42 = vmul.f32 %v6383_v22, %v791_v34  ;;  %v7242_v19 = vmul.f32 %v6379_v61, %v789_v29  ;;  %v11154_v3 = vld [vmem:[#allocation5 + $0xa0] sm:$0xff] }
 0x203   : > { %v3618_v2 = vcombine.high %v3616_v31, %v3616_v31  ;;  %v3658_v38 = vrot.slane %v2675_v13, %v8829_v33  ;;  %v11110_v35 = vmul.f32 %v4915_v12, %v12705_v47  ;;  %v11115_v23 = vrot.slane %v3617_v57, %v8829_v33  ;;  %v457_v57 = vld [vmem:[%s8683_s4 + $0x648] sm:$0xff]  ;;  %v459_v47 = vld [vmem:[%s8683_s4 + $0x658] sm:$0xff] }
 0x204   : > { %906 = vrot.lane.b32.xlu1 %v453_v36, %s8449_s22  ;;  %904 = vrot.lane.b32.xlu0 %v452_v16, %s8449_s22  ;;  %v3651_v20 = vcombine.high %v2675_v13, %v2675_v13  ;;  %v11118_v63 = vmul.f32 %v4919_v60, %v12706_v24  ;;  %v7499_v11 = vadd.f32 %v7243_v42, %v10841_v6  ;;  %v795_v8 = vpop.permute.xlu1 %794  ;;  %v456_v13 = vld [vmem:[%s8683_s4 + $0x640] sm:$0xff] }
 0x205   : > { %v7498_v14 = vadd.f32 %v7242_v19, %v10859_v43  ;;  %v3647_v4 = vcombine.high %v11102_v5, %v11102_v5  ;;  %v793_v21 = vpop.permute.xlu0 %792  ;;  %v6399_v62 = vrot.slane %v3601_v59, %v8866_v51  ;;  %v6395_v53 = vrot.slane %v3599_v15, %v8866_v51 }
 0x206   : > { %v3649_v61 = vcombine.high %v11115_v23, %v11115_v23  ;;  %v11131_v6 = vrot.slane %v3616_v31, %v8829_v33  ;;  %7755 = vst [vmem:[%s9275_s20 + $0x458] sm:$0xff] %v7499_v11  ;;  %v7245_v43 = vmul.f32 %v6391_v52, %v795_v8  ;;  %v7244_v32 = vmul.f32 %v6387_v41, %v793_v21  ;;  %v11184_v11 = vld [vmem:[#allocation7 + $0xa0] sm:$0xff] }
 0x207   : > { %7754 = vst [vmem:[%s9275_s20 + $0x450] sm:$0xff] %v7498_v14  ;;  %v11136_v48 = vrot.slane %v3618_v2, %v8829_v33  ;;  %v3666_v26 = vcombine.high %v3658_v38, %v3658_v38  ;;  %v6403_v37 = vrot.slane %v11102_v5, %v8866_v51  ;;  %v3665_v31 = vrot.slane %v3651_v20, %v8829_v33 }
 0x208   : > { %910 = vrot.lane.b32.xlu1 %v455_v49, %s8449_s22  ;;  %908 = vrot.lane.b32.xlu0 %v454_v1, %s8449_s22  ;;  %v3648_v22 = vcombine.high %v11131_v6, %v11131_v6  ;;  %v7501_v0 = vadd.f32 %v7245_v43, %v10887_v40  ;;  %v7500_v12 = vadd.f32 %v7244_v32, %v10869_v56  ;;  %v799_v36 = vpop.permute.xlu1 %798 }
 0x209   : > { %v6407_v60 = vrot.slane %v11115_v23, %v8866_v51  ;;  %v11152_v46 = vrot.slane %v3658_v38, %v8829_v33  ;;  %v797_v16 = vpop.permute.xlu0 %796  ;;  %v6415_v5 = vrot.slane %v3649_v61, %v8866_v51  ;;  %v6411_v34 = vrot.slane %v3647_v4, %v8866_v51  ;;  %v458_v23 = vld [vmem:[%s8683_s4 + $0x650] sm:$0xff] }
 0x20a   : > { %v6419_v56 = vrot.slane %v11131_v6, %v8866_v51  ;;  %v3650_v40 = vcombine.high %v11136_v48, %v11136_v48  ;;  %7757 = vst [vmem:[%s9275_s20 + $0x468] sm:$0xff] %v7501_v0  ;;  %7756 = vst [vmem:[%s9275_s20 + $0x460] sm:$0xff] %v7500_v12  ;;  %v7247_v29 = vmul.f32 %v6399_v62, %v799_v36 }
 0x20b   : > { %v7246_v52 = vmul.f32 %v6395_v53, %v797_v16  ;;  %v6423_v41 = vrot.slane %v11136_v48, %v8866_v51  ;;  %v11167_v59 = vrot.slane %v3666_v26, %v8829_v33  ;;  %v11172_v15 = vrot.slane %v3648_v22, %v8866_v51  ;;  %v461_v26 = vld [vmem:[%s8683_s4 + $0x668] sm:$0xff] }
 0x20c   : > { %914 = vrot.lane.b32.xlu1 %v457_v57, %s8449_s22  ;;  %912 = vrot.lane.b32.xlu0 %v456_v13, %s8449_s22  ;;  %v3667_v42 = vcombine.high %v3665_v31, %v3665_v31  ;;  %v2075_v19 = vrot.slane %v11154_v3, %v8829_v33  ;;  %v7503_v2 = vadd.f32 %v7247_v29, %v10896_v45  ;;  %v803_v14 = vpop.permute.xlu1 %802 }
 0x20d   : > { %v7502_v38 = vadd.f32 %v7246_v52, %v10907_v55  ;;  %v6435_v20 = vrot.slane %v11152_v46, %v8866_v51  ;;  %v3696_v24 = vcombine.high %v11152_v46, %v11152_v46  ;;  %v801_v49 = vpop.permute.xlu0 %800  ;;  %v11187_v1 = vrot.slane %v3650_v40, %v8866_v51 }
 0x20e   : > { %v3698_v45 = vcombine.high %v11167_v59, %v11167_v59  ;;  %v2067_v55 = vcombine.high %v11072_v28, %v11072_v28  ;;  %v2065_v4 = vcombine.high %v11063_v18, %v11063_v18  ;;  %7759 = vst [vmem:[%s9275_s20 + $0x478] sm:$0xff] %v7503_v2  ;;  %v7249_v8 = vmul.f32 %v6407_v60, %v803_v14  ;;  %v462_v2 = vld [vmem:[%s8683_s4 + $0x670] sm:$0xff] }
 0x20f   : > { %7758 = vst [vmem:[%s9275_s20 + $0x470] sm:$0xff] %v7502_v38  ;;  %v7248_v21 = vmul.f32 %v6403_v37, %v801_v49  ;;  %v6439_v62 = vrot.slane %v11167_v59, %v8866_v51  ;;  %v11200_v53 = vrot.slane %v3665_v31, %v8829_v33  ;;  %v11205_v28 = vrot.slane %v3667_v42, %v8829_v33  ;;  %v460_v37 = vld [vmem:[%s8683_s4 + $0x660] sm:$0xff]  ;;  %v463_v42 = vld [vmem:[%s8683_s4 + $0x678] sm:$0xff]  ;;  %v8173_v49 = vld [vmem:[%s8683_s4 + $0x4f0] sm:$0xff] }
 0x210   : > { %918 = vrot.lane.b32.xlu1 %v459_v47, %s8449_s22  ;;  %916 = vrot.lane.b32.xlu0 %v458_v23, %s8449_s22  ;;  %v2083_v18 = vcombine.high %v2075_v19, %v2075_v19  ;;  %v3707_v61 = vrot.slane %v11184_v11, %v8829_v33  ;;  %v7505_v43 = vadd.f32 %v7249_v8, %v10947_v54  ;;  %v807_v0 = vpop.permute.xlu1 %806 }
 0x211   : > { %v7504_v32 = vadd.f32 %v7248_v21, %v10932_v58  ;;  %v11214_v22 = vrot.slane %v3696_v24, %v8866_v51  ;;  %v2068_v31 = vcombine.high %v11154_v3, %v11154_v3  ;;  %v805_v12 = vpop.permute.xlu0 %804  ;;  %v11219_v57 = vrot.slane %v3698_v45, %v8866_v51  ;;  %v8172_v24 = vld [vmem:[%s8683_s4 + $0x4f8] sm:$0xff] }
 0x212   : > { %v4927_v13 = vrot.slane %v2067_v55, %v8866_v51  ;;  %v3697_v54 = vcombine.high %v11200_v53, %v11200_v53  ;;  %v4923_v58 = vrot.slane %v2065_v4, %v8866_v51  ;;  %7761 = vst [vmem:[%s9275_s20 + $0x488] sm:$0xff] %v7505_v43  ;;  %v7251_v60 = vmul.f32 %v6415_v5, %v807_v0 }
 0x213   : > { %7760 = vst [vmem:[%s9275_s20 + $0x480] sm:$0xff] %v7504_v32  ;;  %v7250_v36 = vmul.f32 %v6411_v34, %v805_v12  ;;  %v6451_v3 = vrot.slane %v11200_v53, %v8866_v51  ;;  %v2091_v16 = vrot.slane %v2075_v19, %v8829_v33  ;;  %v6455_v40 = vrot.slane %v11205_v28, %v8866_v51 }
 0x214   : > { %922 = vrot.lane.b32.xlu1 %v461_v26, %s8449_s22  ;;  %920 = vrot.lane.b32.xlu0 %v460_v37, %s8449_s22  ;;  %v2105_v29 = vrot.slane %v2083_v18, %v8829_v33  ;;  %v3715_v52 = vcombine.high %v3707_v61, %v3707_v61  ;;  %v7507_v5 = vadd.f32 %v7251_v60, %v10970_v17  ;;  %v811_v47 = vpop.permute.xlu1 %810  ;;  %v465_v18 = vld [vmem:[%s8683_s4 + $0x688] sm:$0xff] }
 0x215   : > { %v7506_v34 = vadd.f32 %v7250_v36, %v10973_v50  ;;  %v3699_v19 = vcombine.high %v11205_v28, %v11205_v28  ;;  %v2082_v38 = vrot.slane %v2068_v31, %v8829_v33  ;;  %v809_v23 = vpop.permute.xlu0 %808  ;;  %v11243_v14 = vmul.f32 %v8172_v24, %v4927_v13  ;;  %v8175_v36 = vld [vmem:[%s8683_s4 + $0x508] sm:$0xff] }
 0x216   : > { %v11246_v45 = vmul.f32 %v8173_v49, %v4923_v58  ;;  %v11249_v17 = vrot.slane %v3697_v54, %v8866_v51  ;;  %v3700_v50 = vcombine.high %v11184_v11, %v11184_v11  ;;  %7763 = vst [vmem:[%s9275_s20 + $0x498] sm:$0xff] %v7507_v5  ;;  %v7253_v55 = vmul.f32 %v6423_v41, %v811_v47  ;;  %v8174_v54 = vld [vmem:[%s8683_s4 + $0x500] sm:$0xff]  ;;  %v11309_v47 = vld [vmem:[#allocation7 + $0xa8] sm:$0xff] }
 0x217   : > { %7762 = vst [vmem:[%s9275_s20 + $0x490] sm:$0xff] %v7506_v34  ;;  %v7252_v4 = vmul.f32 %v6419_v56, %v809_v23  ;;  %v11262_v8 = vrot.slane %v3707_v61, %v8829_v33  ;;  %v4931_v21 = vrot.slane %v2091_v16, %v8866_v51  ;;  %v11268_v11 = vrot.slane %v3715_v52, %v8829_v33  ;;  %v464_v61 = vld [vmem:[%s8683_s4 + $0x680] sm:$0xff]  ;;  %v467_v34 = vld [vmem:[%s8683_s4 + $0x698] sm:$0xff] }
 0x218   : > { %926 = vrot.lane.b32.xlu1 %v463_v42, %s8449_s22  ;;  %924 = vrot.lane.b32.xlu0 %v462_v2, %s8449_s22  ;;  %v4935_v48 = vrot.slane %v2105_v29, %v8866_v51  ;;  %v2115_v41 = vcombine.high %v2105_v29, %v2105_v29  ;;  %v7509_v6 = vadd.f32 %v7253_v55, %v11016_v10  ;;  %v466_v42 = vld [vmem:[%s8683_s4 + $0x690] sm:$0xff] }
 0x219   : > { %v7508_v56 = vadd.f32 %v7252_v4, %v11019_v25  ;;  %v2113_v43 = vcombine.high %v2091_v16, %v2091_v16  ;;  %v2084_v32 = vcombine.high %v2082_v38, %v2082_v38  ;;  %v815_v26 = vpop.permute.xlu1 %814  ;;  %v813_v37 = vpop.permute.xlu0 %812  ;;  %v11276_v31 = vrot.slane %v3699_v19, %v8866_v51 }
 0x21a   : > { %v3747_v0 = vcombine.high %v11268_v11, %v11268_v11  ;;  %v3745_v12 = vcombine.high %v11262_v8, %v11262_v8  ;;  %v3714_v10 = vrot.slane %v3700_v50, %v8829_v33  ;;  %7765 = vst [vmem:[%s9275_s20 + $0x4a8] sm:$0xff] %v7509_v6  ;;  %v7255_v25 = vmul.f32 %v11187_v1, %v815_v26  ;;  %v469_v6 = vld [vmem:[%s8683_s4 + $0x6a8] sm:$0xff] }
 0x21b   : > { %7764 = vst [vmem:[%s9275_s20 + $0x4a0] sm:$0xff] %v7508_v56  ;;  %v7254_v13 = vmul.f32 %v11172_v15, %v813_v37  ;;  %v11288_v58 = vmul.f32 %v8174_v54, %v4931_v21  ;;  %v6467_v60 = vrot.slane %v11262_v8, %v8866_v51  ;;  %v11295_v16 = vmul.f32 %v8175_v36, %v4935_v48  ;;  %v11301_v15 = vld [vmem:[#allocation5 + $0xa8] sm:$0xff]  ;;  %v8176_v48 = vld [vmem:[%s8683_s4 + $0x518] sm:$0xff]  ;;  %v468_v56 = vld [vmem:[%s8683_s4 + $0x6a0] sm:$0xff] }
 0x21c   : > { %930 = vrot.lane.b32.xlu1 %v465_v18, %s8449_s22  ;;  %928 = vrot.lane.b32.xlu0 %v464_v61, %s8449_s22  ;;  %v4943_v29 = vrot.slane %v2115_v41, %v8866_v51  ;;  %v11299_v1 = vrot.slane %v2082_v38, %v8829_v33  ;;  %v7511_v52 = vadd.f32 %v7255_v25, %v11034_v39  ;;  %v8177_v18 = vld [vmem:[%s8683_s4 + $0x510] sm:$0xff]  ;;  %v8178_v54 = vld [vmem:[%s8683_s4 + $0x520] sm:$0xff] }
 0x21d   : > { %v7510_v5 = vadd.f32 %v7254_v13, %v11022_v30  ;;  %v4939_v2 = vrot.slane %v2113_v43, %v8866_v51  ;;  %v2112_v19 = vrot.slane %v2084_v32, %v8829_v33  ;;  %v819_v23 = vpop.permute.xlu1 %818  ;;  %v817_v24 = vpop.permute.xlu0 %816  ;;  %v6471_v38 = vrot.slane %v11268_v11, %v8866_v51 }
 0x21e   : > { %v11314_v49 = vrot.slane %v3747_v0, %v8866_v51  ;;  %v11317_v39 = vrot.slane %v3745_v12, %v8866_v51  ;;  %v3716_v30 = vcombine.high %v3714_v10, %v3714_v10  ;;  %7767 = vst [vmem:[%s9275_s20 + $0x4b8] sm:$0xff] %v7511_v52  ;;  %v7257_v50 = vmul.f32 %v6439_v62, %v819_v23  ;;  %v470_v52 = vld [vmem:[%s8683_s4 + $0x6b0] sm:$0xff] }
 0x21f   : > { %7766 = vst [vmem:[%s9275_s20 + $0x4b0] sm:$0xff] %v7510_v5  ;;  %v7256_v55 = vmul.f32 %v6435_v20, %v817_v24  ;;  %v11328_v4 = vrot.slane %v3714_v10, %v8829_v33  ;;  %v2124_v21 = vrot.slane %v11301_v15, %v8829_v33  ;;  %v11335_v41 = vmul.f32 %v8176_v48, %v4943_v29  ;;  %v8179_v5 = vld [vmem:[%s8683_s4 + $0x528] sm:$0xff] }
 0x220   : > { %934 = vrot.lane.b32.xlu1 %v467_v34, %s8449_s22  ;;  %932 = vrot.lane.b32.xlu0 %v466_v42, %s8449_s22  ;;  %v4947_v59 = vrot.slane %v11299_v1, %v8866_v51  ;;  %v3756_v46 = vrot.slane %v11309_v47, %v8829_v33  ;;  %v7513_v20 = vadd.f32 %v7257_v50, %v11069_v27 }
 0x221   : > { %v7512_v62 = vadd.f32 %v7256_v55, %v11046_v9  ;;  %v11346_v61 = vmul.f32 %v8177_v18, %v4939_v2  ;;  %v4951_v43 = vrot.slane %v2112_v19, %v8866_v51  ;;  %v823_v32 = vpop.permute.xlu1 %822  ;;  %v11350_v37 = vrot.slane %v3716_v30, %v8829_v33 }
 0x222   : > { %v821_v26 = vpop.permute.xlu0 %820  ;;  %v2116_v0 = vcombine.high %v2112_v19, %v2112_v19  ;;  %v2114_v12 = vcombine.high %v11299_v1, %v11299_v1  ;;  %v2117_v9 = vcombine.high %v11301_v15, %v11301_v15  ;;  %7769 = vst [vmem:[%s9275_s20 + $0x4c8] sm:$0xff] %v7513_v20  ;;  %v7259_v27 = vmul.f32 %v11219_v57, %v823_v32  ;;  %v471_v15 = vld [vmem:[%s8683_s4 + $0x6b8] sm:$0xff]  ;;  %v472_v20 = vld [vmem:[%s8683_s4 + $0x6c0] sm:$0xff] }
 0x223   : > { %7768 = vst [vmem:[%s9275_s20 + $0x4c0] sm:$0xff] %v7512_v62  ;;  %v7258_v10 = vmul.f32 %v11214_v22, %v821_v26  ;;  %v6483_v25 = vrot.slane %v11328_v4, %v8866_v51  ;;  %v2132_v13 = vcombine.high %v2124_v21, %v2124_v21  ;;  %v11365_v36 = vmul.f32 %v8178_v54, %v4947_v59  ;;  %v8181_v26 = vld [vmem:[%s8683_s4 + $0x530] sm:$0xff]  ;;  %v475_v54 = vld [vmem:[%s8683_s4 + $0x6d8] sm:$0xff] }
 0x224   : > { %938 = vrot.lane.b32.xlu1 %v469_v6, %s8449_s22  ;;  %936 = vrot.lane.b32.xlu0 %v468_v56, %s8449_s22  ;;  %v3748_v29 = vcombine.high %v11350_v37, %v11350_v37  ;;  %v3764_v1 = vcombine.high %v3756_v46, %v3756_v46  ;;  %v7515_v57 = vadd.f32 %v7259_v27, %v11079_v7 }
 0x225   : > { %v7514_v22 = vadd.f32 %v7258_v10, %v11089_v44  ;;  %v11374_v34 = vmul.f32 %v8179_v5, %v4951_v43  ;;  %v3746_v42 = vcombine.high %v11328_v4, %v11328_v4  ;;  %v827_v2 = vpop.permute.xlu1 %826  ;;  %v6487_v23 = vrot.slane %v11350_v37, %v8866_v51  ;;  %v8180_v43 = vld [vmem:[%s8683_s4 + $0x538] sm:$0xff] }
 0x226   : > { %v825_v19 = vpop.permute.xlu0 %824  ;;  %v4959_v24 = vrot.slane %v2116_v0, %v8866_v51  ;;  %v4955_v7 = vrot.slane %v2114_v12, %v8866_v51  ;;  %v2131_v44 = vrot.slane %v2117_v9, %v8829_v33  ;;  %7771 = vst [vmem:[%s9275_s20 + $0x4d8] sm:$0xff] %v7515_v57  ;;  %v7261_v30 = vmul.f32 %v6455_v40, %v827_v2 }
 0x227   : > { %7770 = vst [vmem:[%s9275_s20 + $0x4d0] sm:$0xff] %v7514_v22  ;;  %v7260_v50 = vmul.f32 %v6451_v3, %v825_v19  ;;  %v2154_v55 = vrot.slane %v2132_v13, %v8829_v33  ;;  %v3749_v48 = vcombine.high %v11309_v47, %v11309_v47  ;;  %v11397_v59 = vrot.slane %v3748_v29, %v8866_v51  ;;  %v473_v47 = vld [vmem:[%s8683_s4 + $0x6c8] sm:$0xff]  ;;  %v474_v29 = vld [vmem:[%s8683_s4 + $0x6d0] sm:$0xff] }
 0x228   : > { %942 = vrot.lane.b32.xlu1 %v471_v15, %s8449_s22  ;;  %940 = vrot.lane.b32.xlu0 %v470_v52, %s8449_s22  ;;  %v11400_v28 = vrot.slane %v3764_v1, %v8829_v33  ;;  %v2140_v53 = vrot.slane %v2124_v21, %v8829_v33  ;;  %v7517_v3 = vadd.f32 %v7261_v30, %v11118_v63  ;;  %v11438_v22 = vld [vmem:[#allocation5 + $0xb0] sm:$0xff] }
 0x229   : > { %v7516_v40 = vadd.f32 %v7260_v50, %v11110_v35  ;;  %v11408_v62 = vrot.slane %v3746_v42, %v8866_v51  ;;  %v11411_v6 = vrot.slane %v3756_v46, %v8829_v33  ;;  %v11414_v32 = vmul.f32 %v8180_v43, %v4959_v24  ;;  %v8182_v24 = vld [vmem:[%s8683_s4 + $0x548] sm:$0xff] }
 0x22a   : > { %v831_v56 = vpop.permute.xlu1 %830  ;;  %v829_v18 = vpop.permute.xlu0 %828  ;;  %v11417_v21 = vmul.f32 %v8181_v26, %v4955_v7  ;;  %v2164_v63 = vcombine.high %v2154_v55, %v2154_v55  ;;  %v2133_v35 = vcombine.high %v2131_v44, %v2131_v44  ;;  %7773 = vst [vmem:[%s9275_s20 + $0x4e8] sm:$0xff] %v7517_v3  ;;  %v4967_v46 = vrot.slane %v2154_v55, %v8866_v51  ;;  %v477_v55 = vld [vmem:[%s8683_s4 + $0x6e8] sm:$0xff] }
 0x22b   : > { %7772 = vst [vmem:[%s9275_s20 + $0x4e0] sm:$0xff] %v7516_v40  ;;  %v7263_v0 = vmul.f32 %v11276_v31, %v831_v56  ;;  %v7262_v12 = vmul.f32 %v11249_v17, %v829_v18  ;;  %v3763_v9 = vrot.slane %v3749_v48, %v8829_v33  ;;  %v6503_v27 = vrot.slane %v11400_v28, %v8866_v51  ;;  %v476_v48 = vld [vmem:[%s8683_s4 + $0x6e0] sm:$0xff] }
 0x22c   : > { %946 = vrot.lane.b32.xlu1 %v473_v47, %s8449_s22  ;;  %944 = vrot.lane.b32.xlu0 %v472_v20, %s8449_s22  ;;  %v4963_v10 = vrot.slane %v2140_v53, %v8866_v51  ;;  %v2162_v13 = vcombine.high %v2140_v53, %v2140_v53  ;;  %v6499_v1 = vrot.slane %v11411_v6, %v8866_v51  ;;  %v8184_v20 = vld [vmem:[%s8683_s4 + $0x558] sm:$0xff] }
 0x22d   : > { %v7519_v31 = vadd.f32 %v7263_v0, %v11243_v14  ;;  %v7518_v17 = vadd.f32 %v7262_v12, %v11246_v45  ;;  %v3796_v57 = vcombine.high %v11400_v28, %v11400_v28  ;;  %v4975_v5 = vrot.slane %v2164_v63, %v8866_v51  ;;  %v11492_v0 = vld [vmem:[#allocation7 + $0xb0] sm:$0xff] }
 0x22e   : > { %v835_v15 = vpop.permute.xlu1 %834  ;;  %v833_v52 = vpop.permute.xlu0 %832  ;;  %v3794_v14 = vcombine.high %v11411_v6, %v11411_v6  ;;  %v2161_v45 = vrot.slane %v2133_v35, %v8829_v33  ;;  %v11445_v42 = vrot.slane %v2131_v44, %v8829_v33  ;;  %v11456_v7 = vmul.f32 %v8182_v24, %v4967_v46  ;;  %v8183_v44 = vld [vmem:[%s8683_s4 + $0x540] sm:$0xff]  ;;  %v8185_v12 = vld [vmem:[%s8683_s4 + $0x550] sm:$0xff]  ;;  %v481_v24 = vld [vmem:[%s8683_s4 + $0x708] sm:$0xff] }
 0x22f   : > { %7775 = vst [vmem:[%s9275_s20 + $0x4f8] sm:$0xff] %v7519_v31  ;;  %7774 = vst [vmem:[%s9275_s20 + $0x4f0] sm:$0xff] %v7518_v17  ;;  %v7265_v2 = vmul.f32 %v6471_v38, %v835_v15  ;;  %v7264_v19 = vmul.f32 %v6467_v60, %v833_v52  ;;  %v3765_v30 = vcombine.high %v3763_v9, %v3763_v9  ;;  %v478_v31 = vld [vmem:[%s8683_s4 + $0x6f0] sm:$0xff]  ;;  %v8186_v15 = vld [vmem:[%s8683_s4 + $0x568] sm:$0xff] }
 0x230   : > { %950 = vrot.lane.b32.xlu1 %v475_v54, %s8449_s22  ;;  %948 = vrot.lane.b32.xlu0 %v474_v29, %s8449_s22  ;;  %v11461_v50 = vmul.f32 %v8183_v44, %v4963_v10  ;;  %v4971_v11 = vrot.slane %v2162_v13, %v8866_v51  ;;  %v2173_v8 = vrot.slane %v11438_v22, %v8829_v33  ;;  %v479_v13 = vld [vmem:[%s8683_s4 + $0x6f8] sm:$0xff] }
 0x231   : > { %v7521_v60 = vadd.f32 %v7265_v2, %v11295_v16  ;;  %v7520_v38 = vadd.f32 %v7264_v19, %v11288_v58  ;;  %v11471_v53 = vrot.slane %v3796_v57, %v8866_v51  ;;  %v2165_v3 = vcombine.high %v2161_v45, %v2161_v45  ;;  %v8188_v44 = vld [vmem:[%s8683_s4 + $0x578] sm:$0xff] }
 0x232   : > { %v839_v40 = vpop.permute.xlu1 %838  ;;  %v837_v47 = vpop.permute.xlu0 %836  ;;  %v11474_v56 = vmul.f32 %v8184_v20, %v4975_v5  ;;  %v11477_v18 = vrot.slane %v3794_v14, %v8866_v51  ;;  %v4983_v43 = vrot.slane %v2161_v45, %v8866_v51  ;;  %v4979_v58 = vrot.slane %v11445_v42, %v8866_v51  ;;  %v8187_v5 = vld [vmem:[%s8683_s4 + $0x560] sm:$0xff] }
 0x233   : > { %7777 = vst [vmem:[%s9275_s20 + $0x508] sm:$0xff] %v7521_v60  ;;  %7776 = vst [vmem:[%s9275_s20 + $0x500] sm:$0xff] %v7520_v38  ;;  %v7267_v16 = vmul.f32 %v11314_v49, %v839_v40  ;;  %v7266_v26 = vmul.f32 %v11317_v39, %v837_v47  ;;  %v11487_v63 = vrot.slane %v3765_v30, %v8829_v33  ;;  %v480_v30 = vld [vmem:[%s8683_s4 + $0x700] sm:$0xff] }
 0x234   : > { %v11490_v35 = vrot.slane %v3763_v9, %v8829_v33  ;;  %954 = vrot.lane.b32.xlu1 %v477_v55, %s8449_s22  ;;  %952 = vrot.lane.b32.xlu0 %v476_v48, %s8449_s22  ;;  %v11497_v46 = vmul.f32 %v8185_v12, %v4971_v11  ;;  %v2163_v49 = vcombine.high %v11445_v42, %v11445_v42  ;;  %v482_v12 = vld [vmem:[%s8683_s4 + $0x710] sm:$0xff] }
 0x235   : > { %v2181_v39 = vcombine.high %v2173_v8, %v2173_v8  ;;  %v7523_v9 = vadd.f32 %v7267_v16, %v11335_v41  ;;  %v7522_v10 = vadd.f32 %v7266_v26, %v11346_v61  ;;  %v4991_v17 = vrot.slane %v2165_v3, %v8866_v51 }
 0x236   : > { %v3795_v54 = vcombine.high %v11490_v35, %v11490_v35  ;;  %v843_v29 = vpop.permute.xlu1 %842  ;;  %v841_v57 = vpop.permute.xlu0 %840  ;;  %v11509_v52 = vmul.f32 %v8186_v15, %v4983_v43  ;;  %v11512_v14 = vmul.f32 %v8187_v5, %v4979_v58  ;;  %v3805_v41 = vrot.slane %v11492_v0, %v8829_v33  ;;  %v8190_v5 = vld [vmem:[%s8683_s4 + $0x588] sm:$0xff] }
 0x237   : > { %v2166_v61 = vcombine.high %v11438_v22, %v11438_v22  ;;  %7779 = vst [vmem:[%s9275_s20 + $0x518] sm:$0xff] %v7523_v9  ;;  %7778 = vst [vmem:[%s9275_s20 + $0x510] sm:$0xff] %v7522_v10  ;;  %v7269_v45 = vmul.f32 %v6487_v23, %v843_v29  ;;  %v7268_v42 = vmul.f32 %v6483_v25, %v841_v57 }
 0x238   : > { %v6519_v2 = vrot.slane %v11487_v63, %v8866_v51  ;;  %v6515_v19 = vrot.slane %v11490_v35, %v8866_v51  ;;  %958 = vrot.lane.b32.xlu1 %v479_v13, %s8449_s22  ;;  %956 = vrot.lane.b32.xlu0 %v478_v31, %s8449_s22  ;;  %v3797_v22 = vcombine.high %v11487_v63, %v11487_v63 }
 0x239   : > { %v4987_v37 = vrot.slane %v2163_v49, %v8866_v51  ;;  %v2203_v23 = vrot.slane %v2181_v39, %v8829_v33  ;;  %v7525_v4 = vadd.f32 %v7269_v45, %v11374_v34  ;;  %v7524_v25 = vadd.f32 %v7268_v42, %v11365_v36  ;;  %v11550_v36 = vld [vmem:[#allocation5 + $0xb8] sm:$0xff]  ;;  %v8189_v49 = vld [vmem:[%s8683_s4 + $0x570] sm:$0xff]  ;;  %v484_v45 = vld [vmem:[%s8683_s4 + $0x720] sm:$0xff] }
 0x23a   : > { %v11541_v11 = vmul.f32 %v8188_v44, %v4991_v17  ;;  %v11544_v60 = vrot.slane %v3795_v54, %v8866_v51  ;;  %v847_v38 = vpop.permute.xlu1 %846  ;;  %v845_v55 = vpop.permute.xlu0 %844  ;;  %v3813_v48 = vcombine.high %v3805_v41, %v3805_v41  ;;  %v2189_v3 = vrot.slane %v2173_v8, %v8829_v33 }
 0x23b   : > { %v2180_v40 = vrot.slane %v2166_v61, %v8829_v33  ;;  %v3798_v34 = vcombine.high %v11492_v0, %v11492_v0  ;;  %7781 = vst [vmem:[%s9275_s20 + $0x528] sm:$0xff] %v7525_v4  ;;  %7780 = vst [vmem:[%s9275_s20 + $0x520] sm:$0xff] %v7524_v25  ;;  %v7271_v47 = vmul.f32 %v11397_v59, %v847_v38  ;;  %v483_v0 = vld [vmem:[%s8683_s4 + $0x718] sm:$0xff]  ;;  %v485_v61 = vld [vmem:[%s8683_s4 + $0x728] sm:$0xff] }
 0x23c   : > { %v7270_v20 = vmul.f32 %v11408_v62, %v845_v55  ;;  %v11557_v43 = vrot.slane %v3805_v41, %v8829_v33  ;;  %v2213_v8 = vcombine.high %v2203_v23, %v2203_v23  ;;  %962 = vrot.lane.b32.xlu1 %v481_v24, %s8449_s22  ;;  %960 = vrot.lane.b32.xlu0 %v480_v30, %s8449_s22  ;;  %v8191_v25 = vld [vmem:[%s8683_s4 + $0x580] sm:$0xff]  ;;  %v8192_v38 = vld [vmem:[%s8683_s4 + $0x598] sm:$0xff] }
 0x23d   : > { %v11562_v58 = vrot.slane %v3797_v22, %v8866_v51  ;;  %v4999_v16 = vrot.slane %v2203_v23, %v8866_v51  ;;  %v2211_v26 = vcombine.high %v2189_v3, %v2189_v3  ;;  %v7527_v59 = vadd.f32 %v7271_v47, %v11414_v32 }
 0x23e   : > { %v7526_v62 = vadd.f32 %v7270_v20, %v11417_v21  ;;  %v11570_v39 = vmul.f32 %v8189_v49, %v4987_v37  ;;  %v11574_v9 = vrot.slane %v11550_v36, %v8829_v33  ;;  %v851_v10 = vpop.permute.xlu1 %850  ;;  %v849_v13 = vpop.permute.xlu0 %848  ;;  %v11577_v31 = vrot.slane %v3813_v48, %v8829_v33 }
 0x23f   : > { %v4995_v17 = vrot.slane %v2189_v3, %v8866_v51  ;;  %v2182_v32 = vcombine.high %v2180_v40, %v2180_v40  ;;  %v3812_v21 = vrot.slane %v3798_v34, %v8829_v33  ;;  %7783 = vst [vmem:[%s9275_s20 + $0x538] sm:$0xff] %v7527_v59  ;;  %v7273_v54 = vmul.f32 %v6503_v27, %v851_v10  ;;  %v11622_v3 = vld [vmem:[#allocation7 + $0xb8] sm:$0xff]  ;;  %v8193_v34 = vld [vmem:[%s8683_s4 + $0x590] sm:$0xff] }
 0x240   : > { %7782 = vst [vmem:[%s9275_s20 + $0x530] sm:$0xff] %v7526_v62  ;;  %v7272_v29 = vmul.f32 %v6499_v1, %v849_v13  ;;  %v6531_v57 = vrot.slane %v11557_v43, %v8866_v51  ;;  %v5007_v15 = vrot.slane %v2213_v8, %v8866_v51  ;;  %966 = vrot.lane.b32.xlu1 %v483_v0, %s8449_s22  ;;  %v487_v8 = vld [vmem:[%s8683_s4 + $0x738] sm:$0xff] }
 0x241   : > { %964 = vrot.lane.b32.xlu0 %v482_v12, %s8449_s22  ;;  %v11595_v41 = vmul.f32 %v8190_v5, %v4999_v16  ;;  %v3845_v28 = vcombine.high %v11577_v31, %v11577_v31  ;;  %v5003_v6 = vrot.slane %v2211_v26, %v8866_v51  ;;  %v7529_v27 = vadd.f32 %v7273_v54, %v11456_v7  ;;  %v486_v16 = vld [vmem:[%s8683_s4 + $0x730] sm:$0xff]  ;;  %v489_v54 = vld [vmem:[%s8683_s4 + $0x748] sm:$0xff] }
 0x242   : > { %v7528_v1 = vadd.f32 %v7272_v29, %v11461_v50  ;;  %v3843_v42 = vcombine.high %v11557_v43, %v11557_v43  ;;  %v2196_v22 = vrot.slane %v2180_v40, %v8829_v33  ;;  %v855_v37 = vpop.permute.xlu1 %854  ;;  %v853_v23 = vpop.permute.xlu0 %852  ;;  %v6535_v4 = vrot.slane %v11577_v31, %v8866_v51  ;;  %v488_v29 = vld [vmem:[%s8683_s4 + $0x740] sm:$0xff] }
 0x243   : > { %v11610_v24 = vmul.f32 %v8191_v25, %v4995_v17  ;;  %v2210_v7 = vrot.slane %v2182_v32, %v8829_v33  ;;  %v3814_v50 = vcombine.high %v3812_v21, %v3812_v21  ;;  %7785 = vst [vmem:[%s9275_s20 + $0x548] sm:$0xff] %v7529_v27  ;;  %v7275_v30 = vmul.f32 %v11471_v53, %v855_v37 }
 0x244   : > { %7784 = vst [vmem:[%s9275_s20 + $0x540] sm:$0xff] %v7528_v1  ;;  %v7274_v44 = vmul.f32 %v11477_v18, %v853_v23  ;;  %v11618_v55 = vmul.f32 %v8192_v38, %v5007_v15  ;;  %v2230_v48 = vcombine.high %v11574_v9, %v11574_v9  ;;  %970 = vrot.lane.b32.xlu1 %v485_v61, %s8449_s22  ;;  %v8194_v15 = vld [vmem:[%s8683_s4 + $0x5a0] sm:$0xff]  ;;  %v8195_v1 = vld [vmem:[%s8683_s4 + $0x5a8] sm:$0xff] }
 0x245   : > { %968 = vrot.lane.b32.xlu0 %v484_v45, %s8449_s22  ;;  %v11627_v40 = vrot.slane %v3845_v28, %v8866_v51  ;;  %v11630_v53 = vmul.f32 %v8193_v34, %v5003_v6  ;;  %v11633_v18 = vrot.slane %v3812_v21, %v8829_v33  ;;  %v7531_v47 = vadd.f32 %v7275_v30, %v11474_v56  ;;  %v490_v30 = vld [vmem:[%s8683_s4 + $0x750] sm:$0xff] }
 0x246   : > { %v7530_v20 = vadd.f32 %v7274_v44, %v11497_v46  ;;  %v11640_v26 = vrot.slane %v3843_v42, %v8866_v51  ;;  %v5011_v59 = vrot.slane %v2196_v22, %v8866_v51  ;;  %v859_v62 = vpop.permute.xlu1 %858  ;;  %v857_v0 = vpop.permute.xlu0 %856  ;;  %v11644_v12 = vrot.slane %v3814_v50, %v8829_v33  ;;  %v491_v50 = vld [vmem:[%s8683_s4 + $0x758] sm:$0xff]  ;;  %v8196_v34 = vld [vmem:[%s8683_s4 + $0x5b0] sm:$0xff] }
 0x247   : > { %v5015_v49 = vrot.slane %v2210_v7, %v8866_v51  ;;  %v2212_v10 = vcombine.high %v2196_v22, %v2196_v22  ;;  %v3854_v56 = vrot.slane %v11622_v3, %v8829_v33  ;;  %7787 = vst [vmem:[%s9275_s20 + $0x558] sm:$0xff] %v7531_v47  ;;  %v7277_v46 = vmul.f32 %v6519_v2, %v859_v62 }
 0x248   : > { %7786 = vst [vmem:[%s9275_s20 + $0x550] sm:$0xff] %v7530_v20  ;;  %v7276_v13 = vmul.f32 %v6515_v19, %v857_v0  ;;  %v2214_v17 = vcombine.high %v2210_v7, %v2210_v7  ;;  %v11658_v32 = vrot.slane %v2230_v48, %v8829_v33  ;;  %974 = vrot.lane.b32.xlu1 %v487_v8, %s8449_s22 }
 0x249   : > { %972 = vrot.lane.b32.xlu0 %v486_v16, %s8449_s22  ;;  %v6547_v21 = vrot.slane %v11633_v18, %v8866_v51  ;;  %v3846_v63 = vcombine.high %v11644_v12, %v11644_v12  ;;  %v2215_v35 = vcombine.high %v11550_v36, %v11550_v36  ;;  %v7533_v2 = vadd.f32 %v7277_v46, %v11509_v52  ;;  %v8197_v16 = vld [vmem:[%s8683_s4 + $0x5b8] sm:$0xff] }
 0x24a   : > { %v7532_v19 = vadd.f32 %v7276_v13, %v11512_v14  ;;  %v11673_v5 = vmul.f32 %v8194_v15, %v5011_v59  ;;  %v3844_v28 = vcombine.high %v11633_v18, %v11633_v18  ;;  %v863_v6 = vpop.permute.xlu1 %862  ;;  %v861_v27 = vpop.permute.xlu0 %860  ;;  %v11678_v61 = vmul.f32 %v8195_v1, %v5015_v49 }
 0x24b   : > { %v6551_v36 = vrot.slane %v11644_v12, %v8866_v51  ;;  %v5019_v52 = vrot.slane %v2212_v10, %v8866_v51  ;;  %v3862_v14 = vcombine.high %v3854_v56, %v3854_v56  ;;  %7789 = vst [vmem:[%s9275_s20 + $0x568] sm:$0xff] %v7533_v2  ;;  %v7279_v45 = vmul.f32 %v11562_v58, %v863_v6  ;;  %v11749_v2 = vld [vmem:[#allocation5 + $0xc0] sm:$0xff] }
 0x24c   : > { %7788 = vst [vmem:[%s9275_s20 + $0x560] sm:$0xff] %v7532_v19  ;;  %v7278_v42 = vmul.f32 %v11544_v60, %v861_v27  ;;  %v5023_v22 = vrot.slane %v2214_v17, %v8866_v51  ;;  %v3847_v37 = vcombine.high %v11622_v3, %v11622_v3  ;;  %978 = vrot.lane.b32.xlu1 %v489_v54, %s8449_s22  ;;  %v8199_v6 = vld [vmem:[%s8683_s4 + $0x5c0] sm:$0xff] }
 0x24d   : > { %976 = vrot.lane.b32.xlu0 %v488_v29, %s8449_s22  ;;  %v11693_v23 = vrot.slane %v3846_v63, %v8866_v51  ;;  %v2238_v25 = vrot.slane %v11574_v9, %v8829_v33  ;;  %v2229_v60 = vrot.slane %v2215_v35, %v8829_v33  ;;  %v7535_v58 = vadd.f32 %v7279_v45, %v11541_v11  ;;  %v494_v45 = vld [vmem:[%s8683_s4 + $0x770] sm:$0xff] }
 0x24e   : > { %v7534_v7 = vadd.f32 %v7278_v42, %v11570_v39  ;;  %v11703_v44 = vrot.slane %v3844_v28, %v8866_v51  ;;  %v5031_v38 = vrot.slane %v11658_v32, %v8866_v51  ;;  %v867_v48 = vpop.permute.xlu1 %866  ;;  %v865_v3 = vpop.permute.xlu0 %864  ;;  %v11708_v9 = vmul.f32 %v8196_v34, %v5019_v52  ;;  %v11758_v28 = vld [vmem:[#allocation7 + $0xc0] sm:$0xff] }
 0x24f   : > { %v11711_v47 = vrot.slane %v3862_v14, %v8829_v33  ;;  %v11714_v11 = vrot.slane %v3854_v56, %v8829_v33  ;;  %v2262_v39 = vcombine.high %v11658_v32, %v11658_v32  ;;  %7791 = vst [vmem:[%s9275_s20 + $0x578] sm:$0xff] %v7535_v58  ;;  %v7281_v20 = vmul.f32 %v6535_v4, %v867_v48  ;;  %v492_v4 = vld [vmem:[%s8683_s4 + $0x760] sm:$0xff]  ;;  %v8198_v56 = vld [vmem:[%s8683_s4 + $0x5c8] sm:$0xff]  ;;  %v495_v14 = vld [vmem:[%s8683_s4 + $0x778] sm:$0xff] }
 0x250   : > { %7790 = vst [vmem:[%s9275_s20 + $0x570] sm:$0xff] %v7534_v7  ;;  %v7280_v8 = vmul.f32 %v6531_v57, %v865_v3  ;;  %v11727_v59 = vmul.f32 %v8197_v16, %v5023_v22  ;;  %v3861_v62 = vrot.slane %v3847_v37, %v8829_v33  ;;  %982 = vrot.lane.b32.xlu1 %v491_v50, %s8449_s22  ;;  %v493_v57 = vld [vmem:[%s8683_s4 + $0x768] sm:$0xff]  ;;  %v8201_v3 = vld [vmem:[%s8683_s4 + $0x5d0] sm:$0xff] }
 0x251   : > { %980 = vrot.lane.b32.xlu0 %v490_v30, %s8449_s22  ;;  %v5027_v0 = vrot.slane %v2238_v25, %v8866_v51  ;;  %v2260_v49 = vcombine.high %v2238_v25, %v2238_v25  ;;  %v2231_v10 = vcombine.high %v2229_v60, %v2229_v60  ;;  %v7537_v31 = vadd.f32 %v7281_v20, %v11595_v41  ;;  %v496_v20 = vld [vmem:[%s8683_s4 + $0x780] sm:$0xff] }
 0x252   : > { %v7536_v43 = vadd.f32 %v7280_v8, %v11610_v24  ;;  %v11738_v46 = vmul.f32 %v8198_v56, %v5031_v38  ;;  %v3894_v13 = vcombine.high %v11711_v47, %v11711_v47  ;;  %v871_v17 = vpop.permute.xlu1 %870  ;;  %v869_v32 = vpop.permute.xlu0 %868  ;;  %v6567_v63 = vrot.slane %v11711_v47, %v8866_v51 }
 0x253   : > { %v6563_v35 = vrot.slane %v11714_v11, %v8866_v51  ;;  %v5039_v41 = vrot.slane %v2262_v39, %v8866_v51  ;;  %v3892_v24 = vcombine.high %v11714_v11, %v11714_v11  ;;  %7793 = vst [vmem:[%s9275_s20 + $0x588] sm:$0xff] %v7537_v31  ;;  %v7283_v19 = vmul.f32 %v11627_v40, %v871_v17  ;;  %v497_v39 = vld [vmem:[%s8683_s4 + $0x788] sm:$0xff] }
 0x254   : > { %7792 = vst [vmem:[%s9275_s20 + $0x580] sm:$0xff] %v7536_v43  ;;  %v7282_v54 = vmul.f32 %v11640_v26, %v869_v32  ;;  %v3863_v29 = vcombine.high %v3861_v62, %v3861_v62  ;;  %v11756_v15 = vrot.slane %v2229_v60, %v8829_v33  ;;  %986 = vrot.lane.b32.xlu1 %v493_v57, %s8449_s22  ;;  %v8200_v60 = vld [vmem:[%s8683_s4 + $0x5d8] sm:$0xff] }
 0x255   : > { %984 = vrot.lane.b32.xlu0 %v492_v4, %s8449_s22  ;;  %v11763_v27 = vmul.f32 %v8199_v6, %v5027_v0  ;;  %v5035_v1 = vrot.slane %v2260_v49, %v8866_v51  ;;  %v2259_v40 = vrot.slane %v2231_v10, %v8829_v33  ;;  %v7539_v26 = vadd.f32 %v7283_v19, %v11618_v55  ;;  %v8202_v4 = vld [vmem:[%s8683_s4 + $0x5e0] sm:$0xff] }
 0x256   : > { %v7538_v52 = vadd.f32 %v7282_v54, %v11630_v53  ;;  %v11772_v42 = vrot.slane %v3894_v13, %v8866_v51  ;;  %v2271_v22 = vrot.slane %v11749_v2, %v8829_v33  ;;  %v875_v37 = vpop.permute.xlu1 %874  ;;  %v873_v25 = vpop.permute.xlu0 %872  ;;  %v11777_v58 = vmul.f32 %v8200_v60, %v5039_v41  ;;  %v8203_v13 = vld [vmem:[%s8683_s4 + $0x5e8] sm:$0xff] }
 0x257   : > { %v11780_v7 = vrot.slane %v3892_v24, %v8866_v51  ;;  %v11783_v55 = vrot.slane %v3861_v62, %v8829_v33  ;;  %v3903_v53 = vrot.slane %v11758_v28, %v8829_v33  ;;  %7795 = vst [vmem:[%s9275_s20 + $0x598] sm:$0xff] %v7539_v26  ;;  %v7285_v50 = vmul.f32 %v6551_v36, %v875_v37  ;;  %v499_v24 = vld [vmem:[%s8683_s4 + $0x798] sm:$0xff] }
 0x258   : > { %7794 = vst [vmem:[%s9275_s20 + $0x590] sm:$0xff] %v7538_v52  ;;  %v7284_v30 = vmul.f32 %v6547_v21, %v873_v25  ;;  %v11796_v38 = vrot.slane %v3863_v29, %v8829_v33  ;;  %v5043_v48 = vrot.slane %v11756_v15, %v8866_v51  ;;  %990 = vrot.lane.b32.xlu1 %v495_v14, %s8449_s22  ;;  %v8205_v25 = vld [vmem:[%s8683_s4 + $0x5f0] sm:$0xff] }
 0x259   : > { %988 = vrot.lane.b32.xlu0 %v494_v45, %s8449_s22  ;;  %v11803_v34 = vmul.f32 %v8201_v3, %v5035_v1  ;;  %v5047_v12 = vrot.slane %v2259_v40, %v8866_v51  ;;  %v2263_v36 = vcombine.high %v2259_v40, %v2259_v40  ;;  %v7541_v18 = vadd.f32 %v7285_v50, %v11678_v61  ;;  %v8204_v45 = vld [vmem:[%s8683_s4 + $0x5f8] sm:$0xff] }
 0x25a   : > { %v7540_v21 = vadd.f32 %v7284_v30, %v11673_v5  ;;  %v2261_v8 = vcombine.high %v11756_v15, %v11756_v15  ;;  %v2279_v16 = vcombine.high %v2271_v22, %v2271_v22  ;;  %v879_v62 = vpop.permute.xlu1 %878  ;;  %v877_v0 = vpop.permute.xlu0 %876  ;;  %v6579_v49 = vrot.slane %v11783_v55, %v8866_v51 }
 0x25b   : > { %v3895_v10 = vcombine.high %v11796_v38, %v11796_v38  ;;  %v3911_v31 = vcombine.high %v3903_v53, %v3903_v53  ;;  %v2264_v5 = vcombine.high %v11749_v2, %v11749_v2  ;;  %7797 = vst [vmem:[%s9275_s20 + $0x5a8] sm:$0xff] %v7541_v18  ;;  %v7287_v61 = vmul.f32 %v11693_v23, %v879_v62  ;;  %v498_v2 = vld [vmem:[%s8683_s4 + $0x790] sm:$0xff]  ;;  %v503_v62 = vld [vmem:[%s8683_s4 + $0x7b8] sm:$0xff] }
 0x25c   : > { %7796 = vst [vmem:[%s9275_s20 + $0x5a0] sm:$0xff] %v7540_v21  ;;  %v7286_v43 = vmul.f32 %v11703_v44, %v877_v0  ;;  %v6583_v57 = vrot.slane %v11796_v38, %v8866_v51  ;;  %v11825_v56 = vmul.f32 %v8202_v4, %v5043_v48  ;;  %994 = vrot.lane.b32.xlu1 %v497_v39, %s8449_s22  ;;  %v502_v0 = vld [vmem:[%s8683_s4 + $0x7b0] sm:$0xff] }
 0x25d   : > { %992 = vrot.lane.b32.xlu0 %v496_v20, %s8449_s22  ;;  %v11830_v17 = vmul.f32 %v8203_v13, %v5047_v12  ;;  %v5055_v32 = vrot.slane %v2263_v36, %v8866_v51  ;;  %v3893_v23 = vcombine.high %v11783_v55, %v11783_v55  ;;  %v7543_v44 = vadd.f32 %v7287_v61, %v11727_v59  ;;  %v11908_v61 = vld [vmem:[#allocation7 + $0xc8] sm:$0xff]  ;;  %v8207_v13 = vld [vmem:[%s8683_s4 + $0x600] sm:$0xff] }
 0x25e   : > { %v7542_v41 = vadd.f32 %v7286_v43, %v11708_v9  ;;  %v5051_v19 = vrot.slane %v2261_v8, %v8866_v51  ;;  %v2301_v54 = vrot.slane %v2279_v16, %v8829_v33  ;;  %v883_v29 = vpop.permute.xlu1 %882  ;;  %v881_v15 = vpop.permute.xlu0 %880  ;;  %v11842_v6 = vrot.slane %v3895_v10, %v8866_v51  ;;  %v8206_v10 = vld [vmem:[%s8683_s4 + $0x608] sm:$0xff] }
 0x25f   : > { %v11845_v1 = vrot.slane %v3911_v31, %v8829_v33  ;;  %v2287_v40 = vrot.slane %v2271_v22, %v8829_v33  ;;  %v2278_v9 = vrot.slane %v2264_v5, %v8829_v33  ;;  %7799 = vst [vmem:[%s9275_s20 + $0x5b8] sm:$0xff] %v7543_v44  ;;  %v7289_v59 = vmul.f32 %v6567_v63, %v883_v29  ;;  %v505_v29 = vld [vmem:[%s8683_s4 + $0x7c8] sm:$0xff] }
 0x260   : > { %7798 = vst [vmem:[%s9275_s20 + $0x5b0] sm:$0xff] %v7542_v41  ;;  %v7288_v26 = vmul.f32 %v6563_v35, %v881_v15  ;;  %v2311_v52 = vcombine.high %v2301_v54, %v2301_v54  ;;  %v3896_v14 = vcombine.high %v11758_v28, %v11758_v28  ;;  %998 = vrot.lane.b32.xlu1 %v499_v24, %s8449_s22  ;;  %v501_v35 = vld [vmem:[%s8683_s4 + $0x7a8] sm:$0xff]  ;;  %v500_v28 = vld [vmem:[%s8683_s4 + $0x7a0] sm:$0xff] }
 0x261   : > { %996 = vrot.lane.b32.xlu0 %v498_v2, %s8449_s22  ;;  %v11862_v22 = vmul.f32 %v8204_v45, %v5055_v32  ;;  %v11865_v37 = vrot.slane %v3893_v23, %v8866_v51  ;;  %v11868_v47 = vrot.slane %v3903_v53, %v8829_v33  ;;  %v7545_v11 = vadd.f32 %v7289_v59, %v11738_v46  ;;  %v11881_v46 = vld [vmem:[#allocation5 + $0xc8] sm:$0xff]  ;;  %v8208_v24 = vld [vmem:[%s8683_s4 + $0x618] sm:$0xff]  ;;  %v504_v15 = vld [vmem:[%s8683_s4 + $0x7c0] sm:$0xff] }
 0x262   : > { %v7544_v63 = vadd.f32 %v7288_v26, %v11763_v27  ;;  %v11875_v60 = vmul.f32 %v8205_v25, %v5051_v19  ;;  %v5063_v50 = vrot.slane %v2301_v54, %v8866_v51  ;;  %v887_v30 = vpop.permute.xlu1 %886  ;;  %v885_v48 = vpop.permute.xlu0 %884  ;;  %v6599_v3 = vrot.slane %v11845_v1, %v8866_v51 }
 0x263   : > { %v5059_v53 = vrot.slane %v2287_v40, %v8866_v51  ;;  %v2309_v12 = vcombine.high %v2287_v40, %v2287_v40  ;;  %v2280_v36 = vcombine.high %v2278_v9, %v2278_v9  ;;  %7801 = vst [vmem:[%s9275_s20 + $0x5c8] sm:$0xff] %v7545_v11  ;;  %v7291_v27 = vmul.f32 %v11772_v42, %v887_v30 }
 0x264   : > { %7800 = vst [vmem:[%s9275_s20 + $0x5c0] sm:$0xff] %v7544_v63  ;;  %v7290_v18 = vmul.f32 %v11780_v7, %v885_v48  ;;  %v5071_v21 = vrot.slane %v2311_v52, %v8866_v51  ;;  %v3910_v39 = vrot.slane %v3896_v14, %v8829_v33  ;;  %1002 = vrot.lane.b32.xlu1 %v501_v35, %s8449_s22  ;;  %v8209_v52 = vld [vmem:[%s8683_s4 + $0x610] sm:$0xff]  ;;  %v507_v48 = vld [vmem:[%s8683_s4 + $0x7d8] sm:$0xff] }
 0x265   : > { %1000 = vrot.lane.b32.xlu0 %v500_v28, %s8449_s22  ;;  %v6595_v20 = vrot.slane %v11868_v47, %v8866_v51  ;;  %v3943_v8 = vcombine.high %v11845_v1, %v11845_v1  ;;  %v3941_v42 = vcombine.high %v11868_v47, %v11868_v47  ;;  %v7547_v7 = vadd.f32 %v7291_v27, %v11777_v58 }
 0x266   : > { %v7546_v16 = vadd.f32 %v7290_v18, %v11803_v34  ;;  %v11902_v31 = vmul.f32 %v8206_v10, %v5063_v50  ;;  %v11906_v5 = vrot.slane %v11881_v46, %v8829_v33  ;;  %v891_v43 = vpop.permute.xlu1 %890  ;;  %v889_v4 = vpop.permute.xlu0 %888  ;;  %v11911_v32 = vmul.f32 %v8207_v13, %v5059_v53  ;;  %v506_v53 = vld [vmem:[%s8683_s4 + $0x7d0] sm:$0xff]  ;;  %v509_v10 = vld [vmem:[%s8683_s4 + $0x7e8] sm:$0xff] }
 0x267   : > { %v5067_v58 = vrot.slane %v2309_v12, %v8866_v51  ;;  %v2308_v34 = vrot.slane %v2280_v36, %v8829_v33  ;;  %v2294_v23 = vrot.slane %v2278_v9, %v8829_v33  ;;  %7803 = vst [vmem:[%s9275_s20 + $0x5d8] sm:$0xff] %v7547_v7  ;;  %v7293_v44 = vmul.f32 %v6583_v57, %v891_v43  ;;  %v508_v43 = vld [vmem:[%s8683_s4 + $0x7e0] sm:$0xff] }
 0x268   : > { %7802 = vst [vmem:[%s9275_s20 + $0x5d0] sm:$0xff] %v7546_v16  ;;  %v7292_v41 = vmul.f32 %v6579_v49, %v889_v4  ;;  %v11925_v2 = vmul.f32 %v8208_v24, %v5071_v21  ;;  %v3912_v19 = vcombine.high %v3910_v39, %v3910_v39  ;;  %1006 = vrot.lane.b32.xlu1 %v503_v62, %s8449_s22  ;;  %v8210_v21 = vld [vmem:[%s8683_s4 + $0x628] sm:$0xff]  ;;  %v8212_v4 = vld [vmem:[%s8683_s4 + $0x638] sm:$0xff] }
 0x269   : > { %1004 = vrot.lane.b32.xlu0 %v502_v0, %s8449_s22  ;;  %v11930_v54 = vrot.slane %v3943_v8, %v8866_v51  ;;  %v11933_v38 = vrot.slane %v3941_v42, %v8866_v51  ;;  %v3952_v55 = vrot.slane %v11908_v61, %v8829_v33  ;;  %v7549_v49 = vadd.f32 %v7293_v44, %v11830_v17  ;;  %v8211_v8 = vld [vmem:[%s8683_s4 + $0x620] sm:$0xff] }
 0x26a   : > { %v7548_v57 = vadd.f32 %v7292_v41, %v11825_v56  ;;  %v2312_v40 = vcombine.high %v2308_v34, %v2308_v34  ;;  %v2328_v9 = vcombine.high %v11906_v5, %v11906_v5  ;;  %v895_v59 = vpop.permute.xlu1 %894  ;;  %v893_v26 = vpop.permute.xlu0 %892  ;;  %v11944_v14 = vmul.f32 %v8209_v52, %v5067_v58 }
 0x26b   : > { %v5079_v45 = vrot.slane %v2308_v34, %v8866_v51  ;;  %v11948_v11 = vrot.slane %v3910_v39, %v8829_v33  ;;  %v5075_v56 = vrot.slane %v2294_v23, %v8866_v51  ;;  %7805 = vst [vmem:[%s9275_s20 + $0x5e8] sm:$0xff] %v7549_v49  ;;  %v7295_v17 = vmul.f32 %v11842_v6, %v895_v59 }
 0x26c   : > { %7804 = vst [vmem:[%s9275_s20 + $0x5e0] sm:$0xff] %v7548_v57  ;;  %v7294_v63 = vmul.f32 %v11865_v37, %v893_v26  ;;  %v11956_v35 = vrot.slane %v3912_v19, %v8829_v33  ;;  %v2310_v28 = vcombine.high %v2294_v23, %v2294_v23  ;;  %1010 = vrot.lane.b32.xlu1 %v505_v29, %s8449_s22  ;;  %v8213_v19 = vld [vmem:[%s8683_s4 + $0x630] sm:$0xff] }
 0x26d   : > { %1008 = vrot.lane.b32.xlu0 %v504_v15, %s8449_s22  ;;  %v3942_v25 = vcombine.high %v11948_v11, %v11948_v11  ;;  %v3960_v50 = vcombine.high %v3952_v55, %v3952_v55  ;;  %v2313_v6 = vcombine.high %v11881_v46, %v11881_v46  ;;  %v7551_v37 = vadd.f32 %v7295_v17, %v11862_v22  ;;  %v511_v15 = vld [vmem:[%s8683_s4 + $0x7f8] sm:$0xff]  ;;  %v12037_v26 = vld [vmem:[#allocation5 + $0xd0] sm:$0xff] }
 0x26e   : > { %v7550_v30 = vadd.f32 %v7294_v63, %v11875_v60  ;;  %v5087_v12 = vrot.slane %v2312_v40, %v8866_v51  ;;  %v11970_v36 = vrot.slane %v2328_v9, %v8829_v33  ;;  %v899_v27 = vpop.permute.xlu1 %898  ;;  %v897_v18 = vpop.permute.xlu0 %896  ;;  %v11973_v39 = vmul.f32 %v8210_v21, %v5079_v45  ;;  %v510_v40 = vld [vmem:[%s8683_s4 + $0x7f0] sm:$0xff] }
 0x26f   : > { %v11976_v42 = vmul.f32 %v8211_v8, %v5075_v56  ;;  %v6611_v22 = vrot.slane %v11948_v11, %v8866_v51  ;;  %v3944_v60 = vcombine.high %v11956_v35, %v11956_v35  ;;  %7807 = vst [vmem:[%s9275_s20 + $0x5f8] sm:$0xff] %v7551_v37  ;;  %v7297_v46 = vmul.f32 %v6599_v3, %v899_v27  ;;  %v8214_v11 = vld [vmem:[%s8683_s4 + $0x648] sm:$0xff]  ;;  %v12059_v27 = vld [vmem:[#allocation7 + $0xd0] sm:$0xff] }
 0x270   : > { %7806 = vst [vmem:[%s9275_s20 + $0x5f0] sm:$0xff] %v7550_v30  ;;  %v7296_v7 = vmul.f32 %v6595_v20, %v897_v18  ;;  %v6615_v16 = vrot.slane %v11956_v35, %v8866_v51  ;;  %v5083_v62 = vrot.slane %v2310_v28, %v8866_v51  ;;  %1014 = vrot.lane.b32.xlu1 %v507_v48, %s8449_s22 }
 0x271   : > { %1012 = vrot.lane.b32.xlu0 %v506_v53, %s8449_s22  ;;  %v11996_v0 = vrot.slane %v3942_v25, %v8866_v51  ;;  %v11999_v1 = vrot.slane %v3960_v50, %v8829_v33  ;;  %v2327_v47 = vrot.slane %v2313_v6, %v8829_v33  ;;  %v7553_v3 = vadd.f32 %v7297_v46, %v11902_v31  ;;  %v8215_v53 = vld [vmem:[%s8683_s4 + $0x640] sm:$0xff] }
 0x272   : > { %v7552_v20 = vadd.f32 %v7296_v7, %v11911_v32  ;;  %v12007_v13 = vmul.f32 %v8212_v4, %v5087_v12  ;;  %v2336_v58 = vrot.slane %v11906_v5, %v8829_v33  ;;  %v903_v34 = vpop.permute.xlu1 %902  ;;  %v901_v23 = vpop.permute.xlu0 %900  ;;  %v6623_v44 = vrot.slane %v3944_v60, %v8866_v51  ;;  %v8216_v7 = vld [vmem:[%s8683_s4 + $0x658] sm:$0xff] }
 0x273   : > { %v5095_v41 = vrot.slane %v11970_v36, %v8866_v51  ;;  %v12015_v31 = vrot.slane %v3952_v55, %v8829_v33  ;;  %v3945_v32 = vcombine.high %v11908_v61, %v11908_v61  ;;  %7809 = vst [vmem:[%s9275_s20 + $0x608] sm:$0xff] %v7553_v3  ;;  %v7299_v24 = vmul.f32 %v11930_v54, %v903_v34 }
 0x274   : > { %7808 = vst [vmem:[%s9275_s20 + $0x600] sm:$0xff] %v7552_v20  ;;  %v7298_v5 = vmul.f32 %v11933_v38, %v901_v23  ;;  %v5766_v49 = vmul.f32 %v8213_v19, %v5083_v62  ;;  %v2360_v57 = vcombine.high %v11970_v36, %v11970_v36  ;;  %1018 = vrot.lane.b32.xlu1 %v509_v10, %s8449_s22 }
 0x275   : > { %1016 = vrot.lane.b32.xlu0 %v508_v43, %s8449_s22  ;;  %v6631_v61 = vrot.slane %v11999_v1, %v8866_v51  ;;  %v2358_v55 = vcombine.high %v2336_v58, %v2336_v58  ;;  %v2329_v29 = vcombine.high %v2327_v47, %v2327_v47  ;;  %v7555_v54 = vadd.f32 %v7299_v24, %v11925_v2 }
 0x276   : > { %v7554_v38 = vadd.f32 %v7298_v5, %v11944_v14  ;;  %v5091_v9 = vrot.slane %v2336_v58, %v8866_v51  ;;  %v3992_v59 = vcombine.high %v11999_v1, %v11999_v1  ;;  %v907_v52 = vpop.permute.xlu1 %906  ;;  %v905_v45 = vpop.permute.xlu0 %904  ;;  %v5769_v56 = vmul.f32 %v8214_v11, %v5095_v41  ;;  %v8220_v11 = vld [vmem:[%s8683_s4 + $0x678] sm:$0xff] }
 0x277   : > { %v6627_v17 = vrot.slane %v12015_v31, %v8866_v51  ;;  %v3959_v2 = vrot.slane %v3945_v32, %v8829_v33  ;;  %v2343_v14 = vrot.slane %v2327_v47, %v8829_v33  ;;  %7811 = vst [vmem:[%s9275_s20 + $0x618] sm:$0xff] %v7555_v54  ;;  %v7301_v63 = vmul.f32 %v6615_v16, %v907_v52  ;;  %v8217_v47 = vld [vmem:[%s8683_s4 + $0x650] sm:$0xff] }
 0x278   : > { %7810 = vst [vmem:[%s9275_s20 + $0x610] sm:$0xff] %v7554_v38  ;;  %v7300_v35 = vmul.f32 %v6611_v22, %v905_v45  ;;  %v5103_v28 = vrot.slane %v2360_v57, %v8866_v51  ;;  %v3990_v25 = vcombine.high %v12015_v31, %v12015_v31  ;;  %1022 = vrot.lane.b32.xlu1 %v511_v15, %s8449_s22  ;;  %v8218_v31 = vld [vmem:[%s8683_s4 + $0x660] sm:$0xff] }
 0x279   : > { %1020 = vrot.lane.b32.xlu0 %v510_v40, %s8449_s22  ;;  %v5099_v50 = vrot.slane %v2358_v55, %v8866_v51  ;;  %v2357_v6 = vrot.slane %v2329_v29, %v8829_v33  ;;  %v2369_v37 = vrot.slane %v12037_v26, %v8829_v33  ;;  %v7557_v30 = vadd.f32 %v7301_v63, %v11973_v39 }
 0x27a   : > { %v7556_v48 = vadd.f32 %v7300_v35, %v11976_v42  ;;  %v5768_v12 = vmul.f32 %v8215_v53, %v5091_v9  ;;  %v6639_v36 = vrot.slane %v3992_v59, %v8866_v51  ;;  %v911_v18 = vpop.permute.xlu1 %910  ;;  %v909_v21 = vpop.permute.xlu0 %908  ;;  %v3961_v8 = vcombine.high %v3959_v2, %v3959_v2  ;;  %v8221_v35 = vld [vmem:[%s8683_s4 + $0x670] sm:$0xff] }
 0x27b   : > { %v12062_v22 = vrot.slane %v3959_v2, %v8829_v33  ;;  %v5107_v60 = vrot.slane %v2343_v14, %v8866_v51  ;;  %v2361_v46 = vcombine.high %v2357_v6, %v2357_v6  ;;  %7813 = vst [vmem:[%s9275_s20 + $0x628] sm:$0xff] %v7557_v30  ;;  %v7303_v39 = vmul.f32 %v6623_v44, %v911_v18 }
 0x27c   : > { %7812 = vst [vmem:[%s9275_s20 + $0x620] sm:$0xff] %v7556_v48  ;;  %v7302_v42 = vmul.f32 %v11996_v0, %v909_v21  ;;  %v5771_v16 = vmul.f32 %v8216_v7, %v5103_v28  ;;  %v2359_v62 = vcombine.high %v2343_v14, %v2343_v14  ;;  %v5770_v3 = vmul.f32 %v8217_v47, %v5099_v50 }
 0x27d   : > { %v6635_v20 = vrot.slane %v3990_v25, %v8866_v51  ;;  %v2377_v10 = vcombine.high %v2369_v37, %v2369_v37  ;;  %v4001_v43 = vrot.slane %v12059_v27, %v8829_v33  ;;  %v7559_v4 = vadd.f32 %v7303_v39, %v12007_v13  ;;  %v12102_v25 = vld [vmem:[#allocation5 + $0xd8] sm:$0xff] }
 0x27e   : > { %v7558_v58 = vadd.f32 %v7302_v42, %v5766_v49  ;;  %v5111_v34 = vrot.slane %v2357_v6, %v8866_v51  ;;  %v2362_v0 = vcombine.high %v12037_v26, %v12037_v26  ;;  %v915_v23 = vpop.permute.xlu1 %914  ;;  %v913_v44 = vpop.permute.xlu0 %912  ;;  %v3989_v41 = vrot.slane %v3961_v8, %v8829_v33  ;;  %v8222_v42 = vld [vmem:[%s8683_s4 + $0x680] sm:$0xff] }
 0x27f   : > { %v5772_v32 = vmul.f32 %v8218_v31, %v5107_v60  ;;  %v6643_v24 = vrot.slane %v12062_v22, %v8866_v51  ;;  %v5119_v5 = vrot.slane %v2361_v46, %v8866_v51  ;;  %7815 = vst [vmem:[%s9275_s20 + $0x638] sm:$0xff] %v7559_v4  ;;  %v7305_v13 = vmul.f32 %v6631_v61, %v915_v23  ;;  %v8219_v61 = vld [vmem:[%s8683_s4 + $0x668] sm:$0xff] }
 0x280   : > { %7814 = vst [vmem:[%s9275_s20 + $0x630] sm:$0xff] %v7558_v58  ;;  %v7304_v19 = vmul.f32 %v6627_v17, %v913_v44  ;;  %v5115_v49 = vrot.slane %v2359_v62, %v8866_v51  ;;  %v2385_v57 = vrot.slane %v2369_v37, %v8829_v33  ;;  %v3991_v55 = vcombine.high %v12062_v22, %v12062_v22  ;;  %v8223_v44 = vld [vmem:[%s8683_s4 + $0x688] sm:$0xff] }
 0x281   : > { %v2399_v29 = vrot.slane %v2377_v10, %v8829_v33  ;;  %v4009_v54 = vcombine.high %v4001_v43, %v4001_v43  ;;  %v3994_v38 = vcombine.high %v12059_v27, %v12059_v27  ;;  %v7561_v15 = vadd.f32 %v7305_v13, %v5769_v56 }
 0x282   : > { %v7560_v1 = vadd.f32 %v7304_v19, %v5768_v12  ;;  %v5773_v40 = vmul.f32 %v8219_v61, %v5111_v34  ;;  %v2376_v9 = vrot.slane %v2362_v0, %v8829_v33  ;;  %v919_v59 = vpop.permute.xlu1 %918  ;;  %v917_v26 = vpop.permute.xlu0 %916  ;;  %v6647_v52 = vrot.slane %v3989_v41, %v8866_v51  ;;  %v12122_v34 = vld [vmem:[#allocation7 + $0xd8] sm:$0xff]  ;;  %v8225_v61 = vld [vmem:[%s8683_s4 + $0x690] sm:$0xff] }
 0x283   : > { %v3993_v45 = vcombine.high %v3989_v41, %v3989_v41  ;;  %v5775_v17 = vmul.f32 %v8220_v11, %v5119_v5  ;;  %v2409_v2 = vcombine.high %v2399_v29, %v2399_v29  ;;  %7817 = vst [vmem:[%s9275_s20 + $0x648] sm:$0xff] %v7561_v15  ;;  %v7307_v14 = vmul.f32 %v6639_v36, %v919_v59 }
 0x284   : > { %7816 = vst [vmem:[%s9275_s20 + $0x640] sm:$0xff] %v7560_v1  ;;  %v7306_v63 = vmul.f32 %v6635_v20, %v917_v26  ;;  %v5774_v56 = vmul.f32 %v8221_v35, %v5115_v49  ;;  %v5123_v28 = vrot.slane %v2385_v57, %v8866_v51  ;;  %v6651_v50 = vrot.slane %v3991_v55, %v8866_v51 }
 0x285   : > { %v4031_v6 = vrot.slane %v4009_v54, %v8829_v33  ;;  %v4017_v37 = vrot.slane %v4001_v43, %v8829_v33  ;;  %v4008_v30 = vrot.slane %v3994_v38, %v8829_v33  ;;  %v7563_v48 = vadd.f32 %v7307_v14, %v5771_v16 }
 0x286   : > { %v7562_v53 = vadd.f32 %v7306_v63, %v5770_v3  ;;  %v2407_v12 = vcombine.high %v2385_v57, %v2385_v57  ;;  %v2378_v36 = vcombine.high %v2376_v9, %v2376_v9  ;;  %v923_v27 = vpop.permute.xlu1 %922  ;;  %v921_v18 = vpop.permute.xlu0 %920  ;;  %v6655_v21 = vrot.slane %v3993_v45, %v8866_v51 }
 0x287   : > { %v5127_v8 = vrot.slane %v2399_v29, %v8866_v51  ;;  %v5135_v22 = vrot.slane %v2409_v2, %v8866_v51  ;;  %v12113_v60 = vrot.slane %v12102_v25, %v8829_v33  ;;  %7819 = vst [vmem:[%s9275_s20 + $0x658] sm:$0xff] %v7563_v48  ;;  %v7309_v46 = vmul.f32 %v6647_v52, %v923_v27 }
 0x288   : > { %7818 = vst [vmem:[%s9275_s20 + $0x650] sm:$0xff] %v7562_v53  ;;  %v7308_v39 = vmul.f32 %v6643_v24, %v921_v18  ;;  %v5776_v7 = vmul.f32 %v8222_v42, %v5123_v28  ;;  %v4041_v16 = vcombine.high %v4031_v6, %v4031_v6  ;;  %v6659_v62 = vrot.slane %v4017_v37, %v8866_v51  ;;  %v8224_v24 = vld [vmem:[%s8683_s4 + $0x698] sm:$0xff]  ;;  %v8226_v28 = vld [vmem:[%s8683_s4 + $0x6a0] sm:$0xff]  ;;  %v8227_v53 = vld [vmem:[%s8683_s4 + $0x6a8] sm:$0xff] }
 0x289   : > { %v4039_v47 = vcombine.high %v4017_v37, %v4017_v37  ;;  %v4010_v3 = vcombine.high %v4008_v30, %v4008_v30  ;;  %v2392_v20 = vrot.slane %v2376_v9, %v8829_v33  ;;  %v7565_v10 = vadd.f32 %v7309_v46, %v5773_v40 }
 0x28a   : > { %v7564_v43 = vadd.f32 %v7308_v39, %v5772_v32  ;;  %v5131_v4 = vrot.slane %v2407_v12, %v8866_v51  ;;  %v2406_v58 = vrot.slane %v2378_v36, %v8829_v33  ;;  %v927_v0 = vpop.permute.xlu1 %926  ;;  %v925_v23 = vpop.permute.xlu0 %924  ;;  %v5777_v41 = vmul.f32 %v8223_v44, %v5127_v8 }
 0x28b   : > { %v6663_v31 = vrot.slane %v4031_v6, %v8866_v51  ;;  %v5779_v5 = vmul.f32 %v8224_v24, %v5135_v22  ;;  %v2426_v13 = vcombine.high %v12113_v60, %v12113_v60  ;;  %7821 = vst [vmem:[%s9275_s20 + $0x668] sm:$0xff] %v7565_v10  ;;  %v7311_v32 = vmul.f32 %v6655_v21, %v927_v0 }
 0x28c   : > { %7820 = vst [vmem:[%s9275_s20 + $0x660] sm:$0xff] %v7564_v43  ;;  %v7310_v19 = vmul.f32 %v6651_v50, %v925_v23  ;;  %v6671_v49 = vrot.slane %v4041_v16, %v8866_v51  ;;  %v12133_v57 = vrot.slane %v4008_v30, %v8829_v33  ;;  %v6667_v55 = vrot.slane %v4039_v47, %v8866_v51  ;;  %v8229_v23 = vld [vmem:[%s8683_s4 + $0x6b0] sm:$0xff] }
 0x28d   : > { %v4038_v29 = vrot.slane %v4010_v3, %v8829_v33  ;;  %v5139_v54 = vrot.slane %v2392_v20, %v8866_v51  ;;  %v4050_v38 = vrot.slane %v12122_v34, %v8829_v33  ;;  %v7567_v15 = vadd.f32 %v7311_v32, %v5775_v17 }
 0x28e   : > { %v7566_v1 = vadd.f32 %v7310_v19, %v5774_v56  ;;  %v5778_v40 = vmul.f32 %v8225_v61, %v5131_v4  ;;  %v5143_v9 = vrot.slane %v2406_v58, %v8866_v51  ;;  %v931_v59 = vpop.permute.xlu1 %930  ;;  %v929_v26 = vpop.permute.xlu0 %928  ;;  %v2410_v52 = vcombine.high %v2406_v58, %v2406_v58 }
 0x28f   : > { %v2408_v45 = vcombine.high %v2392_v20, %v2392_v20  ;;  %v4040_v11 = vcombine.high %v12133_v57, %v12133_v57  ;;  %v2448_v2 = vrot.slane %v2426_v13, %v8829_v33  ;;  %7823 = vst [vmem:[%s9275_s20 + $0x678] sm:$0xff] %v7567_v15  ;;  %v7313_v14 = vmul.f32 %v6663_v31, %v931_v59  ;;  %v8230_v13 = vld [vmem:[%s8683_s4 + $0x6c8] sm:$0xff]  ;;  %v8231_v59 = vld [vmem:[%s8683_s4 + $0x6c0] sm:$0xff] }
 0x290   : > { %7822 = vst [vmem:[%s9275_s20 + $0x670] sm:$0xff] %v7566_v1  ;;  %v7312_v17 = vmul.f32 %v6659_v62, %v929_v26  ;;  %v6675_v63 = vrot.slane %v12133_v57, %v8866_v51  ;;  %v2411_v35 = vcombine.high %v12102_v25, %v12102_v25  ;;  %v6679_v56 = vrot.slane %v4038_v29, %v8866_v51 }
 0x291   : > { %v5780_v50 = vmul.f32 %v8226_v28, %v5139_v54  ;;  %v4042_v6 = vcombine.high %v4038_v29, %v4038_v29  ;;  %v4058_v37 = vcombine.high %v4050_v38, %v4050_v38  ;;  %v7569_v30 = vadd.f32 %v7313_v14, %v5777_v41 }
 0x292   : > { %v7568_v48 = vadd.f32 %v7312_v17, %v5776_v7  ;;  %v5781_v12 = vmul.f32 %v8227_v53, %v5143_v9  ;;  %v4043_v36 = vcombine.high %v12122_v34, %v12122_v34  ;;  %v935_v27 = vpop.permute.xlu1 %934  ;;  %v933_v18 = vpop.permute.xlu0 %932  ;;  %v5151_v21 = vrot.slane %v2410_v52, %v8866_v51  ;;  %v8228_v34 = vld [vmem:[%s8683_s4 + $0x6b8] sm:$0xff] }
 0x293   : > { %v5147_v25 = vrot.slane %v2408_v45, %v8866_v51  ;;  %v6683_v8 = vrot.slane %v4040_v11, %v8866_v51  ;;  %v2434_v22 = vrot.slane %v12113_v60, %v8829_v33  ;;  %7825 = vst [vmem:[%s9275_s20 + $0x688] sm:$0xff] %v7569_v30  ;;  %v7315_v46 = vmul.f32 %v6671_v49, %v935_v27  ;;  %v1052_v49 = vld [vmem:[#allocation5 + $0xe0] sm:$0xff] }
 0x294   : > { %7824 = vst [vmem:[%s9275_s20 + $0x680] sm:$0xff] %v7568_v48  ;;  %v7314_v39 = vmul.f32 %v6667_v55, %v933_v18  ;;  %v5159_v42 = vrot.slane %v2448_v2, %v8866_v51  ;;  %v2425_v7 = vrot.slane %v2411_v35, %v8829_v33  ;;  %v6687_v16 = vrot.slane %v4042_v6, %v8866_v51 }
 0x295   : > { %v12167_v62 = vrot.slane %v4058_v37, %v8829_v33  ;;  %v2458_v47 = vcombine.high %v2448_v2, %v2448_v2  ;;  %v2456_v3 = vcombine.high %v2434_v22, %v2434_v22  ;;  %v7571_v60 = vadd.f32 %v7315_v46, %v5779_v5  ;;  %v12190_v2 = vld [vmem:[#allocation7 + $0xe0] sm:$0xff] }
 0x296   : > { %v7570_v20 = vadd.f32 %v7314_v39, %v5778_v40  ;;  %v4066_v10 = vrot.slane %v4050_v38, %v8829_v33  ;;  %v4057_v43 = vrot.slane %v4043_v36, %v8829_v33  ;;  %v939_v4 = vpop.permute.xlu1 %938  ;;  %v937_v58 = vpop.permute.xlu0 %936  ;;  %v5783_v0 = vmul.f32 %v8228_v34, %v5151_v21 }
 0x297   : > { %v5782_v44 = vmul.f32 %v8229_v23, %v5147_v25  ;;  %v5155_v41 = vrot.slane %v2434_v22, %v8866_v51  ;;  %v4090_v31 = vcombine.high %v12167_v62, %v12167_v62  ;;  %7827 = vst [vmem:[%s9275_s20 + $0x698] sm:$0xff] %v7571_v60  ;;  %v7317_v24 = vmul.f32 %v6679_v56, %v939_v4  ;;  %v8232_v56 = vld [vmem:[%s8683_s4 + $0x6d8] sm:$0xff] }
 0x298   : > { %7826 = vst [vmem:[%s9275_s20 + $0x690] sm:$0xff] %v7570_v20  ;;  %v7316_v5 = vmul.f32 %v6675_v63, %v937_v58  ;;  %v5785_v32 = vmul.f32 %v8230_v13, %v5159_v42  ;;  %v2427_v19 = vcombine.high %v2425_v7, %v2425_v7  ;;  %v6695_v57 = vrot.slane %v12167_v62, %v8866_v51 }
 0x299   : > { %v5167_v55 = vrot.slane %v2458_v47, %v8866_v51  ;;  %v5163_v29 = vrot.slane %v2456_v3, %v8866_v51  ;;  %v12184_v54 = vrot.slane %v2425_v7, %v8829_v33  ;;  %v7573_v38 = vadd.f32 %v7317_v24, %v5781_v12 }
 0x29a   : > { %v7572_v15 = vadd.f32 %v7316_v5, %v5780_v50  ;;  %v6691_v1 = vrot.slane %v4066_v10, %v8866_v51  ;;  %v4059_v61 = vcombine.high %v4057_v43, %v4057_v43  ;;  %v943_v40 = vpop.permute.xlu1 %942  ;;  %v941_v9 = vpop.permute.xlu0 %940  ;;  %v5784_v26 = vmul.f32 %v8231_v59, %v5155_v41  ;;  %v8233_v50 = vld [vmem:[%s8683_s4 + $0x6d0] sm:$0xff]  ;;  %v8235_v5 = vld [vmem:[%s8683_s4 + $0x6e8] sm:$0xff] }
 0x29b   : > { %v6703_v52 = vrot.slane %v4090_v31, %v8866_v51  ;;  %v4088_v45 = vcombine.high %v4066_v10, %v4066_v10  ;;  %v2467_v11 = vrot.slane %v1052_v49, %v8829_v33  ;;  %7829 = vst [vmem:[%s9275_s20 + $0x6a8] sm:$0xff] %v7573_v38  ;;  %v7319_v14 = vmul.f32 %v6687_v16, %v943_v40  ;;  %v8234_v16 = vld [vmem:[%s8683_s4 + $0x6e0] sm:$0xff]  ;;  %v8236_v40 = vld [vmem:[%s8683_s4 + $0x6f8] sm:$0xff] }
 0x29c   : > { %7828 = vst [vmem:[%s9275_s20 + $0x6a0] sm:$0xff] %v7572_v15  ;;  %v7318_v17 = vmul.f32 %v6683_v8, %v941_v9  ;;  %v2455_v63 = vrot.slane %v2427_v19, %v8829_v33  ;;  %v12196_v35 = vrot.slane %v4057_v43, %v8829_v33  ;;  %v5787_v28 = vmul.f32 %v8232_v56, %v5167_v55 }
 0x29d   : > { %v5786_v6 = vmul.f32 %v8233_v50, %v5163_v29  ;;  %v5171_v37 = vrot.slane %v12184_v54, %v8866_v51  ;;  %v2460_v30 = vcombine.high %v1052_v49, %v1052_v49  ;;  %v7575_v48 = vadd.f32 %v7319_v14, %v5783_v0 }
 0x29e   : > { %v7574_v53 = vadd.f32 %v7318_v17, %v5782_v44  ;;  %v4087_v12 = vrot.slane %v4059_v61, %v8829_v33  ;;  %v4099_v36 = vrot.slane %v12190_v2, %v8829_v33  ;;  %v947_v27 = vpop.permute.xlu1 %946  ;;  %v945_v18 = vpop.permute.xlu0 %944  ;;  %v6699_v21 = vrot.slane %v4088_v45, %v8866_v51 }
 0x29f   : > { %v2459_v25 = vcombine.high %v2455_v63, %v2455_v63  ;;  %v2457_v8 = vcombine.high %v12184_v54, %v12184_v54  ;;  %v2475_v22 = vcombine.high %v2467_v11, %v2467_v11  ;;  %7831 = vst [vmem:[%s9275_s20 + $0x6b8] sm:$0xff] %v7575_v48  ;;  %v7321_v46 = vmul.f32 %v6695_v57, %v947_v27 }
 0x2a0   : > { %7830 = vst [vmem:[%s9275_s20 + $0x6b0] sm:$0xff] %v7574_v53  ;;  %v7320_v39 = vmul.f32 %v6691_v1, %v945_v18  ;;  %v5175_v42 = vrot.slane %v2455_v63, %v8866_v51  ;;  %v6707_v7 = vrot.slane %v12196_v35, %v8866_v51  ;;  %v5788_v62 = vmul.f32 %v8234_v16, %v5171_v37  ;;  %v12240_v63 = vld [vmem:[#allocation5 + $0xe8] sm:$0xff]  ;;  %v8239_v18 = vld [vmem:[%s8683_s4 + $0x700] sm:$0xff] }
 0x2a1   : > { %v4091_v47 = vcombine.high %v4087_v12, %v4087_v12  ;;  %v4089_v3 = vcombine.high %v12196_v35, %v12196_v35  ;;  %v2474_v60 = vrot.slane %v2460_v30, %v8829_v33  ;;  %v7577_v20 = vadd.f32 %v7321_v46, %v5785_v32 }
 0x2a2   : > { %v7576_v10 = vadd.f32 %v7320_v39, %v5784_v26  ;;  %v6711_v43 = vrot.slane %v4087_v12, %v8866_v51  ;;  %v4107_v4 = vcombine.high %v4099_v36, %v4099_v36  ;;  %v951_v58 = vpop.permute.xlu1 %950  ;;  %v949_v34 = vpop.permute.xlu0 %948  ;;  %v5183_v0 = vrot.slane %v2459_v25, %v8866_v51 }
 0x2a3   : > { %v2497_v23 = vrot.slane %v2475_v22, %v8829_v33  ;;  %v2483_v44 = vrot.slane %v2467_v11, %v8829_v33  ;;  %v4092_v41 = vcombine.high %v12190_v2, %v12190_v2  ;;  %7833 = vst [vmem:[%s9275_s20 + $0x6c8] sm:$0xff] %v7577_v20  ;;  %v7323_v31 = vmul.f32 %v6703_v52, %v951_v58  ;;  %v8237_v2 = vld [vmem:[%s8683_s4 + $0x6f0] sm:$0xff] }
 0x2a4   : > { %7832 = vst [vmem:[%s9275_s20 + $0x6c0] sm:$0xff] %v7576_v10  ;;  %v7322_v24 = vmul.f32 %v6699_v21, %v949_v34  ;;  %v5789_v13 = vmul.f32 %v8235_v5, %v5175_v42  ;;  %v5179_v32 = vrot.slane %v2457_v8, %v8866_v51  ;;  %v6719_v19 = vrot.slane %v4091_v47, %v8866_v51  ;;  %v8240_v10 = vld [vmem:[%s8683_s4 + $0x718] sm:$0xff]  ;;  %v8241_v5 = vld [vmem:[%s8683_s4 + $0x710] sm:$0xff] }
 0x2a5   : > { %v6715_v49 = vrot.slane %v4089_v3, %v8866_v51  ;;  %v12230_v57 = vrot.slane %v4099_v36, %v8829_v33  ;;  %v2476_v55 = vcombine.high %v2474_v60, %v2474_v60  ;;  %v7579_v29 = vadd.f32 %v7323_v31, %v5787_v28  ;;  %v8238_v36 = vld [vmem:[%s8683_s4 + $0x708] sm:$0xff] }
 0x2a6   : > { %v7578_v54 = vadd.f32 %v7322_v24, %v5786_v6  ;;  %v4129_v38 = vrot.slane %v4107_v4, %v8829_v33  ;;  %v2507_v15 = vcombine.high %v2497_v23, %v2497_v23  ;;  %v955_v1 = vpop.permute.xlu1 %954  ;;  %v953_v61 = vpop.permute.xlu0 %952  ;;  %v5791_v9 = vmul.f32 %v8236_v40, %v5183_v0 }
 0x2a7   : > { %v5191_v59 = vrot.slane %v2497_v23, %v8866_v51  ;;  %v5187_v26 = vrot.slane %v2483_v44, %v8866_v51  ;;  %v4106_v52 = vrot.slane %v4092_v41, %v8829_v33  ;;  %7835 = vst [vmem:[%s9275_s20 + $0x6d8] sm:$0xff] %v7579_v29  ;;  %v7325_v45 = vmul.f32 %v6711_v43, %v955_v1 }
 0x2a8   : > { %7834 = vst [vmem:[%s9275_s20 + $0x6d0] sm:$0xff] %v7578_v54  ;;  %v7324_v11 = vmul.f32 %v6707_v7, %v953_v61  ;;  %v5790_v14 = vmul.f32 %v8237_v2, %v5179_v32  ;;  %v2505_v17 = vcombine.high %v2483_v44, %v2483_v44  ;;  %v6723_v35 = vrot.slane %v12230_v57, %v8866_v51  ;;  %v12257_v7 = vld [vmem:[#allocation7 + $0xe8] sm:$0xff] }
 0x2a9   : > { %v4139_v56 = vcombine.high %v4129_v38, %v4129_v38  ;;  %v2504_v28 = vrot.slane %v2476_v55, %v8829_v33  ;;  %v2490_v50 = vrot.slane %v2474_v60, %v8829_v33  ;;  %v7581_v6 = vadd.f32 %v7325_v45, %v5789_v13 }
 0x2aa   : > { %v7580_v37 = vadd.f32 %v7324_v11, %v5788_v62  ;;  %v6727_v30 = vrot.slane %v4129_v38, %v8866_v51  ;;  %v5199_v48 = vrot.slane %v2507_v15, %v8866_v51  ;;  %v959_v53 = vpop.permute.xlu1 %958  ;;  %v957_v12 = vpop.permute.xlu0 %956  ;;  %v5793_v27 = vmul.f32 %v8238_v36, %v5191_v59 }
 0x2ab   : > { %v5792_v21 = vmul.f32 %v8239_v18, %v5187_v26  ;;  %v4108_v25 = vcombine.high %v4106_v52, %v4106_v52  ;;  %v2516_v8 = vrot.slane %v12240_v63, %v8829_v33  ;;  %7837 = vst [vmem:[%s9275_s20 + $0x6e8] sm:$0xff] %v7581_v6  ;;  %v7327_v22 = vmul.f32 %v6719_v19, %v959_v53  ;;  %v8242_v19 = vld [vmem:[%s8683_s4 + $0x728] sm:$0xff] }
 0x2ac   : > { %7836 = vst [vmem:[%s9275_s20 + $0x6e0] sm:$0xff] %v7580_v37  ;;  %v7326_v46 = vmul.f32 %v6715_v49, %v957_v12  ;;  %v4137_v39 = vcombine.high %v12230_v57, %v12230_v57  ;;  %v5195_v42 = vrot.slane %v2505_v17, %v8866_v51  ;;  %v6735_v16 = vrot.slane %v4139_v56, %v8866_v51  ;;  %v8243_v57 = vld [vmem:[%s8683_s4 + $0x720] sm:$0xff] }
 0x2ad   : > { %v5207_v62 = vrot.slane %v2504_v28, %v8866_v51  ;;  %v5203_v47 = vrot.slane %v2490_v50, %v8866_v51  ;;  %v2506_v3 = vcombine.high %v2490_v50, %v2490_v50  ;;  %v7583_v60 = vadd.f32 %v7327_v22, %v5791_v9 }
 0x2ae   : > { %v7582_v20 = vadd.f32 %v7326_v46, %v5790_v14  ;;  %v5795_v43 = vmul.f32 %v8240_v10, %v5199_v48  ;;  %v2508_v4 = vcombine.high %v2504_v28, %v2504_v28  ;;  %v963_v58 = vpop.permute.xlu1 %962  ;;  %v961_v34 = vpop.permute.xlu0 %960  ;;  %v4136_v0 = vrot.slane %v4108_v25, %v8829_v33 }
 0x2af   : > { %v4122_v23 = vrot.slane %v4106_v52, %v8829_v33  ;;  %v2524_v44 = vcombine.high %v2516_v8, %v2516_v8  ;;  %v4148_v41 = vrot.slane %v12257_v7, %v8829_v33  ;;  %7839 = vst [vmem:[%s9275_s20 + $0x6f8] sm:$0xff] %v7583_v60  ;;  %v7329_v31 = vmul.f32 %v6727_v30, %v963_v58  ;;  %v8245_v30 = vld [vmem:[%s8683_s4 + $0x738] sm:$0xff]  ;;  %v8246_v58 = vld [vmem:[%s8683_s4 + $0x748] sm:$0xff] }
 0x2b0   : > { %7838 = vst [vmem:[%s9275_s20 + $0x6f0] sm:$0xff] %v7582_v20  ;;  %v7328_v24 = vmul.f32 %v6723_v35, %v961_v34  ;;  %v5794_v13 = vmul.f32 %v8241_v5, %v5195_v42  ;;  %v6731_v32 = vrot.slane %v4137_v39, %v8866_v51  ;;  %v5797_v49 = vmul.f32 %v8242_v19, %v5207_v62 }
 0x2b1   : > { %v5796_v55 = vmul.f32 %v8243_v57, %v5203_v47  ;;  %v5211_v29 = vrot.slane %v2506_v3, %v8866_v51  ;;  %v2509_v54 = vcombine.high %v12240_v63, %v12240_v63  ;;  %v7585_v38 = vadd.f32 %v7329_v31, %v5793_v27  ;;  %v8244_v63 = vld [vmem:[%s8683_s4 + $0x730] sm:$0xff] }
 0x2b2   : > { %v7584_v15 = vadd.f32 %v7328_v24, %v5792_v21  ;;  %v5215_v1 = vrot.slane %v2508_v4, %v8866_v51  ;;  %v4138_v61 = vcombine.high %v4122_v23, %v4122_v23  ;;  %v967_v40 = vpop.permute.xlu1 %966  ;;  %v6743_v59 = vrot.slane %v4136_v0, %v8866_v51 }
 0x2b3   : > { %v965_v9 = vpop.permute.xlu0 %964  ;;  %v6739_v26 = vrot.slane %v4122_v23, %v8866_v51  ;;  %v2546_v52 = vrot.slane %v2524_v44, %v8829_v33  ;;  %v4156_v45 = vcombine.high %v4148_v41, %v4148_v41  ;;  %7841 = vst [vmem:[%s9275_s20 + $0x708] sm:$0xff] %v7585_v38  ;;  %v7331_v11 = vmul.f32 %v6735_v16, %v967_v40 }
 0x2b4   : > { %7840 = vst [vmem:[%s9275_s20 + $0x700] sm:$0xff] %v7584_v15  ;;  %v7330_v2 = vmul.f32 %v6731_v32, %v965_v9  ;;  %v4140_v14 = vcombine.high %v4136_v0, %v4136_v0  ;;  %v4141_v17 = vcombine.high %v12257_v7, %v12257_v7  ;;  %v5798_v35 = vmul.f32 %v8244_v63, %v5211_v29  ;;  %v8247_v32 = vld [vmem:[%s8683_s4 + $0x740] sm:$0xff]  ;;  %v8249_v9 = vld [vmem:[%s8683_s4 + $0x750] sm:$0xff] }
 0x2b5   : > { %v2532_v56 = vrot.slane %v2516_v8, %v8829_v33  ;;  %v2556_v28 = vcombine.high %v2546_v52, %v2546_v52  ;;  %v2523_v50 = vrot.slane %v2509_v54, %v8829_v33  ;;  %v7587_v6 = vadd.f32 %v7331_v11, %v5795_v43  ;;  %v12292_v8 = vld [vmem:[#allocation5 + $0xf0] sm:$0xff] }
 0x2b6   : > { %v7586_v37 = vadd.f32 %v7330_v2, %v5794_v13  ;;  %v5799_v48 = vmul.f32 %v8245_v30, %v5215_v1  ;;  %v6747_v53 = vrot.slane %v4138_v61, %v8866_v51  ;;  %v971_v12 = vpop.permute.xlu1 %970  ;;  %v4178_v27 = vrot.slane %v4156_v45, %v8829_v33  ;;  %v2686_v13 = vld [vmem:[#allocation7 + $0xf0] sm:$0xff] }
 0x2b7   : > { %v969_v36 = vpop.permute.xlu0 %968  ;;  %v5223_v18 = vrot.slane %v2546_v52, %v8866_v51  ;;  %v4164_v21 = vrot.slane %v4148_v41, %v8829_v33  ;;  %v2554_v25 = vcombine.high %v2532_v56, %v2532_v56  ;;  %7843 = vst [vmem:[%s9275_s20 + $0x718] sm:$0xff] %v7587_v6  ;;  %v7333_v22 = vmul.f32 %v6743_v59, %v971_v12 }
 0x2b8   : > { %7842 = vst [vmem:[%s9275_s20 + $0x710] sm:$0xff] %v7586_v37  ;;  %v7332_v46 = vmul.f32 %v6739_v26, %v969_v36  ;;  %v6751_v39 = vrot.slane %v4140_v14, %v8866_v51  ;;  %v4155_v42 = vrot.slane %v4141_v17, %v8829_v33  ;;  %v5219_v7 = vrot.slane %v2532_v56, %v8866_v51 }
 0x2b9   : > { %v5231_v16 = vrot.slane %v2556_v28, %v8866_v51  ;;  %v2525_v62 = vcombine.high %v2523_v50, %v2523_v50  ;;  %v2539_v47 = vrot.slane %v2523_v50, %v8829_v33  ;;  %v7589_v3 = vadd.f32 %v7333_v22, %v5797_v49  ;;  %v8248_v49 = vld [vmem:[%s8683_s4 + $0x758] sm:$0xff] }
 0x2ba   : > { %v7588_v60 = vadd.f32 %v7332_v46, %v5796_v55  ;;  %v4188_v20 = vcombine.high %v4178_v27, %v4178_v27  ;;  %v2565_v10 = vrot.slane %v12292_v8, %v8829_v33  ;;  %v975_v43 = vpop.permute.xlu1 %974  ;;  %v5801_v34 = vmul.f32 %v8246_v58, %v5223_v18 }
 0x2bb   : > { %v973_v4 = vpop.permute.xlu0 %972  ;;  %v6759_v0 = vrot.slane %v4178_v27, %v8866_v51  ;;  %v6755_v23 = vrot.slane %v4164_v21, %v8866_v51  ;;  %v5227_v44 = vrot.slane %v2554_v25, %v8866_v51  ;;  %7845 = vst [vmem:[%s9275_s20 + $0x728] sm:$0xff] %v7589_v3  ;;  %v7335_v41 = vmul.f32 %v6751_v39, %v975_v43  ;;  %v8251_v39 = vld [vmem:[%s8683_s4 + $0x768] sm:$0xff] }
 0x2bc   : > { %7844 = vst [vmem:[%s9275_s20 + $0x720] sm:$0xff] %v7588_v60  ;;  %v7334_v31 = vmul.f32 %v6747_v53, %v973_v4  ;;  %v4186_v24 = vcombine.high %v4164_v21, %v4164_v21  ;;  %v4157_v5 = vcombine.high %v4155_v42, %v4155_v42  ;;  %v5800_v19 = vmul.f32 %v8247_v32, %v5219_v7 }
 0x2bd   : > { %v5803_v57 = vmul.f32 %v8248_v49, %v5231_v16  ;;  %v2553_v55 = vrot.slane %v2525_v62, %v8829_v33  ;;  %v5235_v29 = vrot.slane %v2539_v47, %v8866_v51  ;;  %v7591_v54 = vadd.f32 %v7335_v41, %v5799_v48 }
 0x2be   : > { %v7590_v38 = vadd.f32 %v7334_v31, %v5798_v35  ;;  %v6767_v15 = vrot.slane %v4188_v20, %v8866_v51  ;;  %v2573_v1 = vcombine.high %v2565_v10, %v2565_v10  ;;  %v979_v61 = vpop.permute.xlu1 %978  ;;  %v5802_v59 = vmul.f32 %v8249_v9, %v5227_v44  ;;  %v8250_v35 = vld [vmem:[%s8683_s4 + $0x760] sm:$0xff] }
 0x2bf   : > { %v977_v40 = vpop.permute.xlu0 %976  ;;  %v4171_v26 = vrot.slane %v4155_v42, %v8829_v33  ;;  %v2555_v52 = vcombine.high %v2539_v47, %v2539_v47  ;;  %v4197_v45 = vrot.slane %v2686_v13, %v8829_v33  ;;  %7847 = vst [vmem:[%s9275_s20 + $0x738] sm:$0xff] %v7591_v54  ;;  %v7337_v11 = vmul.f32 %v6759_v0, %v979_v61  ;;  %v8254_v54 = vld [vmem:[%s8683_s4 + $0x788] sm:$0xff] }
 0x2c0   : > { %7846 = vst [vmem:[%s9275_s20 + $0x730] sm:$0xff] %v7590_v38  ;;  %v7336_v2 = vmul.f32 %v6755_v23, %v977_v40  ;;  %v6763_v14 = vrot.slane %v4186_v24, %v8866_v51  ;;  %v4185_v17 = vrot.slane %v4157_v5, %v8829_v33  ;;  %v5239_v63 = vrot.slane %v2553_v55, %v8866_v51  ;;  %v8252_v24 = vld [vmem:[%s8683_s4 + $0x778] sm:$0xff] }
 0x2c1   : > { %v5804_v56 = vmul.f32 %v8250_v35, %v5235_v29  ;;  %v2557_v28 = vcombine.high %v2553_v55, %v2553_v55  ;;  %v2558_v50 = vcombine.high %v12292_v8, %v12292_v8  ;;  %v7593_v6 = vadd.f32 %v7337_v11, %v5801_v34  ;;  %v8253_v55 = vld [vmem:[%s8683_s4 + $0x770] sm:$0xff] }
 0x2c2   : > { %v7592_v37 = vadd.f32 %v7336_v2, %v5800_v19  ;;  %v4187_v30 = vcombine.high %v4171_v26, %v4171_v26  ;;  %v2595_v48 = vrot.slane %v2573_v1, %v8829_v33  ;;  %v983_v53 = vpop.permute.xlu1 %982  ;;  %v6771_v36 = vrot.slane %v4171_v26, %v8866_v51  ;;  %v1055_v26 = vld [vmem:[#allocation5 + $0xf8] sm:$0xff] }
 0x2c3   : > { %v981_v12 = vpop.permute.xlu0 %980  ;;  %v5243_v27 = vrot.slane %v2555_v52, %v8866_v51  ;;  %v4205_v18 = vcombine.high %v4197_v45, %v4197_v45  ;;  %v4190_v21 = vcombine.high %v2686_v13, %v2686_v13  ;;  %7849 = vst [vmem:[%s9275_s20 + $0x748] sm:$0xff] %v7593_v6  ;;  %v7339_v25 = vmul.f32 %v6767_v15, %v983_v53 }
 0x2c4   : > { %7848 = vst [vmem:[%s9275_s20 + $0x740] sm:$0xff] %v7592_v37  ;;  %v7338_v22 = vmul.f32 %v6763_v14, %v981_v12  ;;  %v6775_v8 = vrot.slane %v4185_v17, %v8866_v51  ;;  %v4189_v46 = vcombine.high %v4185_v17, %v4185_v17  ;;  %v5805_v42 = vmul.f32 %v8251_v39, %v5239_v63  ;;  %v12353_v14 = vld [vmem:[#allocation7 + $0xf8] sm:$0xff]  ;;  %v8255_v17 = vld [vmem:[%s8683_s4 + $0x780] sm:$0xff] }
 0x2c5   : > { %v5247_v7 = vrot.slane %v2557_v28, %v8866_v51  ;;  %v2581_v16 = vrot.slane %v2565_v10, %v8829_v33  ;;  %v2572_v62 = vrot.slane %v2558_v50, %v8829_v33  ;;  %v7595_v47 = vadd.f32 %v7339_v25, %v5803_v57  ;;  %v8256_v12 = vld [vmem:[%s8683_s4 + $0x798] sm:$0xff] }
 0x2c6   : > { %v7594_v3 = vadd.f32 %v7338_v22, %v5802_v59  ;;  %v6779_v60 = vrot.slane %v4187_v30, %v8866_v51  ;;  %v5255_v20 = vrot.slane %v2595_v48, %v8866_v51  ;;  %v987_v43 = vpop.permute.xlu1 %986  ;;  %v4227_v58 = vrot.slane %v4205_v18, %v8829_v33 }
 0x2c7   : > { %v985_v4 = vpop.permute.xlu0 %984  ;;  %v4213_v34 = vrot.slane %v4197_v45, %v8829_v33  ;;  %v2605_v0 = vcombine.high %v2595_v48, %v2595_v48  ;;  %v4204_v23 = vrot.slane %v4190_v21, %v8829_v33  ;;  %7851 = vst [vmem:[%s9275_s20 + $0x758] sm:$0xff] %v7595_v47  ;;  %v7341_v10 = vmul.f32 %v6775_v8, %v987_v43  ;;  %v8257_v8 = vld [vmem:[%s8683_s4 + $0x790] sm:$0xff] }
 0x2c8   : > { %7850 = vst [vmem:[%s9275_s20 + $0x750] sm:$0xff] %v7594_v3  ;;  %v7340_v44 = vmul.f32 %v6771_v36, %v985_v4  ;;  %v6783_v41 = vrot.slane %v4189_v46, %v8866_v51  ;;  %v2603_v31 = vcombine.high %v2581_v16, %v2581_v16  ;;  %v5807_v5 = vmul.f32 %v8252_v24, %v5247_v7  ;;  %v8258_v24 = vld [vmem:[%s8683_s4 + $0x7a8] sm:$0xff] }
 0x2c9   : > { %v5251_v13 = vrot.slane %v2581_v16, %v8866_v51  ;;  %v4237_v32 = vcombine.high %v4227_v58, %v4227_v58  ;;  %v2574_v19 = vcombine.high %v2572_v62, %v2572_v62  ;;  %v7597_v49 = vadd.f32 %v7341_v10, %v5805_v42 }
 0x2ca   : > { %v7596_v57 = vadd.f32 %v7340_v44, %v5804_v56  ;;  %v5806_v29 = vmul.f32 %v8253_v55, %v5243_v27  ;;  %v5809_v38 = vmul.f32 %v8254_v54, %v5255_v20  ;;  %v991_v15 = vpop.permute.xlu1 %990  ;;  %v6791_v61 = vrot.slane %v4227_v58, %v8866_v51 }
 0x2cb   : > { %v989_v1 = vpop.permute.xlu0 %988  ;;  %v6787_v40 = vrot.slane %v4213_v34, %v8866_v51  ;;  %v5263_v9 = vrot.slane %v2605_v0, %v8866_v51  ;;  %v4206_v59 = vcombine.high %v4204_v23, %v4204_v23  ;;  %7853 = vst [vmem:[%s9275_s20 + $0x768] sm:$0xff] %v7597_v49  ;;  %v7343_v52 = vmul.f32 %v6783_v41, %v991_v15 }
 0x2cc   : > { %7852 = vst [vmem:[%s9275_s20 + $0x760] sm:$0xff] %v7596_v57  ;;  %v7342_v45 = vmul.f32 %v6779_v60, %v989_v1  ;;  %v4235_v11 = vcombine.high %v4213_v34, %v4213_v34  ;;  %v5259_v2 = vrot.slane %v2603_v31, %v8866_v51  ;;  %v5808_v63 = vmul.f32 %v8255_v17, %v5251_v13  ;;  %v8259_v13 = vld [vmem:[%s8683_s4 + $0x7a0] sm:$0xff]  ;;  %v8260_v1 = vld [vmem:[%s8683_s4 + $0x7b0] sm:$0xff] }
 0x2cd   : > { %v6799_v35 = vrot.slane %v4237_v32, %v8866_v51  ;;  %v2602_v56 = vrot.slane %v2574_v19, %v8829_v33  ;;  %v2588_v28 = vrot.slane %v2572_v62, %v8829_v33  ;;  %v7599_v50 = vadd.f32 %v7343_v52, %v5807_v5 }
 0x2ce   : > { %v7598_v6 = vadd.f32 %v7342_v45, %v5806_v29  ;;  %v4220_v37 = vrot.slane %v4204_v23, %v8829_v33  ;;  %v2614_v30 = vrot.slane %v1055_v26, %v8829_v33  ;;  %v995_v48 = vpop.permute.xlu1 %994  ;;  %v5811_v36 = vmul.f32 %v8256_v12, %v5263_v9 }
 0x2cf   : > { %v993_v53 = vpop.permute.xlu0 %992  ;;  %v4234_v27 = vrot.slane %v4206_v59, %v8829_v33  ;;  %v2604_v18 = vcombine.high %v2588_v28, %v2588_v28  ;;  %v4246_v21 = vrot.slane %v12353_v14, %v8829_v33  ;;  %7855 = vst [vmem:[%s9275_s20 + $0x778] sm:$0xff] %v7599_v50  ;;  %v7345_v25 = vmul.f32 %v6791_v61, %v995_v48 }
 0x2d0   : > { %7854 = vst [vmem:[%s9275_s20 + $0x770] sm:$0xff] %v7598_v6  ;;  %v7344_v22 = vmul.f32 %v6787_v40, %v993_v53  ;;  %v5810_v46 = vmul.f32 %v8257_v8, %v5259_v2  ;;  %v6795_v39 = vrot.slane %v4235_v11, %v8866_v51  ;;  %v5271_v42 = vrot.slane %v2602_v56, %v8866_v51  ;;  %v8261_v2 = vld [vmem:[%s8683_s4 + $0x7b8] sm:$0xff] }
 0x2d1   : > { %v5267_v7 = vrot.slane %v2588_v28, %v8866_v51  ;;  %v2606_v16 = vcombine.high %v2602_v56, %v2602_v56  ;;  %v2607_v62 = vcombine.high %v1055_v26, %v1055_v26  ;;  %v7601_v47 = vadd.f32 %v7345_v25, %v5809_v38 }
 0x2d2   : > { %v7600_v3 = vadd.f32 %v7344_v22, %v5808_v63  ;;  %v6803_v60 = vrot.slane %v4220_v37, %v8866_v51  ;;  %v2622_v20 = vcombine.high %v2614_v30, %v2614_v30  ;;  %v999_v43 = vpop.permute.xlu1 %998  ;;  %v6807_v58 = vrot.slane %v4234_v27, %v8866_v51 }
 0x2d3   : > { %v997_v4 = vpop.permute.xlu0 %996  ;;  %v4236_v34 = vcombine.high %v4220_v37, %v4220_v37  ;;  %v5275_v0 = vrot.slane %v2604_v18, %v8866_v51  ;;  %v4254_v23 = vcombine.high %v4246_v21, %v4246_v21  ;;  %7857 = vst [vmem:[%s9275_s20 + $0x788] sm:$0xff] %v7601_v47  ;;  %v7347_v10 = vmul.f32 %v6799_v35, %v999_v43 }
 0x2d4   : > { %7856 = vst [vmem:[%s9275_s20 + $0x780] sm:$0xff] %v7600_v3  ;;  %v7346_v44 = vmul.f32 %v6795_v39, %v997_v4  ;;  %v4238_v41 = vcombine.high %v4234_v27, %v4234_v27  ;;  %v4239_v31 = vcombine.high %v12353_v14, %v12353_v14  ;;  %v5813_v5 = vmul.f32 %v8258_v24, %v5271_v42 }
 0x2d5   : > { %v5812_v32 = vmul.f32 %v8259_v13, %v5267_v7  ;;  %v5279_v19 = vrot.slane %v2606_v16, %v8866_v51  ;;  %v2621_v49 = vrot.slane %v2607_v62, %v8829_v33  ;;  %v7603_v57 = vadd.f32 %v7347_v10, %v5811_v36  ;;  %v8262_v7 = vld [vmem:[%s8683_s4 + $0x7c8] sm:$0xff]  ;;  %v8263_v62 = vld [vmem:[%s8683_s4 + $0x7c0] sm:$0xff] }
 0x2d6   : > { %v7602_v55 = vadd.f32 %v7346_v44, %v5810_v46  ;;  %v2644_v29 = vrot.slane %v2622_v20, %v8829_v33  ;;  %v2630_v54 = vrot.slane %v2614_v30, %v8829_v33  ;;  %v1003_v38 = vpop.permute.xlu1 %1002  ;;  %v5814_v61 = vmul.f32 %v8260_v1, %v5275_v0  ;;  %v8265_v44 = vld [vmem:[%s8683_s4 + $0x7d0] sm:$0xff]  ;;  %v8266_v1 = vld [vmem:[%s8683_s4 + $0x7e8] sm:$0xff] }
 0x2d7   : > { %v1001_v15 = vpop.permute.xlu0 %1000  ;;  %v6811_v40 = vrot.slane %v4236_v34, %v8866_v51  ;;  %v4276_v9 = vrot.slane %v4254_v23, %v8829_v33  ;;  %v4262_v59 = vrot.slane %v4246_v21, %v8829_v33  ;;  %7859 = vst [vmem:[%s9275_s20 + $0x798] sm:$0xff] %v7603_v57  ;;  %v7349_v26 = vmul.f32 %v6807_v58, %v1003_v38  ;;  %v8264_v23 = vld [vmem:[%s8683_s4 + $0x7d8] sm:$0xff] }
 0x2d8   : > { %7858 = vst [vmem:[%s9275_s20 + $0x790] sm:$0xff] %v7602_v55  ;;  %v7348_v52 = vmul.f32 %v6803_v60, %v1001_v15  ;;  %v6815_v45 = vrot.slane %v4238_v41, %v8866_v51  ;;  %v4253_v11 = vrot.slane %v4239_v31, %v8829_v33  ;;  %v5815_v14 = vmul.f32 %v8261_v2, %v5279_v19 }
 0x2d9   : > { %v2654_v17 = vcombine.high %v2644_v29, %v2644_v29  ;;  %v2652_v63 = vcombine.high %v2630_v54, %v2630_v54  ;;  %v2623_v35 = vcombine.high %v2621_v49, %v2621_v49  ;;  %v7605_v56 = vadd.f32 %v7349_v26, %v5813_v5 }
 0x2da   : > { %v7604_v28 = vadd.f32 %v7348_v52, %v5812_v32  ;;  %v5287_v50 = vrot.slane %v2644_v29, %v8866_v51  ;;  %v5283_v6 = vrot.slane %v2630_v54, %v8866_v51  ;;  %v1007_v37 = vpop.permute.xlu1 %1006  ;;  %v6823_v48 = vrot.slane %v4276_v9, %v8866_v51 }
 0x2db   : > { %v1005_v30 = vpop.permute.xlu0 %1004  ;;  %v6819_v53 = vrot.slane %v4262_v59, %v8866_v51  ;;  %v4286_v12 = vcombine.high %v4276_v9, %v4276_v9  ;;  %7861 = vst [vmem:[%s9275_s20 + $0x7a8] sm:$0xff] %v7605_v56  ;;  %v7351_v36 = vmul.f32 %v6815_v45, %v1007_v37  ;;  %v4284_v18 = vcombine.high %v4262_v59, %v4262_v59  ;;  %v8269_v37 = vld [vmem:[%s8683_s4 + $0x7f0] sm:$0xff] }
 0x2dc   : > { %7860 = vst [vmem:[%s9275_s20 + $0x7a0] sm:$0xff] %v7604_v28  ;;  %v7350_v27 = vmul.f32 %v6811_v40, %v1005_v30  ;;  %v4255_v21 = vcombine.high %v4253_v11, %v4253_v11  ;;  %v5295_v25 = vrot.slane %v2654_v17, %v8866_v51  ;;  %v5291_v22 = vrot.slane %v2652_v63, %v8866_v51  ;;  %v8267_v40 = vld [vmem:[%s8683_s4 + $0x7e0] sm:$0xff] }
 0x2dd   : > { %v2651_v8 = vrot.slane %v2623_v35, %v8829_v33  ;;  %v2637_v46 = vrot.slane %v2621_v49, %v8829_v33  ;;  %v7607_v39 = vadd.f32 %v7351_v36, %v5815_v14  ;;  %v5817_v16 = vmul.f32 %v8262_v7, %v5287_v50  ;;  %v8268_v50 = vld [vmem:[%s8683_s4 + $0x7f8] sm:$0xff] }
 0x2de   : > { %v7606_v42 = vadd.f32 %v7350_v27, %v5814_v61  ;;  %v5816_v47 = vmul.f32 %v8263_v62, %v5283_v6  ;;  %v1011_v3 = vpop.permute.xlu1 %1010  ;;  %v6831_v20 = vrot.slane %v4286_v12, %v8866_v51  ;;  %v4269_v43 = vrot.slane %v4253_v11, %v8829_v33 }
 0x2df   : > { %v1009_v60 = vpop.permute.xlu0 %1008  ;;  %7863 = vst [vmem:[%s9275_s20 + $0x7b8] sm:$0xff] %v7607_v39  ;;  %v7353_v4 = vmul.f32 %v6823_v48, %v1011_v3  ;;  %v6827_v34 = vrot.slane %v4284_v18, %v8866_v51  ;;  %v4283_v0 = vrot.slane %v4255_v21, %v8829_v33  ;;  %v5819_v10 = vmul.f32 %v8264_v23, %v5295_v25 }
 0x2e0   : > { %7862 = vst [vmem:[%s9275_s20 + $0x7b0] sm:$0xff] %v7606_v42  ;;  %v7352_v58 = vmul.f32 %v6819_v53, %v1009_v60  ;;  %v5818_v41 = vmul.f32 %v8265_v44, %v5291_v22  ;;  %v5303_v31 = vrot.slane %v2651_v8, %v8866_v51  ;;  %v5299_v24 = vrot.slane %v2637_v46, %v8866_v51 }
 0x2e1   : > { %v7609_v5 = vadd.f32 %v7353_v4, %v5817_v16  ;;  %v2655_v32 = vcombine.high %v2651_v8, %v2651_v8  ;;  %v2653_v19 = vcombine.high %v2637_v46, %v2637_v46  ;;  %v6835_v55 = vrot.slane %v4269_v43, %v8866_v51 }
 0x2e2   : > { %v7608_v13 = vadd.f32 %v7352_v58, %v5816_v47  ;;  %v1015_v49 = vpop.permute.xlu1 %1014  ;;  %v4285_v33 = vcombine.high %v4269_v43, %v4269_v43  ;;  %v6839_v38 = vrot.slane %v4283_v0, %v8866_v51  ;;  %v4287_v15 = vcombine.high %v4283_v0, %v4283_v0 }
 0x2e3   : > { %v1013_v57 = vpop.permute.xlu0 %1012  ;;  %7865 = vst [vmem:[%s9275_s20 + $0x7c8] sm:$0xff] %v7609_v5  ;;  %v7355_v29 = vmul.f32 %v6831_v20, %v1015_v49  ;;  %v5821_v61 = vmul.f32 %v8266_v1, %v5303_v31  ;;  %v5820_v9 = vmul.f32 %v8267_v40, %v5299_v24  ;;  %v5311_v52 = vrot.slane %v2655_v32, %v8866_v51 }
 0x2e4   : > { %7864 = vst [vmem:[%s9275_s20 + $0x7c0] sm:$0xff] %v7608_v13  ;;  %v7354_v54 = vmul.f32 %v6827_v34, %v1013_v57  ;;  %v5307_v45 = vrot.slane %v2653_v19, %v8866_v51  ;;  %v6847_v63 = vrot.slane %v4287_v15, %v8866_v51  ;;  %v6843_v35 = vrot.slane %v4285_v33, %v8866_v51 }
 0x2e5   : > { %v7611_v59 = vadd.f32 %v7355_v29, %v5819_v10  ;;  %v5823_v6 = vmul.f32 %v8268_v50, %v5311_v52 }
 0x2e6   : > { %v7610_v26 = vadd.f32 %v7354_v54, %v5818_v41  ;;  %v1019_v11 = vpop.permute.xlu1 %1018  ;;  %v5822_v30 = vmul.f32 %v8269_v37, %v5307_v45 }
 0x2e7   : > { %v1017_v2 = vpop.permute.xlu0 %1016  ;;  %7867 = vst [vmem:[%s9275_s20 + $0x7d8] sm:$0xff] %v7611_v59  ;;  %v7357_v14 = vmul.f32 %v6839_v38, %v1019_v11 }
 0x2e8   : > { %7866 = vst [vmem:[%s9275_s20 + $0x7d0] sm:$0xff] %v7610_v26  ;;  %v7356_v17 = vmul.f32 %v6835_v55, %v1017_v2 }
 0x2e9   : > { %v7613_v56 = vadd.f32 %v7357_v14, %v5821_v61 }
 0x2ea   : > { %v7612_v28 = vadd.f32 %v7356_v17, %v5820_v9  ;;  %v1023_v48 = vpop.permute.xlu1 %1022 }
 0x2eb   : > { %v1021_v53 = vpop.permute.xlu0 %1020  ;;  %7869 = vst [vmem:[%s9275_s20 + $0x7e8] sm:$0xff] %v7613_v56  ;;  %v7359_v12 = vmul.f32 %v6847_v63, %v1023_v48 }
 0x2ec   : > { %7868 = vst [vmem:[%s9275_s20 + $0x7e0] sm:$0xff] %v7612_v28  ;;  %v7358_v36 = vmul.f32 %v6843_v35, %v1021_v53 }
 0x2ed   : > { %v7615_v51 = vadd.f32 %v7359_v12, %v5823_v6 }
 0x2ee   : > { %v7614_v27 = vadd.f32 %v7358_v36, %v5822_v30 }
 0x2ef   : > { %7871 = vst [vmem:[%s9275_s20 + $0x7f8] sm:$0xff] %v7615_v51 }
 0x2f0   : > { %7870 = vst [vmem:[%s9275_s20 + $0x7f0] sm:$0xff] %v7614_v27 }
 0x2f1   : > { %8369 = shalt.err (!%p8366_p0)
}
 0x2f2   : > { %s8370_s8 = scalar_lea.hbm %s12436_s26, 32768  ;;  %s8374_s18 = scalar_lea.hbm %s12492_s3, 65536 }
 0x2f3   : > { %p8371_p2 = scmp.ne.s32.totalorder %s12436_s26, %s8370_s8  ;;  %p8375_p12 = scmp.lt.u32.totalorder %s12436_s26, %s12492_s3 }
 0x2f4   : > { %p8376_p1 = scmp.lt.u32.totalorder %s8374_s18, %s8370_s8  ;;  %p8378_p6 = scmp.lt.u32.totalorder %s8370_s8, %s12436_s26 }
 0x2f5   : > { %p8372_p13 = pnand %p8371_p2, %p8619_p5 }
 0x2f6   : > { %p8377_p11 = por %p8376_p1, %p8375_p12 }
 0x2f7   : > { %p8373_p4 = pneg %p8372_p13 }
 0x2f8   : > { %p8379_p8 = por %p8378_p6, %p8377_p11 }
 0x2fa   : > { %p8380_p10 = pnand %p8379_p8, %p8373_p4 }
 0x2fc   : > { %8383 = shalt.err (!%p8380_p10)
}
 0x2fd   : > { %s8452_s20 = smov 128   ;;  %s8453_s24 = smov 8  }
 0x2fe   : > { %8029 = dma.vmem_to_hbm [thread:$0]  (%p8619_p5), %s12438_s25, 32768, %s12436_s26, %s7873_s15, %s8452_s20, %s8452_s20, %s8453_s24  }
 0x2ff PF: > { %s7903_s28 = sand.u32 1, %s8422_s12   ;;  %p12707_p3 = scmp.ne.s32.totalorder %s12522_s23, 0 }
 0x300   : > { %p12708_p7 = scmp.ge.s32.totalorder %s8442_s17, 2  ;;  %s7904_s30 = scalar_lea.sflag [#allocation4], %s7903_s28 }
 0x302   : > { %p8043_p9 = pnand %p12708_p7, %p12707_p3 }
 0x304   : > { %8417 = dma.done.wait (!%p8043_p9), %s7904_s30, 32768  }
 0x305   : > { %8419 = vsyncadd (!%p8043_p9), %s7904_s30, 4294934528  ;;  %s20_s17 = sadd.s32 1, %s8442_s17   ;;  %s12709_s12 = smov %s8426_s13 }
 0x306   : > { %p17_p0 = scmp.ge.s32.totalorder %s20_s17, 4   ;;  %s12710_s13 = smov %s8430_s14 }
 0x307   : > { %s12711_s14 = smov %s8628_s11  ;;  %s12712_s15 = smov %s8438_s16 }
 0x308   : > { %s12713_s16 = smov %s12715_s27  ;;  %19 = sbr.rel (!%p17_p0) target bundleno = 7 (0x7), region = 87 }
 0x30f   :  { %7909 = vsyncpa [#allocation3], 1 }
 0x310   :  { %7911 = vsyncpa [#allocation3 + $0x1], 1 }
 0x311   :  { %7912 = vsyncpa [#allocation6], 1 }
 0x312   :  { %7913 = vsyncpa [#allocation4], 1 }
 0x313   :  { %7915 = vsyncpa [#allocation4 + $0x1], 1 }

</bundles_post_ra>
